<compile_context>
chip_gen: v5e
topology: v5e:2x2
jax: 0.10.0
libtpu: 0.0.40
codegen_flags: <defaults>
</compile_context>

<pallas_src>
import functools

import jax
import jax.numpy as jnp
from jax.experimental import pallas as pl
from jax.experimental.pallas import tpu as pltpu


# ---------------------------------------------------------------------------
# Pallas kernels (transposed layout: out = W @ patches, shape (C_out, M))
# ---------------------------------------------------------------------------

def _gemm_kernel(w_ref, p_ref, b_ref, o_ref, *, relu):
    # w: (C, K) bf16   p: (K, tm) bf16   b: (C, 1) f32   o: (C, tm) bf16
    acc = jnp.dot(w_ref[...], p_ref[...], preferred_element_type=jnp.float32)
    out = acc + b_ref[...]
    if relu:
        out = jnp.maximum(out, 0.0)
    o_ref[...] = out.astype(o_ref.dtype)


def _gemm_res_kernel(w_ref, p_ref, b_ref, r_ref, o_ref, *, relu):
    # Same as above plus fused residual add (r: (C, tm) bf16).
    acc = jnp.dot(w_ref[...], p_ref[...], preferred_element_type=jnp.float32)
    out = acc + b_ref[...] + r_ref[...].astype(jnp.float32)
    if relu:
        out = jnp.maximum(out, 0.0)
    o_ref[...] = out.astype(o_ref.dtype)


def _gemm_dual_kernel(w_ref, p_ref, b_ref, o1_ref, o2_ref, *, c_out):
    # Fused conv1 (3x3) + 1x1 projection shortcut of a downsample block.
    # w: (2*c_out, K): rows [:c_out] = main path (ReLU), rows [c_out:] = shortcut (no ReLU).
    acc = jnp.dot(w_ref[...], p_ref[...], preferred_element_type=jnp.float32)
    acc = acc + b_ref[...]
    o1_ref[...] = jnp.maximum(acc[:c_out, :], 0.0).astype(o1_ref.dtype)
    o2_ref[...] = acc[c_out:, :].astype(o2_ref.dtype)


def _gemm_res_pool_fc_kernel(w_ref, p_ref, b_ref, r_ref, pool_ref, wfc_ref,
                             bfc_ref, o_ref):
    # Final conv2 + residual + ReLU + global avg-pool + fully-connected layer.
    # w: (C, K) bf16  p: (K, M) bf16  b: (C, 1) f32  r: (C, M) bf16
    # pool: (M, N) f32 block-averaging matrix  wfc: (nc, C) f32  bfc: (nc, 1) f32
    # o: (nc, N) f32 (transposed logits; wrapper transposes back)
    acc = jnp.dot(w_ref[...], p_ref[...], preferred_element_type=jnp.float32)
    feat = jnp.maximum(acc + b_ref[...] + r_ref[...].astype(jnp.float32), 0.0)
    pooled = jnp.dot(feat, pool_ref[...], preferred_element_type=jnp.float32)
    logits_t = jnp.dot(wfc_ref[...], pooled, preferred_element_type=jnp.float32)
    o_ref[...] = logits_t + bfc_ref[...]


# ---------------------------------------------------------------------------
# pallas_call wrappers
# ---------------------------------------------------------------------------

def _pick_tm(m):
    """M (lane) tile: multiple of 128, <=1024, and >=2 grid steps when possible
    so both v7x TensorCores get work. Falls back to the full extent otherwise."""
    if m % 128 != 0 or m <= 128:
        return m
    cands = [t for t in range(128, min(m // 2, 1024) + 1, 128) if m % t == 0]
    return max(cands) if cands else m


def _pad_k(w2, patches):
    """Pad the contraction dim to a multiple of 8 (stem conv K=27 -> 32)."""
    k = patches.shape[0]
    kp = ((k + 7) // 8) * 8
    if kp != k:
        patches = jnp.pad(patches, ((0, kp - k), (0, 0)))
        w2 = jnp.pad(w2, ((0, 0), (0, kp - k)))
    return w2, patches


def gemm_fused(w2, patches, bias, residual=None, relu=True):
    """relu?((w2 @ patches) + bias [+ residual])  ->  (C, M) bf16, tiled over M."""
    w2, patches = _pad_k(w2, patches)
    c, k = w2.shape
    _, m = patches.shape
    tm = _pick_tm(m)
    grid = (m // tm,)

    in_specs = [
        pl.BlockSpec((c, k), lambda i: (0, 0)),       # folded weights (invariant)
        pl.BlockSpec((k, tm), lambda i: (0, i)),      # patches tile
        pl.BlockSpec((c, 1), lambda i: (0, 0)),       # folded bias (invariant)
    ]
    args = [w2.astype(jnp.bfloat16), patches.astype(jnp.bfloat16),
            bias.astype(jnp.float32)]
    if residual is not None:
        in_specs.append(pl.BlockSpec((c, tm), lambda i: (0, i)))
        args.append(residual.astype(jnp.bfloat16))
        kernel = functools.partial(_gemm_res_kernel, relu=relu)
    else:
        kernel = functools.partial(_gemm_kernel, relu=relu)

    return pl.pallas_call(
        kernel,
        out_shape=jax.ShapeDtypeStruct((c, m), jnp.bfloat16),
        grid=grid,
        in_specs=in_specs,
        out_specs=pl.BlockSpec((c, tm), lambda i: (0, i)),
        compiler_params=pltpu.CompilerParams(dimension_semantics=("parallel",)),
    )(*args)


def gemm_dual(w_cat, patches, b_cat, c_out):
    """Fused conv1 + projection shortcut (shared patches, concatenated weights).
    Returns (relu(main), shortcut), each (c_out, M) bf16."""
    w_cat, patches = _pad_k(w_cat, patches)
    c2, k = w_cat.shape
    _, m = patches.shape
    tm = _pick_tm(m)
    grid = (m // tm,)

    return pl.pallas_call(
        functools.partial(_gemm_dual_kernel, c_out=c_out),
        out_shape=(jax.ShapeDtypeStruct((c_out, m), jnp.bfloat16),
                   jax.ShapeDtypeStruct((c_out, m), jnp.bfloat16)),
        grid=grid,
        in_specs=[pl.BlockSpec((c2, k), lambda i: (0, 0)),
                  pl.BlockSpec((k, tm), lambda i: (0, i)),
                  pl.BlockSpec((c2, 1), lambda i: (0, 0))],
        out_specs=(pl.BlockSpec((c_out, tm), lambda i: (0, i)),
                   pl.BlockSpec((c_out, tm), lambda i: (0, i))),
        compiler_params=pltpu.CompilerParams(dimension_semantics=("parallel",)),
    )(w_cat.astype(jnp.bfloat16), patches.astype(jnp.bfloat16),
      b_cat.astype(jnp.float32))


def gemm_res_pool_fc(w2, patches, bias, residual, w_fc, b_fc, n, hw):
    """Final conv + residual + ReLU + global avg-pool + FC, fused in one kernel."""
    w2, patches = _pad_k(w2, patches)
    _, m = patches.shape
    assert m == n * hw
    num_classes = w_fc.shape[0]
    # Column j of `pool` averages the hw spatial positions of image j
    # (GEMM columns are ordered (n, h, w), so image columns are contiguous).
    pool = jnp.repeat(jnp.eye(n, dtype=jnp.float32), hw, axis=0) / float(hw)
    logits_t = pl.pallas_call(
        _gemm_res_pool_fc_kernel,
        out_shape=jax.ShapeDtypeStruct((num_classes, n), jnp.float32),
    )(w2.astype(jnp.bfloat16), patches.astype(jnp.bfloat16),
      bias.astype(jnp.float32), residual.astype(jnp.bfloat16), pool,
      w_fc.astype(jnp.float32), b_fc.reshape(num_classes, 1).astype(jnp.float32))
    return jnp.transpose(logits_t)                    # (N, num_classes)


# ---------------------------------------------------------------------------
# Conv / block / network glue (plain JAX reshapes around the Pallas kernels)
# ---------------------------------------------------------------------------

def im2col_t(x, k, stride, pad):
    """x: (C, N, H, W) -> patches (k*k*C, N*Ho*Wo); row blocks ordered (kh, kw, C)."""
    c, n, h, w = x.shape
    if pad > 0:
        x = jnp.pad(x, ((0, 0), (0, 0), (pad, pad), (pad, pad)))
    ho = (h + 2 * pad - k) // stride + 1
    wo = (w + 2 * pad - k) // stride + 1
    rows = []
    for di in range(k):
        for dj in range(k):
            rows.append(x[:, :, di:di + stride * ho:stride,
                          dj:dj + stride * wo:stride])
    patches = jnp.concatenate(rows, axis=0)           # (k*k*C, N, Ho, Wo)
    return patches.reshape(k * k * c, n * ho * wo), (n, ho, wo)


def fold_bn(w_oihw, bn_params, eps=1e-5):
    """Fold eval-mode BatchNorm into the conv weight.
    Returns ((C_out, kh*kw*C_in) scale-folded weight, (C_out, 1) bias), both f32."""
    gamma, beta, mean, var = bn_params
    scale = gamma / jnp.sqrt(var + eps)
    bias = beta - mean * scale
    o, i, kh, kw = w_oihw.shape
    w2 = jnp.transpose(w_oihw, (0, 2, 3, 1)).reshape(o, kh * kw * i)
    return w2 * scale[:, None], bias.reshape(o, 1)


def basic_block(x, bp, stride, *, fc=None):
    """x: (C_in, N, H, W) bf16 -> (C_out, N, Ho, Wo) bf16, or logits (N, nc) if fc given."""
    c_in, n, h, w = x.shape
    patches, (n, ho, wo) = im2col_t(x, 3, stride, 1)
    w1, b1 = fold_bn(bp['conv1_w'], bp['bn1'])
    c_out = w1.shape[0]

    if 'sc_w' in bp:
        # Embed the 1x1 projection-shortcut weights at the centre tap of a 3x3
        # kernel so conv1 and the shortcut share one patch matrix and one GEMM.
        sc_w = bp['sc_w'][:, :, 0, 0]
        sc_w33 = jnp.zeros((c_out, c_in, 3, 3), sc_w.dtype).at[:, :, 1, 1].set(sc_w)
        ws, bs = fold_bn(sc_w33, bp['sc_bn'])
        h1, sc = gemm_dual(jnp.concatenate([w1, ws], axis=0), patches,
                           jnp.concatenate([b1, bs], axis=0), c_out)
    else:
        h1 = gemm_fused(w1, patches, b1, relu=True)
        sc = x.reshape(c_in, n * h * w)               # identity shortcut

    patches2, _ = im2col_t(h1.reshape(c_out, n, ho, wo), 3, 1, 1)
    w2, b2 = fold_bn(bp['conv2_w'], bp['bn2'])
    if fc is not None:                                # last block: fuse pool + FC
        return gemm_res_pool_fc(w2, patches2, b2, sc, fc[0], fc[1], n, ho * wo)
    out = gemm_fused(w2, patches2, b2, residual=sc, relu=True)
    return out.reshape(c_out, n, ho, wo)


def cifar_resnet_forward(x_nchw, params):
    # NCHW -> channels-leading (C, N, H, W); bf16 activations between kernels.
    x = jnp.transpose(x_nchw, (1, 0, 2, 3)).astype(jnp.bfloat16)
    patches, (n, h, w) = im2col_t(x, 3, 1, 1)
    w1, b1 = fold_bn(params['conv1_w'], params['bn1'])
    x = gemm_fused(w1, patches, b1, relu=True).reshape(-1, n, h, w)

    blocks = []
    for name, stride in (('layer1', 1), ('layer2', 2), ('layer3', 2)):
        for i, bp in enumerate(params[name]):
            blocks.append((bp, stride if i == 0 else 1))
    for j, (bp, s) in enumerate(blocks):
        if j == len(blocks) - 1:
            return basic_block(x, bp, s, fc=(params['fc_w'], params['fc_b']))
        x = basic_block(x, bp, s)


# ---------------------------------------------------------------------------
# Deterministic parameter construction (matches nn.Module shapes, expansion=1)
# ---------------------------------------------------------------------------

def init_params(key, num_blocks=(1, 1, 1), num_classes=10):
    keys = iter(jax.random.split(key, 64))

    def conv_w(cout, cin, k):
        return jax.random.normal(next(keys), (cout, cin, k, k), jnp.float32) * 0.1

    def bn(c):
        # (gamma, beta, running_mean, running_var) — PyTorch defaults.
        return (jnp.ones((c,), jnp.float32), jnp.zeros((c,), jnp.float32),
                jnp.zeros((c,), jnp.float32), jnp.ones((c,), jnp.float32))

    params = {'conv1_w': conv_w(16, 3, 3), 'bn1': bn(16)}
    in_c = 16
    for li, (out_c, nb, stride) in enumerate(
            [(16, num_blocks[0], 1), (32, num_blocks[1], 2), (64, num_blocks[2], 2)],
            start=1):
        blocks = []
        for bi in range(nb):
            s = stride if bi == 0 else 1
            bp = {'conv1_w': conv_w(out_c, in_c, 3), 'bn1': bn(out_c),
                  'conv2_w': conv_w(out_c, out_c, 3), 'bn2': bn(out_c)}
            if s != 1 or in_c != out_c:
                bp['sc_w'] = conv_w(out_c, in_c, 1)
                bp['sc_bn'] = bn(out_c)
            blocks.append(bp)
            in_c = out_c
        params[f'layer{li}'] = blocks
    params['fc_w'] = jax.random.normal(next(keys), (num_classes, 64), jnp.float32) * 0.1
    params['fc_b'] = jnp.zeros((num_classes,), jnp.float32)
    return params


# ---------------------------------------------------------------------------

if __name__ == "__main__":
    key = jax.random.PRNGKey(0)
    pkey, xkey = jax.random.split(key)
    params = init_params(pkey)

    # CIFAR-style input: batch=2, 3 channels, 32x32 spatial (NCHW, as in PyTorch).
    x = jax.random.normal(xkey, (2, 3, 32, 32), jnp.float32)

    logits = jax.jit(cifar_resnet_forward)(x, params)
    logits = jax.block_until_ready(logits)
    assert logits.shape == (2, 10) and logits.dtype == jnp.float32
    assert bool(jnp.all(jnp.isfinite(logits)))
    print("KERNEL_OK")
</pallas_src>

<mosaic_0001>
module attributes {stable_mosaic.version = 11 : i64} {
  func.func @_gemm_kernel(%arg0: i32, %arg1: memref<16x32xbf16, #tpu.memory_space<vmem>>, %arg2: memref<32x1024xbf16, #tpu.memory_space<vmem>>, %arg3: memref<16x1xf32, #tpu.memory_space<vmem>>, %arg4: memref<16x1024xbf16, #tpu.memory_space<vmem>>) attributes {dimension_semantics = [#tpu.dimension_semantics<parallel>], iteration_bounds = array<i64: 2>, scalar_prefetch = 0 : i64, scratch_operands = 0 : i64, tpu.core_type = #tpu.core_type<tc>, window_params = [{pipeline_mode = #tpu.pipeline_mode<synchronous>, transform_indices = @transform_0, window_bounds = array<i64: 16, 32>}, {transform_indices = @transform_1, window_bounds = array<i64: 32, 1024>}, {pipeline_mode = #tpu.pipeline_mode<synchronous>, transform_indices = @transform_2, window_bounds = array<i64: 16, 1>}, {transform_indices = @transform_3, window_bounds = array<i64: 16, 1024>}]} {
    %c0 = arith.constant 0 : index
    %c0_0 = arith.constant 0 : index
    %0 = vector.load %arg1[%c0, %c0_0] : memref<16x32xbf16, #tpu.memory_space<vmem>>, vector<16x32xbf16>
    %c0_1 = arith.constant 0 : index
    %c0_2 = arith.constant 0 : index
    %1 = vector.load %arg2[%c0_1, %c0_2] : memref<32x1024xbf16, #tpu.memory_space<vmem>>, vector<32x1024xbf16>
    %cst = arith.constant dense<0.000000e+00> : vector<16x1024xf32>
    %2 = tpu.matmul %0, %1, %cst {dimension_numbers = #tpu.dot_dimension_numbers<[1], [0], [0], [1], [0, 0, 1, 1], [], []>} : vector<16x32xbf16>, vector<32x1024xbf16>, vector<16x1024xf32> -> vector<16x1024xf32>
    %c0_3 = arith.constant 0 : index
    %c0_4 = arith.constant 0 : index
    %3 = vector.load %arg3[%c0_3, %c0_4] : memref<16x1xf32, #tpu.memory_space<vmem>>, vector<16x1xf32>
    %4 = vector.broadcast %3 : vector<16x1xf32> to vector<16x1024xf32>
    %5 = arith.addf %2, %4 : vector<16x1024xf32>
    %cst_5 = arith.constant 0.000000e+00 : f32
    %6 = vector.broadcast %cst_5 : f32 to vector<16x1024xf32>
    %7 = arith.maximumf %5, %6 : vector<16x1024xf32>
    %8 = arith.truncf %7 : vector<16x1024xf32> to vector<16x1024xbf16>
    %c0_6 = arith.constant 0 : index
    %c0_7 = arith.constant 0 : index
    %9 = vector.load %arg4[%c0_6, %c0_7] : memref<16x1024xbf16, #tpu.memory_space<vmem>>, vector<16x1024xbf16>
    tpu.vector_store %arg4[%c0_6, %c0_7], %8 {strides = array<i32>} : memref<16x1024xbf16, #tpu.memory_space<vmem>>, vector<16x1024xbf16>,
    return
  }
  func.func @transform_0(%arg0: i32) -> (i32, i32) {
    %c0_i32 = arith.constant 0 : i32
    %c0_i32_0 = arith.constant 0 : i32
    %c0_i32_1 = arith.constant 0 : i32
    return %c0_i32, %c0_i32_0 : i32, i32
  }
  func.func @transform_1(%arg0: i32) -> (i32, i32) {
    %c0_i32 = arith.constant 0 : i32
    %c0_i32_0 = arith.constant 0 : i32
    return %c0_i32, %arg0 : i32, i32
  }
  func.func @transform_2(%arg0: i32) -> (i32, i32) {
    %c0_i32 = arith.constant 0 : i32
    %c0_i32_0 = arith.constant 0 : i32
    %c0_i32_1 = arith.constant 0 : i32
    return %c0_i32, %c0_i32_0 : i32, i32
  }
  func.func @transform_3(%arg0: i32) -> (i32, i32) {
    %c0_i32 = arith.constant 0 : i32
    %c0_i32_0 = arith.constant 0 : i32
    return %c0_i32, %arg0 : i32, i32
  }
}

module attributes {stable_mosaic.version = 11 : i64} {
  func.func @_gemm_kernel(%arg0: i32, %arg1: memref<16x144xbf16, #tpu.memory_space<vmem>>, %arg2: memref<144x1024xbf16, #tpu.memory_space<vmem>>, %arg3: memref<16x1xf32, #tpu.memory_space<vmem>>, %arg4: memref<16x1024xbf16, #tpu.memory_space<vmem>>) attributes {dimension_semantics = [#tpu.dimension_semantics<parallel>], iteration_bounds = array<i64: 2>, scalar_prefetch = 0 : i64, scratch_operands = 0 : i64, tpu.core_type = #tpu.core_type<tc>, window_params = [{pipeline_mode = #tpu.pipeline_mode<synchronous>, transform_indices = @transform_0, window_bounds = array<i64: 16, 144>}, {transform_indices = @transform_1, window_bounds = array<i64: 144, 1024>}, {pipeline_mode = #tpu.pipeline_mode<synchronous>, transform_indices = @transform_2, window_bounds = array<i64: 16, 1>}, {transform_indices = @transform_3, window_bounds = array<i64: 16, 1024>}]} {
    %c0 = arith.constant 0 : index
    %c0_0 = arith.constant 0 : index
    %0 = vector.load %arg1[%c0, %c0_0] : memref<16x144xbf16, #tpu.memory_space<vmem>>, vector<16x144xbf16>
    %c0_1 = arith.constant 0 : index
    %c0_2 = arith.constant 0 : index
    %1 = vector.load %arg2[%c0_1, %c0_2] : memref<144x1024xbf16, #tpu.memory_space<vmem>>, vector<144x1024xbf16>
    %cst = arith.constant dense<0.000000e+00> : vector<16x1024xf32>
    %2 = tpu.matmul %0, %1, %cst {dimension_numbers = #tpu.dot_dimension_numbers<[1], [0], [0], [1], [0, 0, 1, 1], [], []>} : vector<16x144xbf16>, vector<144x1024xbf16>, vector<16x1024xf32> -> vector<16x1024xf32>
    %c0_3 = arith.constant 0 : index
    %c0_4 = arith.constant 0 : index
    %3 = vector.load %arg3[%c0_3, %c0_4] : memref<16x1xf32, #tpu.memory_space<vmem>>, vector<16x1xf32>
    %4 = vector.broadcast %3 : vector<16x1xf32> to vector<16x1024xf32>
    %5 = arith.addf %2, %4 : vector<16x1024xf32>
    %cst_5 = arith.constant 0.000000e+00 : f32
    %6 = vector.broadcast %cst_5 : f32 to vector<16x1024xf32>
    %7 = arith.maximumf %5, %6 : vector<16x1024xf32>
    %8 = arith.truncf %7 : vector<16x1024xf32> to vector<16x1024xbf16>
    %c0_6 = arith.constant 0 : index
    %c0_7 = arith.constant 0 : index
    %9 = vector.load %arg4[%c0_6, %c0_7] : memref<16x1024xbf16, #tpu.memory_space<vmem>>, vector<16x1024xbf16>
    tpu.vector_store %arg4[%c0_6, %c0_7], %8 {strides = array<i32>} : memref<16x1024xbf16, #tpu.memory_space<vmem>>, vector<16x1024xbf16>,
    return
  }
  func.func @transform_0(%arg0: i32) -> (i32, i32) {
    %c0_i32 = arith.constant 0 : i32
    %c0_i32_0 = arith.constant 0 : i32
    %c0_i32_1 = arith.constant 0 : i32
    return %c0_i32, %c0_i32_0 : i32, i32
  }
  func.func @transform_1(%arg0: i32) -> (i32, i32) {
    %c0_i32 = arith.constant 0 : i32
    %c0_i32_0 = arith.constant 0 : i32
    return %c0_i32, %arg0 : i32, i32
  }
  func.func @transform_2(%arg0: i32) -> (i32, i32) {
    %c0_i32 = arith.constant 0 : i32
    %c0_i32_0 = arith.constant 0 : i32
    %c0_i32_1 = arith.constant 0 : i32
    return %c0_i32, %c0_i32_0 : i32, i32
  }
  func.func @transform_3(%arg0: i32) -> (i32, i32) {
    %c0_i32 = arith.constant 0 : i32
    %c0_i32_0 = arith.constant 0 : i32
    return %c0_i32, %arg0 : i32, i32
  }
}

module attributes {stable_mosaic.version = 11 : i64} {
  func.func @_gemm_res_kernel(%arg0: i32, %arg1: memref<16x144xbf16, #tpu.memory_space<vmem>>, %arg2: memref<144x1024xbf16, #tpu.memory_space<vmem>>, %arg3: memref<16x1xf32, #tpu.memory_space<vmem>>, %arg4: memref<16x1024xbf16, #tpu.memory_space<vmem>>, %arg5: memref<16x1024xbf16, #tpu.memory_space<vmem>>) attributes {dimension_semantics = [#tpu.dimension_semantics<parallel>], iteration_bounds = array<i64: 2>, scalar_prefetch = 0 : i64, scratch_operands = 0 : i64, tpu.core_type = #tpu.core_type<tc>, window_params = [{pipeline_mode = #tpu.pipeline_mode<synchronous>, transform_indices = @transform_0, window_bounds = array<i64: 16, 144>}, {transform_indices = @transform_1, window_bounds = array<i64: 144, 1024>}, {pipeline_mode = #tpu.pipeline_mode<synchronous>, transform_indices = @transform_2, window_bounds = array<i64: 16, 1>}, {transform_indices = @transform_3, window_bounds = array<i64: 16, 1024>}, {transform_indices = @transform_4, window_bounds = array<i64: 16, 1024>}]} {
    %c0 = arith.constant 0 : index
    %c0_0 = arith.constant 0 : index
    %0 = vector.load %arg1[%c0, %c0_0] : memref<16x144xbf16, #tpu.memory_space<vmem>>, vector<16x144xbf16>
    %c0_1 = arith.constant 0 : index
    %c0_2 = arith.constant 0 : index
    %1 = vector.load %arg2[%c0_1, %c0_2] : memref<144x1024xbf16, #tpu.memory_space<vmem>>, vector<144x1024xbf16>
    %cst = arith.constant dense<0.000000e+00> : vector<16x1024xf32>
    %2 = tpu.matmul %0, %1, %cst {dimension_numbers = #tpu.dot_dimension_numbers<[1], [0], [0], [1], [0, 0, 1, 1], [], []>} : vector<16x144xbf16>, vector<144x1024xbf16>, vector<16x1024xf32> -> vector<16x1024xf32>
    %c0_3 = arith.constant 0 : index
    %c0_4 = arith.constant 0 : index
    %3 = vector.load %arg3[%c0_3, %c0_4] : memref<16x1xf32, #tpu.memory_space<vmem>>, vector<16x1xf32>
    %4 = vector.broadcast %3 : vector<16x1xf32> to vector<16x1024xf32>
    %5 = arith.addf %2, %4 : vector<16x1024xf32>
    %c0_5 = arith.constant 0 : index
    %c0_6 = arith.constant 0 : index
    %6 = vector.load %arg4[%c0_5, %c0_6] : memref<16x1024xbf16, #tpu.memory_space<vmem>>, vector<16x1024xbf16>
    %7 = arith.extf %6 : vector<16x1024xbf16> to vector<16x1024xf32>
    %8 = arith.addf %5, %7 : vector<16x1024xf32>
    %cst_7 = arith.constant 0.000000e+00 : f32
    %9 = vector.broadcast %cst_7 : f32 to vector<16x1024xf32>
    %10 = arith.maximumf %8, %9 : vector<16x1024xf32>
    %11 = arith.truncf %10 : vector<16x1024xf32> to vector<16x1024xbf16>
    %c0_8 = arith.constant 0 : index
    %c0_9 = arith.constant 0 : index
    %12 = vector.load %arg5[%c0_8, %c0_9] : memref<16x1024xbf16, #tpu.memory_space<vmem>>, vector<16x1024xbf16>
    tpu.vector_store %arg5[%c0_8, %c0_9], %11 {strides = array<i32>} : memref<16x1024xbf16, #tpu.memory_space<vmem>>, vector<16x1024xbf16>,
    return
  }
  func.func @transform_0(%arg0: i32) -> (i32, i32) {
    %c0_i32 = arith.constant 0 : i32
    %c0_i32_0 = arith.constant 0 : i32
    %c0_i32_1 = arith.constant 0 : i32
    return %c0_i32, %c0_i32_0 : i32, i32
  }
  func.func @transform_1(%arg0: i32) -> (i32, i32) {
    %c0_i32 = arith.constant 0 : i32
    %c0_i32_0 = arith.constant 0 : i32
    return %c0_i32, %arg0 : i32, i32
  }
  func.func @transform_2(%arg0: i32) -> (i32, i32) {
    %c0_i32 = arith.constant 0 : i32
    %c0_i32_0 = arith.constant 0 : i32
    %c0_i32_1 = arith.constant 0 : i32
    return %c0_i32, %c0_i32_0 : i32, i32
  }
  func.func @transform_3(%arg0: i32) -> (i32, i32) {
    %c0_i32 = arith.constant 0 : i32
    %c0_i32_0 = arith.constant 0 : i32
    return %c0_i32, %arg0 : i32, i32
  }
  func.func @transform_4(%arg0: i32) -> (i32, i32) {
    %c0_i32 = arith.constant 0 : i32
    %c0_i32_0 = arith.constant 0 : i32
    return %c0_i32, %arg0 : i32, i32
  }
}

module attributes {stable_mosaic.version = 11 : i64} {
  func.func @_gemm_dual_kernel(%arg0: i32, %arg1: memref<64x144xbf16, #tpu.memory_space<vmem>>, %arg2: memref<144x256xbf16, #tpu.memory_space<vmem>>, %arg3: memref<64x1xf32, #tpu.memory_space<vmem>>, %arg4: memref<32x256xbf16, #tpu.memory_space<vmem>>, %arg5: memref<32x256xbf16, #tpu.memory_space<vmem>>) attributes {dimension_semantics = [#tpu.dimension_semantics<parallel>], iteration_bounds = array<i64: 2>, scalar_prefetch = 0 : i64, scratch_operands = 0 : i64, tpu.core_type = #tpu.core_type<tc>, window_params = [{pipeline_mode = #tpu.pipeline_mode<synchronous>, transform_indices = @transform_0, window_bounds = array<i64: 64, 144>}, {transform_indices = @transform_1, window_bounds = array<i64: 144, 256>}, {pipeline_mode = #tpu.pipeline_mode<synchronous>, transform_indices = @transform_2, window_bounds = array<i64: 64, 1>}, {transform_indices = @transform_3, window_bounds = array<i64: 32, 256>}, {transform_indices = @transform_4, window_bounds = array<i64: 32, 256>}]} {
    %c0 = arith.constant 0 : index
    %c0_0 = arith.constant 0 : index
    %0 = vector.load %arg1[%c0, %c0_0] : memref<64x144xbf16, #tpu.memory_space<vmem>>, vector<64x144xbf16>
    %c0_1 = arith.constant 0 : index
    %c0_2 = arith.constant 0 : index
    %1 = vector.load %arg2[%c0_1, %c0_2] : memref<144x256xbf16, #tpu.memory_space<vmem>>, vector<144x256xbf16>
    %cst = arith.constant dense<0.000000e+00> : vector<64x256xf32>
    %2 = tpu.matmul %0, %1, %cst {dimension_numbers = #tpu.dot_dimension_numbers<[1], [0], [0], [1], [0, 0, 1, 1], [], []>} : vector<64x144xbf16>, vector<144x256xbf16>, vector<64x256xf32> -> vector<64x256xf32>
    %c0_3 = arith.constant 0 : index
    %c0_4 = arith.constant 0 : index
    %3 = vector.load %arg3[%c0_3, %c0_4] : memref<64x1xf32, #tpu.memory_space<vmem>>, vector<64x1xf32>
    %4 = vector.broadcast %3 : vector<64x1xf32> to vector<64x256xf32>
    %5 = arith.addf %2, %4 : vector<64x256xf32>
    %6 = vector.extract_strided_slice %5 {offsets = [0, 0], sizes = [32, 256], strides = [1, 1]} : vector<64x256xf32> to vector<32x256xf32>
    %cst_5 = arith.constant 0.000000e+00 : f32
    %7 = vector.broadcast %cst_5 : f32 to vector<32x256xf32>
    %8 = arith.maximumf %6, %7 : vector<32x256xf32>
    %9 = arith.truncf %8 : vector<32x256xf32> to vector<32x256xbf16>
    %c0_6 = arith.constant 0 : index
    %c0_7 = arith.constant 0 : index
    %10 = vector.load %arg4[%c0_6, %c0_7] : memref<32x256xbf16, #tpu.memory_space<vmem>>, vector<32x256xbf16>
    tpu.vector_store %arg4[%c0_6, %c0_7], %9 {strides = array<i32>} : memref<32x256xbf16, #tpu.memory_space<vmem>>, vector<32x256xbf16>,
    %11 = vector.extract_strided_slice %5 {offsets = [32, 0], sizes = [32, 256], strides = [1, 1]} : vector<64x256xf32> to vector<32x256xf32>
    %12 = arith.truncf %11 : vector<32x256xf32> to vector<32x256xbf16>
    %c0_8 = arith.constant 0 : index
    %c0_9 = arith.constant 0 : index
    %13 = vector.load %arg5[%c0_8, %c0_9] : memref<32x256xbf16, #tpu.memory_space<vmem>>, vector<32x256xbf16>
    tpu.vector_store %arg5[%c0_8, %c0_9], %12 {strides = array<i32>} : memref<32x256xbf16, #tpu.memory_space<vmem>>, vector<32x256xbf16>,
    return
  }
  func.func @transform_0(%arg0: i32) -> (i32, i32) {
    %c0_i32 = arith.constant 0 : i32
    %c0_i32_0 = arith.constant 0 : i32
    %c0_i32_1 = arith.constant 0 : i32
    return %c0_i32, %c0_i32_0 : i32, i32
  }
  func.func @transform_1(%arg0: i32) -> (i32, i32) {
    %c0_i32 = arith.constant 0 : i32
    %c0_i32_0 = arith.constant 0 : i32
    return %c0_i32, %arg0 : i32, i32
  }
  func.func @transform_2(%arg0: i32) -> (i32, i32) {
    %c0_i32 = arith.constant 0 : i32
    %c0_i32_0 = arith.constant 0 : i32
    %c0_i32_1 = arith.constant 0 : i32
    return %c0_i32, %c0_i32_0 : i32, i32
  }
  func.func @transform_3(%arg0: i32) -> (i32, i32) {
    %c0_i32 = arith.constant 0 : i32
    %c0_i32_0 = arith.constant 0 : i32
    return %c0_i32, %arg0 : i32, i32
  }
  func.func @transform_4(%arg0: i32) -> (i32, i32) {
    %c0_i32 = arith.constant 0 : i32
    %c0_i32_0 = arith.constant 0 : i32
    return %c0_i32, %arg0 : i32, i32
  }
}

module attributes {stable_mosaic.version = 11 : i64} {
  func.func @_gemm_res_kernel(%arg0: i32, %arg1: memref<32x288xbf16, #tpu.memory_space<vmem>>, %arg2: memref<288x256xbf16, #tpu.memory_space<vmem>>, %arg3: memref<32x1xf32, #tpu.memory_space<vmem>>, %arg4: memref<32x256xbf16, #tpu.memory_space<vmem>>, %arg5: memref<32x256xbf16, #tpu.memory_space<vmem>>) attributes {dimension_semantics = [#tpu.dimension_semantics<parallel>], iteration_bounds = array<i64: 2>, scalar_prefetch = 0 : i64, scratch_operands = 0 : i64, tpu.core_type = #tpu.core_type<tc>, window_params = [{pipeline_mode = #tpu.pipeline_mode<synchronous>, transform_indices = @transform_0, window_bounds = array<i64: 32, 288>}, {transform_indices = @transform_1, window_bounds = array<i64: 288, 256>}, {pipeline_mode = #tpu.pipeline_mode<synchronous>, transform_indices = @transform_2, window_bounds = array<i64: 32, 1>}, {transform_indices = @transform_3, window_bounds = array<i64: 32, 256>}, {transform_indices = @transform_4, window_bounds = array<i64: 32, 256>}]} {
    %c0 = arith.constant 0 : index
    %c0_0 = arith.constant 0 : index
    %0 = vector.load %arg1[%c0, %c0_0] : memref<32x288xbf16, #tpu.memory_space<vmem>>, vector<32x288xbf16>
    %c0_1 = arith.constant 0 : index
    %c0_2 = arith.constant 0 : index
    %1 = vector.load %arg2[%c0_1, %c0_2] : memref<288x256xbf16, #tpu.memory_space<vmem>>, vector<288x256xbf16>
    %cst = arith.constant dense<0.000000e+00> : vector<32x256xf32>
    %2 = tpu.matmul %0, %1, %cst {dimension_numbers = #tpu.dot_dimension_numbers<[1], [0], [0], [1], [0, 0, 1, 1], [], []>} : vector<32x288xbf16>, vector<288x256xbf16>, vector<32x256xf32> -> vector<32x256xf32>
    %c0_3 = arith.constant 0 : index
    %c0_4 = arith.constant 0 : index
    %3 = vector.load %arg3[%c0_3, %c0_4] : memref<32x1xf32, #tpu.memory_space<vmem>>, vector<32x1xf32>
    %4 = vector.broadcast %3 : vector<32x1xf32> to vector<32x256xf32>
    %5 = arith.addf %2, %4 : vector<32x256xf32>
    %c0_5 = arith.constant 0 : index
    %c0_6 = arith.constant 0 : index
    %6 = vector.load %arg4[%c0_5, %c0_6] : memref<32x256xbf16, #tpu.memory_space<vmem>>, vector<32x256xbf16>
    %7 = arith.extf %6 : vector<32x256xbf16> to vector<32x256xf32>
    %8 = arith.addf %5, %7 : vector<32x256xf32>
    %cst_7 = arith.constant 0.000000e+00 : f32
    %9 = vector.broadcast %cst_7 : f32 to vector<32x256xf32>
    %10 = arith.maximumf %8, %9 : vector<32x256xf32>
    %11 = arith.truncf %10 : vector<32x256xf32> to vector<32x256xbf16>
    %c0_8 = arith.constant 0 : index
    %c0_9 = arith.constant 0 : index
    %12 = vector.load %arg5[%c0_8, %c0_9] : memref<32x256xbf16, #tpu.memory_space<vmem>>, vector<32x256xbf16>
    tpu.vector_store %arg5[%c0_8, %c0_9], %11 {strides = array<i32>} : memref<32x256xbf16, #tpu.memory_space<vmem>>, vector<32x256xbf16>,
    return
  }
  func.func @transform_0(%arg0: i32) -> (i32, i32) {
    %c0_i32 = arith.constant 0 : i32
    %c0_i32_0 = arith.constant 0 : i32
    %c0_i32_1 = arith.constant 0 : i32
    return %c0_i32, %c0_i32_0 : i32, i32
  }
  func.func @transform_1(%arg0: i32) -> (i32, i32) {
    %c0_i32 = arith.constant 0 : i32
    %c0_i32_0 = arith.constant 0 : i32
    return %c0_i32, %arg0 : i32, i32
  }
  func.func @transform_2(%arg0: i32) -> (i32, i32) {
    %c0_i32 = arith.constant 0 : i32
    %c0_i32_0 = arith.constant 0 : i32
    %c0_i32_1 = arith.constant 0 : i32
    return %c0_i32, %c0_i32_0 : i32, i32
  }
  func.func @transform_3(%arg0: i32) -> (i32, i32) {
    %c0_i32 = arith.constant 0 : i32
    %c0_i32_0 = arith.constant 0 : i32
    return %c0_i32, %arg0 : i32, i32
  }
  func.func @transform_4(%arg0: i32) -> (i32, i32) {
    %c0_i32 = arith.constant 0 : i32
    %c0_i32_0 = arith.constant 0 : i32
    return %c0_i32, %arg0 : i32, i32
  }
}

module attributes {stable_mosaic.version = 11 : i64} {
  func.func @_gemm_dual_kernel(%arg0: i32, %arg1: memref<128x288xbf16, #tpu.memory_space<vmem>>, %arg2: memref<288x128xbf16, #tpu.memory_space<vmem>>, %arg3: memref<128x1xf32, #tpu.memory_space<vmem>>, %arg4: memref<64x128xbf16, #tpu.memory_space<vmem>>, %arg5: memref<64x128xbf16, #tpu.memory_space<vmem>>) attributes {dimension_semantics = [#tpu.dimension_semantics<parallel>], iteration_bounds = array<i64: 1>, scalar_prefetch = 0 : i64, scratch_operands = 0 : i64, tpu.core_type = #tpu.core_type<tc>, window_params = [{pipeline_mode = #tpu.pipeline_mode<synchronous>, transform_indices = @transform_0, window_bounds = array<i64: 128, 288>}, {transform_indices = @transform_1, window_bounds = array<i64: 288, 128>}, {pipeline_mode = #tpu.pipeline_mode<synchronous>, transform_indices = @transform_2, window_bounds = array<i64: 128, 1>}, {transform_indices = @transform_3, window_bounds = array<i64: 64, 128>}, {transform_indices = @transform_4, window_bounds = array<i64: 64, 128>}]} {
    %c0 = arith.constant 0 : index
    %c0_0 = arith.constant 0 : index
    %0 = vector.load %arg1[%c0, %c0_0] : memref<128x288xbf16, #tpu.memory_space<vmem>>, vector<128x288xbf16>
    %c0_1 = arith.constant 0 : index
    %c0_2 = arith.constant 0 : index
    %1 = vector.load %arg2[%c0_1, %c0_2] : memref<288x128xbf16, #tpu.memory_space<vmem>>, vector<288x128xbf16>
    %cst = arith.constant dense<0.000000e+00> : vector<128x128xf32>
    %2 = tpu.matmul %0, %1, %cst {dimension_numbers = #tpu.dot_dimension_numbers<[1], [0], [0], [1], [0, 0, 1, 1], [], []>} : vector<128x288xbf16>, vector<288x128xbf16>, vector<128x128xf32> -> vector<128x128xf32>
    %c0_3 = arith.constant 0 : index
    %c0_4 = arith.constant 0 : index
    %3 = vector.load %arg3[%c0_3, %c0_4] : memref<128x1xf32, #tpu.memory_space<vmem>>, vector<128x1xf32>
    %4 = vector.broadcast %3 : vector<128x1xf32> to vector<128x128xf32>
    %5 = arith.addf %2, %4 : vector<128x128xf32>
    %6 = vector.extract_strided_slice %5 {offsets = [0, 0], sizes = [64, 128], strides = [1, 1]} : vector<128x128xf32> to vector<64x128xf32>
    %cst_5 = arith.constant 0.000000e+00 : f32
    %7 = vector.broadcast %cst_5 : f32 to vector<64x128xf32>
    %8 = arith.maximumf %6, %7 : vector<64x128xf32>
    %9 = arith.truncf %8 : vector<64x128xf32> to vector<64x128xbf16>
    %c0_6 = arith.constant 0 : index
    %c0_7 = arith.constant 0 : index
    %10 = vector.load %arg4[%c0_6, %c0_7] : memref<64x128xbf16, #tpu.memory_space<vmem>>, vector<64x128xbf16>
    tpu.vector_store %arg4[%c0_6, %c0_7], %9 {strides = array<i32>} : memref<64x128xbf16, #tpu.memory_space<vmem>>, vector<64x128xbf16>,
    %11 = vector.extract_strided_slice %5 {offsets = [64, 0], sizes = [64, 128], strides = [1, 1]} : vector<128x128xf32> to vector<64x128xf32>
    %12 = arith.truncf %11 : vector<64x128xf32> to vector<64x128xbf16>
    %c0_8 = arith.constant 0 : index
    %c0_9 = arith.constant 0 : index
    %13 = vector.load %arg5[%c0_8, %c0_9] : memref<64x128xbf16, #tpu.memory_space<vmem>>, vector<64x128xbf16>
    tpu.vector_store %arg5[%c0_8, %c0_9], %12 {strides = array<i32>} : memref<64x128xbf16, #tpu.memory_space<vmem>>, vector<64x128xbf16>,
    return
  }
  func.func @transform_0(%arg0: i32) -> (i32, i32) {
    %c0_i32 = arith.constant 0 : i32
    %c0_i32_0 = arith.constant 0 : i32
    %c0_i32_1 = arith.constant 0 : i32
    return %c0_i32, %c0_i32_0 : i32, i32
  }
  func.func @transform_1(%arg0: i32) -> (i32, i32) {
    %c0_i32 = arith.constant 0 : i32
    %c0_i32_0 = arith.constant 0 : i32
    return %c0_i32, %arg0 : i32, i32
  }
  func.func @transform_2(%arg0: i32) -> (i32, i32) {
    %c0_i32 = arith.constant 0 : i32
    %c0_i32_0 = arith.constant 0 : i32
    %c0_i32_1 = arith.constant 0 : i32
    return %c0_i32, %c0_i32_0 : i32, i32
  }
  func.func @transform_3(%arg0: i32) -> (i32, i32) {
    %c0_i32 = arith.constant 0 : i32
    %c0_i32_0 = arith.constant 0 : i32
    return %c0_i32, %arg0 : i32, i32
  }
  func.func @transform_4(%arg0: i32) -> (i32, i32) {
    %c0_i32 = arith.constant 0 : i32
    %c0_i32_0 = arith.constant 0 : i32
    return %c0_i32, %arg0 : i32, i32
  }
}

module attributes {stable_mosaic.version = 11 : i64} {
  func.func @_gemm_res_pool_fc_kernel(%arg0: memref<64x576xbf16, #tpu.memory_space<vmem>>, %arg1: memref<576x128xbf16, #tpu.memory_space<vmem>>, %arg2: memref<64x1xf32, #tpu.memory_space<vmem>>, %arg3: memref<64x128xbf16, #tpu.memory_space<vmem>>, %arg4: memref<128x2xf32, #tpu.memory_space<vmem>>, %arg5: memref<10x64xf32, #tpu.memory_space<vmem>>, %arg6: memref<10x1xf32, #tpu.memory_space<vmem>>, %arg7: memref<10x2xf32, #tpu.memory_space<vmem>>) attributes {dimension_semantics = [], scalar_prefetch = 0 : i64, scratch_operands = 0 : i64, tpu.core_type = #tpu.core_type<tc>} {
    %c0 = arith.constant 0 : index
    %c0_0 = arith.constant 0 : index
    %0 = vector.load %arg0[%c0, %c0_0] : memref<64x576xbf16, #tpu.memory_space<vmem>>, vector<64x576xbf16>
    %c0_1 = arith.constant 0 : index
    %c0_2 = arith.constant 0 : index
    %1 = vector.load %arg1[%c0_1, %c0_2] : memref<576x128xbf16, #tpu.memory_space<vmem>>, vector<576x128xbf16>
    %cst = arith.constant dense<0.000000e+00> : vector<64x128xf32>
    %2 = tpu.matmul %0, %1, %cst {dimension_numbers = #tpu.dot_dimension_numbers<[1], [0], [0], [1], [0, 0, 1, 1], [], []>} : vector<64x576xbf16>, vector<576x128xbf16>, vector<64x128xf32> -> vector<64x128xf32>
    %c0_3 = arith.constant 0 : index
    %c0_4 = arith.constant 0 : index
    %3 = vector.load %arg2[%c0_3, %c0_4] : memref<64x1xf32, #tpu.memory_space<vmem>>, vector<64x1xf32>
    %4 = vector.broadcast %3 : vector<64x1xf32> to vector<64x128xf32>
    %5 = arith.addf %2, %4 : vector<64x128xf32>
    %c0_5 = arith.constant 0 : index
    %c0_6 = arith.constant 0 : index
    %6 = vector.load %arg3[%c0_5, %c0_6] : memref<64x128xbf16, #tpu.memory_space<vmem>>, vector<64x128xbf16>
    %7 = arith.extf %6 : vector<64x128xbf16> to vector<64x128xf32>
    %8 = arith.addf %5, %7 : vector<64x128xf32>
    %cst_7 = arith.constant 0.000000e+00 : f32
    %9 = vector.broadcast %cst_7 : f32 to vector<64x128xf32>
    %10 = arith.maximumf %8, %9 : vector<64x128xf32>
    %c0_8 = arith.constant 0 : index
    %c0_9 = arith.constant 0 : index
    %11 = vector.load %arg4[%c0_8, %c0_9] : memref<128x2xf32, #tpu.memory_space<vmem>>, vector<128x2xf32>
    %cst_10 = arith.constant dense<0.000000e+00> : vector<64x2xf32>
    %12 = tpu.matmul %10, %11, %cst_10 {dimension_numbers = #tpu.dot_dimension_numbers<[1], [0], [0], [1], [0, 0, 1, 1], [], []>} : vector<64x128xf32>, vector<128x2xf32>, vector<64x2xf32> -> vector<64x2xf32>
    %c0_11 = arith.constant 0 : index
    %c0_12 = arith.constant 0 : index
    %13 = vector.load %arg5[%c0_11, %c0_12] : memref<10x64xf32, #tpu.memory_space<vmem>>, vector<10x64xf32>
    %cst_13 = arith.constant dense<0.000000e+00> : vector<10x2xf32>
    %14 = tpu.matmul %13, %12, %cst_13 {dimension_numbers = #tpu.dot_dimension_numbers<[1], [0], [0], [1], [0, 0, 1, 1], [], []>} : vector<10x64xf32>, vector<64x2xf32>, vector<10x2xf32> -> vector<10x2xf32>
    %c0_14 = arith.constant 0 : index
    %c0_15 = arith.constant 0 : index
    %15 = vector.load %arg6[%c0_14, %c0_15] : memref<10x1xf32, #tpu.memory_space<vmem>>, vector<10x1xf32>
    %16 = vector.broadcast %15 : vector<10x1xf32> to vector<10x2xf32>
    %17 = arith.addf %14, %16 : vector<10x2xf32>
    %c0_16 = arith.constant 0 : index
    %c0_17 = arith.constant 0 : index
    %18 = vector.load %arg7[%c0_16, %c0_17] : memref<10x2xf32, #tpu.memory_space<vmem>>, vector<10x2xf32>
    tpu.vector_store %arg7[%c0_16, %c0_17], %17 {strides = array<i32>} : memref<10x2xf32, #tpu.memory_space<vmem>>, vector<10x2xf32>,
    return
  }
}

</mosaic_0001>

<bundles_post_ra>
// kernel: cifar_resnet_forward.7
= control target key start
LH: loop header
LB: loop body
LE: loop exit
PB: predicated region body
PF: predicated region fallthrough
CT: control target
= control target key end

     0   :  { %s759_s12 = smov 0   ;;  %s761_s13 = smov 0   ;;  %s910_s0 = inlined_call_operand.vmem [shape: bf16[16,32], index: 0, kind: input, shape index: {}]   ;;  %s911_s1 = inlined_call_operand.vmem [shape: bf16[32,2048], index: 1, kind: input, shape index: {}]   ;;  %s912_s2 = inlined_call_operand.vmem [shape: f32[16,1], index: 2, kind: input, shape index: {}]   ;;  %s913_s3 = inlined_call_operand.vmem [shape: bf16[16,2048], index: 3, kind: output, shape index: {}]  }
   0x1   :  { %s763_s14 = smov 0  }
   0x2 LB: > { %s578_s15 = sadd.s32 4294967295, %s736_s14   ;;  %s776_s16 = sadd.s32 1, %s736_s14   ;;  %s736_s14 = sphi %s763_s14, %s917_s14   ;;  %s732_s13 = sphi %s761_s13, %s916_s13   ;;  %s728_s12 = sphi %s759_s12, %s915_s12  }
   0x3   : > { %s38_s17 = ssub.s32 %s736_s14, %s776_s16  ;;  %s41_s18 = sadd.s32 1, %s732_s13 }
   0x4   : > { %p39_p0 = scmp.eq.s32.totalorder %s38_s17, 0  ;;  %p48_p1 = scmp.ne.s32.totalorder %s732_s13, %s728_s12 }
   0x5   : > { %p49_p2 = scmp.eq.s32.totalorder %s736_s14, 0  ;;  %p99_p3 = scmp.eq.s32.totalorder %s578_s15, 1 }
   0x6   : > { %s787_s19 = scalar_select %p39_p0, %s732_s13, %s41_s18  }
   0x7   : > { %p50_p4 = por %p49_p2, %p48_p1  ;;  %p789_p5 = por %p99_p3, %p48_p1 }
   0x8   : > { %p581_p6 = scmp.ge.s32.totalorder %s736_s14, 2 }
   0xa   : > { %127 = sbr.rel (%p581_p6) target bundleno = 35 (0x23), region = 24 }
   0xf   : > { %130 = sbr.rel (!%p50_p4) target bundleno = 35 (0x23), region = 28  ;;  %s132_s21 = sand.u32 (%p50_p4), 1, %s732_s13  }
  0x10   : > { %s669_s22 = sshll.u32 (%p50_p4), %s736_s14, 5  ;;  %s582_s23 = sshll.u32 (%p50_p4), %s132_s21, 7 }
  0x11   : > { %s799_s26 = scalar_lea.vmem (%p50_p4), %s911_s1, %s669_s22  ;;  %s134_s27 = scalar_lea.vmem (%p50_p4), [#allocation2], %s582_s23 }
  0x12   : > { %v150_v0 = vld [vmem:[%s799_s26] sm:$0xff] (%p50_p4)  ;;  %v152_v1 = vld [vmem:[%s799_s26 + $0x8] sm:$0xff] (%p50_p4)  ;;  %v154_v2 = vld [vmem:[%s799_s26 + $0x10] sm:$0xff] (%p50_p4) }
  0x13   : > { %151 = vst [vmem:[%s134_s27] sm:$0xff] (%p50_p4), %v150_v0  ;;  %v156_v3 = vld [vmem:[%s799_s26 + $0x18] sm:$0xff] (%p50_p4)  ;;  %v158_v4 = vld [vmem:[%s799_s26 + $0x40] sm:$0xff] (%p50_p4)  ;;  %v160_v5 = vld [vmem:[%s799_s26 + $0x48] sm:$0xff] (%p50_p4) }
  0x14   : > { %153 = vst [vmem:[%s134_s27 + $0x8] sm:$0xff] %v152_v1  ;;  %v162_v6 = vld [vmem:[%s799_s26 + $0x50] sm:$0xff]  ;;  %v164_v7 = vld [vmem:[%s799_s26 + $0x58] sm:$0xff]  ;;  %v166_v8 = vld [vmem:[%s799_s26 + $0x80] sm:$0xff] }
  0x15   : > { %155 = vst [vmem:[%s134_s27 + $0x10] sm:$0xff] %v154_v2  ;;  %v168_v9 = vld [vmem:[%s799_s26 + $0x88] sm:$0xff]  ;;  %v170_v10 = vld [vmem:[%s799_s26 + $0x90] sm:$0xff]  ;;  %v172_v11 = vld [vmem:[%s799_s26 + $0x98] sm:$0xff] }
  0x16   : > { %157 = vst [vmem:[%s134_s27 + $0x18] sm:$0xff] %v156_v3  ;;  %v174_v12 = vld [vmem:[%s799_s26 + $0xc0] sm:$0xff]  ;;  %v176_v13 = vld [vmem:[%s799_s26 + $0xc8] sm:$0xff]  ;;  %v178_v14 = vld [vmem:[%s799_s26 + $0xd0] sm:$0xff] }
  0x17   : > { %159 = vst [vmem:[%s134_s27 + $0x20] sm:$0xff] %v158_v4  ;;  %v180_v15 = vld [vmem:[%s799_s26 + $0xd8] sm:$0xff] }
  0x18   : > { %161 = vst [vmem:[%s134_s27 + $0x28] sm:$0xff] %v160_v5 }
  0x19   : > { %163 = vst [vmem:[%s134_s27 + $0x30] sm:$0xff] %v162_v6 }
  0x1a   : > { %165 = vst [vmem:[%s134_s27 + $0x38] sm:$0xff] %v164_v7 }
  0x1b   : > { %167 = vst [vmem:[%s134_s27 + $0x40] sm:$0xff] %v166_v8 }
  0x1c   : > { %169 = vst [vmem:[%s134_s27 + $0x48] sm:$0xff] %v168_v9 }
  0x1d   : > { %171 = vst [vmem:[%s134_s27 + $0x50] sm:$0xff] %v170_v10 }
  0x1e   : > { %173 = vst [vmem:[%s134_s27 + $0x58] sm:$0xff] %v172_v11 }
  0x1f   : > { %175 = vst [vmem:[%s134_s27 + $0x60] sm:$0xff] %v174_v12 }
  0x20   : > { %177 = vst [vmem:[%s134_s27 + $0x68] sm:$0xff] %v176_v13 }
  0x21   : > { %179 = vst [vmem:[%s134_s27 + $0x70] sm:$0xff] %v178_v14 }
  0x22   : > { %181 = vst [vmem:[%s134_s27 + $0x78] sm:$0xff] %v180_v15 }
  0x23 PF: > { %p585_p7 = scmp.ge.s32.totalorder %s736_s14, 1  ;;  %p186_p8 = scmp.lt.s32.totalorder %s736_s14, 3 }
  0x25   : > { %p187_p9 = pnand %p585_p7, %p186_p8 }
  0x26   : > { %s193_s28 = sand.u32 (!%p187_p9), 1, %s728_s12  }
  0x27   : > { %190 = sbr.rel (%p187_p9) target bundleno = 229 (0xe5), region = 51  ;;  %s586_s4 = sshll.u32 (!%p187_p9), %s193_s28, 7 }
  0x28   : > { %s825_s5 = scalar_lea.vmem (!%p187_p9), [#allocation2], %s586_s4  ;;  %s587_s10 = sshll.u32 (!%p187_p9), %s193_s28, 6 }
  0x29   : > { %s875_s11 = scalar_lea.vmem (!%p187_p9), [#allocation3], %s587_s10 }
  0x2c   : > { %v236_v16 = vld [vmem:[%s912_s2] sm:$0xff]  ;;  %v738_v17 = vmov 0   ;;  %vm333_vm0 = vcmask 261120   ;;  %v634_v23 = vld [vmem:[%s825_s5 + $0x48] sm:$0xf]  ;;  %s687_s12 = sshll.u32 (%p789_p5), %s578_s15, 5 }
  0x2d   : > { %713 = vset.pattern.permute.xlu0 %v738_v17  ;;  %v626_v18 = vld [vmem:[%s825_s5 + $0x40] sm:$0xf]  ;;  %v679_v20 = vld [vmem:[%s825_s5 + $0x44] sm:$0xf]  ;;  %v684_v24 = vld [vmem:[%s825_s5 + $0x64] sm:$0xf0]  ;;  %s490_s21 = scalar_lea.vmem (%p789_p5), %s913_s3, %s687_s12 }
  0x2e   : > { %240 = vperm.xlu0 %713, %v236_v16   ;;  %v683_v19 = vld [vmem:[%s825_s5 + $0x5c] sm:$0xf0]  ;;  %v628_v22 = vld [vmem:[%s825_s5 + $0x60] sm:$0xf0]  ;;  %v635_v26 = vor.u32 %v684_v24, %v634_v23  ;;  %v680_v27 = vld [vmem:[%s825_s5 + $0x4c] sm:$0xf] }
  0x2f   : > { %v627_v21 = vor.u32 %v683_v19, %v626_v18  ;;  %v631_v25 = vor.u32 %v679_v20, %v628_v22  ;;  %v636_v28 = vld [vmem:[%s825_s5 + $0x68] sm:$0xf0]  ;;  %v594_v29 = vld [vmem:[%s825_s5] sm:$0xf]  ;;  %v671_v33 = vld [vmem:[%s825_s5 + $0x4] sm:$0xf] }
  0x30   : > { %v237_v30 = vld [vmem:[%s912_s2 + $0x8] sm:$0xff]  ;;  %v639_v31 = vor.u32 %v680_v27, %v636_v28  ;;  %v675_v32 = vld [vmem:[%s825_s5 + $0x1c] sm:$0xf0]  ;;  %v596_v34 = vld [vmem:[%s825_s5 + $0x20] sm:$0xf0]  ;;  %371 = vmatpush.bf16.msra.mxu2 %v635_v26 }
  0x31   : > { %343 = vmatpush.bf16.msra.mxu0 %v627_v21  ;;  %357 = vmatpush.bf16.msra.mxu1 %v631_v25  ;;  %v595_v35 = vor.u32 %v675_v32, %v594_v29  ;;  %v599_v36 = vor.u32 %v671_v33, %v596_v34  ;;  %v602_v37 = vld [vmem:[%s825_s5 + $0x8] sm:$0xf]  ;;  %v672_v39 = vld [vmem:[%s825_s5 + $0xc] sm:$0xf]  ;;  %v670_v40 = vld [vmem:[%s910_s0] sm:$0xff] }
  0x32   : > { %v676_v38 = vld [vmem:[%s825_s5 + $0x24] sm:$0xf0]  ;;  %385 = vmatpush.bf16.msra.mxu3 %v639_v31  ;;  %v604_v42 = vld [vmem:[%s825_s5 + $0x28] sm:$0xf0]  ;;  %v650_v43 = vld [vmem:[%s825_s5 + $0x58] sm:$0xf] }
  0x33   : > { %v603_v41 = vor.u32 %v676_v38, %v602_v37  ;;  %v686_v44 = vld [vmem:[%s825_s5 + $0x74] sm:$0xf0]  ;;  %v607_v45 = vor.u32 %v672_v39, %v604_v42  ;;  %v682_v47 = vld [vmem:[%s825_s5 + $0x5c] sm:$0xf]  ;;  %v642_v49 = vld [vmem:[%s825_s5 + $0x50] sm:$0xf] }
  0x34   : > { %v651_v46 = vor.u32 %v686_v44, %v650_v43  ;;  %v652_v48 = vld [vmem:[%s825_s5 + $0x78] sm:$0xf0]  ;;  %v685_v51 = vld [vmem:[%s825_s5 + $0x6c] sm:$0xf0]  ;;  %v681_v52 = vld [vmem:[%s825_s5 + $0x54] sm:$0xf] }
  0x35   : > { %344 = vmatpush.bf16.msra.mxu0 %v595_v35  ;;  %v655_v50 = vor.u32 %v682_v47, %v652_v48  ;;  %v644_v53 = vld [vmem:[%s825_s5 + $0x70] sm:$0xf0]  ;;  %358 = vmatpush.bf16.msra.mxu1 %v599_v36  ;;  %v643_v54 = vor.u32 %v685_v51, %v642_v49  ;;  %v618_v55 = vld [vmem:[%s825_s5 + $0x18] sm:$0xf]  ;;  %v674_v57 = vld [vmem:[%s825_s5 + $0x1c] sm:$0xf] }
  0x36   : > { %245 = vperm.xlu0 %713, %v237_v30   ;;  %372 = vmatpush.bf16.msra.mxu2 %v603_v41  ;;  %v678_v56 = vld [vmem:[%s825_s5 + $0x34] sm:$0xf0]  ;;  %v647_v58 = vor.u32 %v681_v52, %v644_v53  ;;  %v620_v60 = vld [vmem:[%s825_s5 + $0x38] sm:$0xf0]  ;;  %v610_v61 = vld [vmem:[%s825_s5 + $0x10] sm:$0xf] }
  0x37   : > { %386 = vmatpush.bf16.msra.mxu3 %v607_v45  ;;  %v619_v59 = vor.u32 %v678_v56, %v618_v55  ;;  %v677_v62 = vld [vmem:[%s825_s5 + $0x2c] sm:$0xf0]  ;;  %v623_v63 = vor.u32 %v674_v57, %v620_v60  ;;  %v673_v0 = vld [vmem:[%s825_s5 + $0x14] sm:$0xf] }
  0x38   : > { %656 = vmatmul.msk.bf16.vlgmr.msra.gmra.mxu0 %vm333_vm0, %v670_v40  ;;  %v612_v1 = vld [vmem:[%s825_s5 + $0x30] sm:$0xf0]  ;;  %657 = vmatmul.msk.bf16.vlgmr.msra.gmra.mxu1 %vm333_vm0, %v670_v40  ;;  %v611_v2 = vor.u32 %v677_v62, %v610_v61 }
  0x39   : > { %658 = vmatmul.msk.bf16.vlgmr.msra.gmra.mxu2 %vm333_vm0, %v670_v40  ;;  %399 = vmatpush.bf16.msrb.mxu0 %v643_v54  ;;  %v615_v3 = vor.u32 %v673_v0, %v612_v1 }
  0x3a   : > { %427 = vmatpush.bf16.msrb.mxu2 %v651_v46  ;;  %659 = vmatmul.msk.bf16.vlgmr.msra.gmra.mxu3 %vm333_vm0, %v670_v40 }
  0x3b   : > { %441 = vmatpush.bf16.msrb.mxu3 %v655_v50  ;;  %413 = vmatpush.bf16.msrb.mxu1 %v647_v58 }
  0x3d   : > { %400 = vmatpush.bf16.msrb.mxu0 %v611_v2 }
  0x3e   : > { %428 = vmatpush.bf16.msrb.mxu2 %v619_v59 }
  0x3f   : > { %442 = vmatpush.bf16.msrb.mxu3 %v623_v63  ;;  %414 = vmatpush.bf16.msrb.mxu1 %v615_v3 }
  0x48   : > { %660 = vmatmul.msk.bf16.vlgmr.msrb.gmra.mxu0 %vm333_vm0, %v670_v40  ;;  %661 = vmatmul.msk.bf16.vlgmr.msrb.gmra.mxu1 %vm333_vm0, %v670_v40 }
  0x49   : > { %662 = vmatmul.msk.bf16.vlgmr.msrb.gmra.mxu2 %vm333_vm0, %v670_v40 }
  0x4a   : > { %663 = vmatmul.msk.bf16.vlgmr.msrb.gmra.mxu3 %vm333_vm0, %v670_v40 }
  0xa0   : > { %v241_v4 = vpop.permute.xlu0 %240 }
  0xa8   : > { %v246_v12 = vpop.permute.xlu0 %245 }
  0xb5   : > { %v346_v5 = vpop.f32.mrf.mxu0  ;;  %v360_v7 = vpop.f32.mrf.mxu1 }
  0xb6   : > { %v347_v6 = vadd.f32 %v346_v5, %v241_v4  ;;  %v361_v8 = vadd.f32 %v360_v7, %v241_v4 }
  0xb8   : > { %v449_v9 = vmax.f32 %v347_v6, 0.0  ;;  %v450_v10 = vmax.f32 %v361_v8, 0.0 }
  0xba   : > { %v465_v11 = vpack.c.bf16 %v450_v10, %v449_v9 }
  0xbc   : > { %v374_v13 = vpop.f32.mrf.mxu2  ;;  %473 = vst [vmem:[%s875_s11] sm:$0xff] %v465_v11 }
  0xbd   : > { %v375_v14 = vadd.f32 %v374_v13, %v241_v4  ;;  %v388_v15 = vpop.f32.mrf.mxu3  ;;  %v348_v16 = vpop.f32.mrf.mxu0 }
  0xbe   : > { %v389_v17 = vadd.f32 %v388_v15, %v241_v4  ;;  %v349_v18 = vadd.f32 %v348_v16, %v246_v12  ;;  %v362_v19 = vpop.f32.mrf.mxu1 }
  0xbf   : > { %v451_v20 = vmax.f32 %v375_v14, 0.0  ;;  %v363_v21 = vadd.f32 %v362_v19, %v246_v12 }
  0xc0   : > { %v452_v22 = vmax.f32 %v389_v17, 0.0  ;;  %v457_v23 = vmax.f32 %v349_v18, 0.0 }
  0xc1   : > { %v458_v24 = vmax.f32 %v363_v21, 0.0 }
  0xc2   : > { %v466_v25 = vpack.c.bf16 %v452_v22, %v451_v20 }
  0xc3   : > { %v469_v26 = vpack.c.bf16 %v458_v24, %v457_v23  ;;  %v503_v62 = vld [vmem:[%s875_s11] sm:$0xff] (%p789_p5) }
  0xc4   : > { %474 = vst [vmem:[%s875_s11 + $0x8] sm:$0xff] %v466_v25  ;;  %v376_v27 = vpop.f32.mrf.mxu2 }
  0xc5   : > { %477 = vst [vmem:[%s875_s11 + $0x20] sm:$0xff] %v469_v26  ;;  %v377_v28 = vadd.f32 %v376_v27, %v246_v12  ;;  %v390_v29 = vpop.f32.mrf.mxu3  ;;  %v402_v30 = vpop.f32.mrf.mxu0 }
  0xc6   : > { %v391_v31 = vadd.f32 %v390_v29, %v246_v12  ;;  %v403_v32 = vadd.f32 %v402_v30, %v241_v4  ;;  %v416_v33 = vpop.f32.mrf.mxu1  ;;  %504 = vst [vmem:[%s490_s21] sm:$0xff] (%p789_p5), %v503_v62 }
  0xc7   : > { %v459_v34 = vmax.f32 %v377_v28, 0.0  ;;  %v417_v35 = vadd.f32 %v416_v33, %v241_v4 }
  0xc8   : > { %v460_v36 = vmax.f32 %v391_v31, 0.0  ;;  %v453_v37 = vmax.f32 %v403_v32, 0.0 }
  0xc9   : > { %v454_v38 = vmax.f32 %v417_v35, 0.0 }
  0xca   : > { %v470_v39 = vpack.c.bf16 %v460_v36, %v459_v34 }
  0xcb   : > { %v467_v40 = vpack.c.bf16 %v454_v38, %v453_v37  ;;  %v505_v63 = vld [vmem:[%s875_s11 + $0x8] sm:$0xff] (%p789_p5) }
  0xcc   : > { %478 = vst [vmem:[%s875_s11 + $0x28] sm:$0xff] %v470_v39  ;;  %v430_v41 = vpop.f32.mrf.mxu2  ;;  %v511_v2 = vld [vmem:[%s875_s11 + $0x20] sm:$0xff] (%p789_p5) }
  0xcd   : > { %475 = vst [vmem:[%s875_s11 + $0x10] sm:$0xff] %v467_v40  ;;  %v431_v42 = vadd.f32 %v430_v41, %v241_v4  ;;  %v444_v43 = vpop.f32.mrf.mxu3  ;;  %v404_v44 = vpop.f32.mrf.mxu0 }
  0xce   : > { %v445_v45 = vadd.f32 %v444_v43, %v241_v4  ;;  %v405_v46 = vadd.f32 %v404_v44, %v246_v12  ;;  %v418_v47 = vpop.f32.mrf.mxu1  ;;  %506 = vst [vmem:[%s490_s21 + $0x8] sm:$0xff] (%p789_p5), %v505_v63 }
  0xcf   : > { %v455_v48 = vmax.f32 %v431_v42, 0.0  ;;  %v419_v49 = vadd.f32 %v418_v47, %v246_v12  ;;  %512 = vst [vmem:[%s490_s21 + $0x40] sm:$0xff] (%p789_p5), %v511_v2 }
  0xd0   : > { %v456_v50 = vmax.f32 %v445_v45, 0.0  ;;  %v461_v51 = vmax.f32 %v405_v46, 0.0 }
  0xd1   : > { %v462_v52 = vmax.f32 %v419_v49, 0.0 }
  0xd2   : > { %v468_v53 = vpack.c.bf16 %v456_v50, %v455_v48 }
  0xd3   : > { %v471_v54 = vpack.c.bf16 %v462_v52, %v461_v51  ;;  %v513_v3 = vld [vmem:[%s875_s11 + $0x28] sm:$0xff] (%p789_p5) }
  0xd4   : > { %476 = vst [vmem:[%s875_s11 + $0x18] sm:$0xff] %v468_v53  ;;  %v432_v55 = vpop.f32.mrf.mxu2  ;;  %v507_v0 = vld [vmem:[%s875_s11 + $0x10] sm:$0xff] (%p789_p5) }
  0xd5   : > { %479 = vst [vmem:[%s875_s11 + $0x30] sm:$0xff] %v471_v54  ;;  %v433_v56 = vadd.f32 %v432_v55, %v246_v12  ;;  %v446_v57 = vpop.f32.mrf.mxu3 }
  0xd6   : > { %v447_v58 = vadd.f32 %v446_v57, %v246_v12  ;;  %508 = vst [vmem:[%s490_s21 + $0x10] sm:$0xff] (%p789_p5), %v507_v0 }
  0xd7   : > { %v463_v59 = vmax.f32 %v433_v56, 0.0  ;;  %514 = vst [vmem:[%s490_s21 + $0x48] sm:$0xff] (%p789_p5), %v513_v3 }
  0xd8   : > { %v464_v60 = vmax.f32 %v447_v58, 0.0  ;;  %487 = sbr.rel (!%p789_p5) target bundleno = 229 (0xe5), region = 59 }
  0xda   : > { %v472_v61 = vpack.c.bf16 %v464_v60, %v463_v59 }
  0xdb   : > { %v509_v1 = vld [vmem:[%s875_s11 + $0x18] sm:$0xff] (%p789_p5) }
  0xdc   : > { %480 = vst [vmem:[%s875_s11 + $0x38] sm:$0xff] %v472_v61  ;;  %v515_v4 = vld [vmem:[%s875_s11 + $0x30] sm:$0xff] (%p789_p5) }
  0xdd   : > { %510 = vst [vmem:[%s490_s21 + $0x18] sm:$0xff] %v509_v1 }
  0xde   : > { %516 = vst [vmem:[%s490_s21 + $0x50] sm:$0xff] %v515_v4 }
  0xe3   : > { %v517_v5 = vld [vmem:[%s875_s11 + $0x38] sm:$0xff] }
  0xe4   : > { %518 = vst [vmem:[%s490_s21 + $0x58] sm:$0xff] %v517_v5 }
  0xe5 PF: > { %p10_p10 = scmp.ge.s32.totalorder %s776_s16, 4   ;;  %s915_s12 = smov %s732_s13 }
  0xe6   : > { %s916_s13 = smov %s787_s19  ;;  %s917_s14 = smov %s776_s16 }
  0xe7   :  { %12 = sbr.rel (!%p10_p10) target bundleno = 2 (0x2), region = 113 }

// kernel: cifar_resnet_forward.8
= control target key start
LH: loop header
LB: loop body
LE: loop exit
PB: predicated region body
PF: predicated region fallthrough
CT: control target
= control target key end

     0   :  { %s1608_s12 = smov 0   ;;  %s1610_s13 = smov 0   ;;  %s2050_s0 = inlined_call_operand.vmem [shape: bf16[16,144], index: 0, kind: input, shape index: {}]   ;;  %s2051_s1 = inlined_call_operand.vmem [shape: bf16[144,2048], index: 1, kind: input, shape index: {}]   ;;  %s2052_s2 = inlined_call_operand.vmem [shape: f32[16,1], index: 2, kind: input, shape index: {}]   ;;  %s2053_s3 = inlined_call_operand.vmem [shape: bf16[16,2048], index: 3, kind: output, shape index: {}]  }
   0x1   :  { %s1612_s14 = smov 0  }
   0x2 LB: > { %s1142_s15 = sadd.s32 4294967295, %s1585_s14   ;;  %s1625_s16 = sadd.s32 1, %s1585_s14   ;;  %s1585_s14 = sphi %s1612_s14, %s2057_s14   ;;  %s1581_s13 = sphi %s1610_s13, %s2056_s13   ;;  %s1577_s12 = sphi %s1608_s12, %s2055_s12  }
   0x3   : > { %s38_s17 = ssub.s32 %s1585_s14, %s1625_s16  ;;  %s41_s18 = sadd.s32 1, %s1581_s13 }
   0x4   : > { %p39_p0 = scmp.eq.s32.totalorder %s38_s17, 0  ;;  %p48_p1 = scmp.ne.s32.totalorder %s1581_s13, %s1577_s12 }
   0x5   : > { %p49_p2 = scmp.eq.s32.totalorder %s1585_s14, 0  ;;  %p99_p3 = scmp.eq.s32.totalorder %s1142_s15, 1 }
   0x6   : > { %s1636_s19 = scalar_select %p39_p0, %s1581_s13, %s41_s18  }
   0x7   : > { %p50_p4 = por %p49_p2, %p48_p1  ;;  %p1638_p5 = por %p99_p3, %p48_p1 }
   0x8   : > { %p1145_p6 = scmp.ge.s32.totalorder %s1585_s14, 2 }
   0xa   : > { %127 = sbr.rel (%p1145_p6) target bundleno = 91 (0x5b), region = 24 }
   0xf   : > { %130 = sbr.rel (!%p50_p4) target bundleno = 91 (0x5b), region = 28  ;;  %s132_s21 = sand.u32 (%p50_p4), 1, %s1581_s13  }
  0x10   : > { %s1459_s22 = sshll.u32 (%p50_p4), %s1585_s14, 5  ;;  %s1535_s23 = smul.u32 (%p50_p4), 576, %s132_s21 }
  0x11   : > { %s1648_s26 = scalar_lea.vmem (%p50_p4), %s2051_s1, %s1459_s22 }
  0x12   : > { %v150_v0 = vld [vmem:[%s1648_s26] sm:$0xff] (%p50_p4)  ;;  %v152_v1 = vld [vmem:[%s1648_s26 + $0x8] sm:$0xff] (%p50_p4)  ;;  %v154_v2 = vld [vmem:[%s1648_s26 + $0x10] sm:$0xff] (%p50_p4)  ;;  %s1653_s27 = scalar_lea.vmem (%p50_p4), [#allocation2], %s1535_s23 }
  0x13   : > { %151 = vst [vmem:[%s1653_s27] sm:$0xff] (%p50_p4), %v150_v0  ;;  %v156_v3 = vld [vmem:[%s1648_s26 + $0x18] sm:$0xff] (%p50_p4)  ;;  %v158_v4 = vld [vmem:[%s1648_s26 + $0x40] sm:$0xff] (%p50_p4)  ;;  %v160_v5 = vld [vmem:[%s1648_s26 + $0x48] sm:$0xff] (%p50_p4) }
  0x14   : > { %153 = vst [vmem:[%s1653_s27 + $0x8] sm:$0xff] %v152_v1  ;;  %v162_v6 = vld [vmem:[%s1648_s26 + $0x50] sm:$0xff]  ;;  %v164_v7 = vld [vmem:[%s1648_s26 + $0x58] sm:$0xff]  ;;  %v166_v8 = vld [vmem:[%s1648_s26 + $0x80] sm:$0xff] }
  0x15   : > { %155 = vst [vmem:[%s1653_s27 + $0x10] sm:$0xff] %v154_v2  ;;  %v168_v9 = vld [vmem:[%s1648_s26 + $0x88] sm:$0xff]  ;;  %v170_v10 = vld [vmem:[%s1648_s26 + $0x90] sm:$0xff]  ;;  %v172_v11 = vld [vmem:[%s1648_s26 + $0x98] sm:$0xff] }
  0x16   : > { %157 = vst [vmem:[%s1653_s27 + $0x18] sm:$0xff] %v156_v3  ;;  %v174_v12 = vld [vmem:[%s1648_s26 + $0xc0] sm:$0xff]  ;;  %v176_v13 = vld [vmem:[%s1648_s26 + $0xc8] sm:$0xff]  ;;  %v178_v14 = vld [vmem:[%s1648_s26 + $0xd0] sm:$0xff] }
  0x17   : > { %159 = vst [vmem:[%s1653_s27 + $0x20] sm:$0xff] %v158_v4  ;;  %v180_v15 = vld [vmem:[%s1648_s26 + $0xd8] sm:$0xff]  ;;  %v182_v16 = vld [vmem:[%s1648_s26 + $0x100] sm:$0xff]  ;;  %v184_v17 = vld [vmem:[%s1648_s26 + $0x108] sm:$0xff] }
  0x18   : > { %161 = vst [vmem:[%s1653_s27 + $0x28] sm:$0xff] %v160_v5  ;;  %v186_v18 = vld [vmem:[%s1648_s26 + $0x110] sm:$0xff]  ;;  %v188_v19 = vld [vmem:[%s1648_s26 + $0x118] sm:$0xff]  ;;  %v190_v20 = vld [vmem:[%s1648_s26 + $0x140] sm:$0xff] }
  0x19   : > { %163 = vst [vmem:[%s1653_s27 + $0x30] sm:$0xff] %v162_v6  ;;  %v192_v21 = vld [vmem:[%s1648_s26 + $0x148] sm:$0xff]  ;;  %v194_v22 = vld [vmem:[%s1648_s26 + $0x150] sm:$0xff]  ;;  %v196_v23 = vld [vmem:[%s1648_s26 + $0x158] sm:$0xff] }
  0x1a   : > { %165 = vst [vmem:[%s1653_s27 + $0x38] sm:$0xff] %v164_v7  ;;  %v198_v24 = vld [vmem:[%s1648_s26 + $0x180] sm:$0xff]  ;;  %v200_v25 = vld [vmem:[%s1648_s26 + $0x188] sm:$0xff]  ;;  %v202_v26 = vld [vmem:[%s1648_s26 + $0x190] sm:$0xff] }
  0x1b   : > { %167 = vst [vmem:[%s1653_s27 + $0x40] sm:$0xff] %v166_v8  ;;  %v204_v27 = vld [vmem:[%s1648_s26 + $0x198] sm:$0xff]  ;;  %v206_v28 = vld [vmem:[%s1648_s26 + $0x1c0] sm:$0xff]  ;;  %v208_v29 = vld [vmem:[%s1648_s26 + $0x1c8] sm:$0xff] }
  0x1c   : > { %169 = vst [vmem:[%s1653_s27 + $0x48] sm:$0xff] %v168_v9  ;;  %v210_v30 = vld [vmem:[%s1648_s26 + $0x1d0] sm:$0xff]  ;;  %v212_v31 = vld [vmem:[%s1648_s26 + $0x1d8] sm:$0xff]  ;;  %v214_v32 = vld [vmem:[%s1648_s26 + $0x200] sm:$0xff] }
  0x1d   : > { %171 = vst [vmem:[%s1653_s27 + $0x50] sm:$0xff] %v170_v10  ;;  %v216_v33 = vld [vmem:[%s1648_s26 + $0x208] sm:$0xff]  ;;  %v218_v34 = vld [vmem:[%s1648_s26 + $0x210] sm:$0xff]  ;;  %v220_v35 = vld [vmem:[%s1648_s26 + $0x218] sm:$0xff] }
  0x1e   : > { %173 = vst [vmem:[%s1653_s27 + $0x58] sm:$0xff] %v172_v11  ;;  %v222_v36 = vld [vmem:[%s1648_s26 + $0x240] sm:$0xff]  ;;  %v224_v37 = vld [vmem:[%s1648_s26 + $0x248] sm:$0xff]  ;;  %v226_v38 = vld [vmem:[%s1648_s26 + $0x250] sm:$0xff] }
  0x1f   : > { %175 = vst [vmem:[%s1653_s27 + $0x60] sm:$0xff] %v174_v12  ;;  %v228_v39 = vld [vmem:[%s1648_s26 + $0x258] sm:$0xff]  ;;  %v230_v40 = vld [vmem:[%s1648_s26 + $0x280] sm:$0xff]  ;;  %v232_v41 = vld [vmem:[%s1648_s26 + $0x288] sm:$0xff] }
  0x20   : > { %177 = vst [vmem:[%s1653_s27 + $0x68] sm:$0xff] %v176_v13  ;;  %v234_v42 = vld [vmem:[%s1648_s26 + $0x290] sm:$0xff]  ;;  %v236_v43 = vld [vmem:[%s1648_s26 + $0x298] sm:$0xff]  ;;  %v238_v44 = vld [vmem:[%s1648_s26 + $0x2c0] sm:$0xff] }
  0x21   : > { %179 = vst [vmem:[%s1653_s27 + $0x70] sm:$0xff] %v178_v14  ;;  %v240_v45 = vld [vmem:[%s1648_s26 + $0x2c8] sm:$0xff]  ;;  %v242_v46 = vld [vmem:[%s1648_s26 + $0x2d0] sm:$0xff]  ;;  %v244_v47 = vld [vmem:[%s1648_s26 + $0x2d8] sm:$0xff] }
  0x22   : > { %181 = vst [vmem:[%s1653_s27 + $0x78] sm:$0xff] %v180_v15  ;;  %v246_v48 = vld [vmem:[%s1648_s26 + $0x300] sm:$0xff]  ;;  %v248_v49 = vld [vmem:[%s1648_s26 + $0x308] sm:$0xff]  ;;  %v250_v50 = vld [vmem:[%s1648_s26 + $0x310] sm:$0xff] }
  0x23   : > { %183 = vst [vmem:[%s1653_s27 + $0x80] sm:$0xff] %v182_v16  ;;  %v252_v51 = vld [vmem:[%s1648_s26 + $0x318] sm:$0xff]  ;;  %v254_v52 = vld [vmem:[%s1648_s26 + $0x340] sm:$0xff]  ;;  %v256_v53 = vld [vmem:[%s1648_s26 + $0x348] sm:$0xff] }
  0x24   : > { %185 = vst [vmem:[%s1653_s27 + $0x88] sm:$0xff] %v184_v17  ;;  %v258_v54 = vld [vmem:[%s1648_s26 + $0x350] sm:$0xff]  ;;  %v260_v55 = vld [vmem:[%s1648_s26 + $0x358] sm:$0xff]  ;;  %v262_v56 = vld [vmem:[%s1648_s26 + $0x380] sm:$0xff] }
  0x25   : > { %187 = vst [vmem:[%s1653_s27 + $0x90] sm:$0xff] %v186_v18  ;;  %v264_v57 = vld [vmem:[%s1648_s26 + $0x388] sm:$0xff]  ;;  %v266_v58 = vld [vmem:[%s1648_s26 + $0x390] sm:$0xff]  ;;  %v268_v59 = vld [vmem:[%s1648_s26 + $0x398] sm:$0xff] }
  0x26   : > { %189 = vst [vmem:[%s1653_s27 + $0x98] sm:$0xff] %v188_v19  ;;  %v270_v60 = vld [vmem:[%s1648_s26 + $0x3c0] sm:$0xff]  ;;  %v272_v61 = vld [vmem:[%s1648_s26 + $0x3c8] sm:$0xff]  ;;  %v274_v62 = vld [vmem:[%s1648_s26 + $0x3d0] sm:$0xff] }
  0x27   : > { %191 = vst [vmem:[%s1653_s27 + $0xa0] sm:$0xff] %v190_v20  ;;  %v276_v63 = vld [vmem:[%s1648_s26 + $0x3d8] sm:$0xff]  ;;  %v278_v0 = vld [vmem:[%s1648_s26 + $0x400] sm:$0xff]  ;;  %v280_v1 = vld [vmem:[%s1648_s26 + $0x408] sm:$0xff] }
  0x28   : > { %193 = vst [vmem:[%s1653_s27 + $0xa8] sm:$0xff] %v192_v21  ;;  %v282_v2 = vld [vmem:[%s1648_s26 + $0x410] sm:$0xff]  ;;  %v284_v3 = vld [vmem:[%s1648_s26 + $0x418] sm:$0xff]  ;;  %v286_v4 = vld [vmem:[%s1648_s26 + $0x440] sm:$0xff] }
  0x29   : > { %195 = vst [vmem:[%s1653_s27 + $0xb0] sm:$0xff] %v194_v22  ;;  %v288_v5 = vld [vmem:[%s1648_s26 + $0x448] sm:$0xff]  ;;  %v290_v6 = vld [vmem:[%s1648_s26 + $0x450] sm:$0xff]  ;;  %v292_v7 = vld [vmem:[%s1648_s26 + $0x458] sm:$0xff] }
  0x2a   : > { %197 = vst [vmem:[%s1653_s27 + $0xb8] sm:$0xff] %v196_v23 }
  0x2b   : > { %199 = vst [vmem:[%s1653_s27 + $0xc0] sm:$0xff] %v198_v24 }
  0x2c   : > { %201 = vst [vmem:[%s1653_s27 + $0xc8] sm:$0xff] %v200_v25 }
  0x2d   : > { %203 = vst [vmem:[%s1653_s27 + $0xd0] sm:$0xff] %v202_v26 }
  0x2e   : > { %205 = vst [vmem:[%s1653_s27 + $0xd8] sm:$0xff] %v204_v27 }
  0x2f   : > { %207 = vst [vmem:[%s1653_s27 + $0xe0] sm:$0xff] %v206_v28 }
  0x30   : > { %209 = vst [vmem:[%s1653_s27 + $0xe8] sm:$0xff] %v208_v29 }
  0x31   : > { %211 = vst [vmem:[%s1653_s27 + $0xf0] sm:$0xff] %v210_v30 }
  0x32   : > { %213 = vst [vmem:[%s1653_s27 + $0xf8] sm:$0xff] %v212_v31 }
  0x33   : > { %215 = vst [vmem:[%s1653_s27 + $0x100] sm:$0xff] %v214_v32 }
  0x34   : > { %217 = vst [vmem:[%s1653_s27 + $0x108] sm:$0xff] %v216_v33 }
  0x35   : > { %219 = vst [vmem:[%s1653_s27 + $0x110] sm:$0xff] %v218_v34 }
  0x36   : > { %221 = vst [vmem:[%s1653_s27 + $0x118] sm:$0xff] %v220_v35 }
  0x37   : > { %223 = vst [vmem:[%s1653_s27 + $0x120] sm:$0xff] %v222_v36 }
  0x38   : > { %225 = vst [vmem:[%s1653_s27 + $0x128] sm:$0xff] %v224_v37 }
  0x39   : > { %227 = vst [vmem:[%s1653_s27 + $0x130] sm:$0xff] %v226_v38 }
  0x3a   : > { %229 = vst [vmem:[%s1653_s27 + $0x138] sm:$0xff] %v228_v39 }
  0x3b   : > { %231 = vst [vmem:[%s1653_s27 + $0x140] sm:$0xff] %v230_v40 }
  0x3c   : > { %233 = vst [vmem:[%s1653_s27 + $0x148] sm:$0xff] %v232_v41 }
  0x3d   : > { %235 = vst [vmem:[%s1653_s27 + $0x150] sm:$0xff] %v234_v42 }
  0x3e   : > { %237 = vst [vmem:[%s1653_s27 + $0x158] sm:$0xff] %v236_v43 }
  0x3f   : > { %239 = vst [vmem:[%s1653_s27 + $0x160] sm:$0xff] %v238_v44 }
  0x40   : > { %241 = vst [vmem:[%s1653_s27 + $0x168] sm:$0xff] %v240_v45 }
  0x41   : > { %243 = vst [vmem:[%s1653_s27 + $0x170] sm:$0xff] %v242_v46 }
  0x42   : > { %245 = vst [vmem:[%s1653_s27 + $0x178] sm:$0xff] %v244_v47 }
  0x43   : > { %247 = vst [vmem:[%s1653_s27 + $0x180] sm:$0xff] %v246_v48 }
  0x44   : > { %249 = vst [vmem:[%s1653_s27 + $0x188] sm:$0xff] %v248_v49 }
  0x45   : > { %251 = vst [vmem:[%s1653_s27 + $0x190] sm:$0xff] %v250_v50 }
  0x46   : > { %253 = vst [vmem:[%s1653_s27 + $0x198] sm:$0xff] %v252_v51 }
  0x47   : > { %255 = vst [vmem:[%s1653_s27 + $0x1a0] sm:$0xff] %v254_v52 }
  0x48   : > { %257 = vst [vmem:[%s1653_s27 + $0x1a8] sm:$0xff] %v256_v53 }
  0x49   : > { %259 = vst [vmem:[%s1653_s27 + $0x1b0] sm:$0xff] %v258_v54 }
  0x4a   : > { %261 = vst [vmem:[%s1653_s27 + $0x1b8] sm:$0xff] %v260_v55 }
  0x4b   : > { %263 = vst [vmem:[%s1653_s27 + $0x1c0] sm:$0xff] %v262_v56 }
  0x4c   : > { %265 = vst [vmem:[%s1653_s27 + $0x1c8] sm:$0xff] %v264_v57 }
  0x4d   : > { %267 = vst [vmem:[%s1653_s27 + $0x1d0] sm:$0xff] %v266_v58 }
  0x4e   : > { %269 = vst [vmem:[%s1653_s27 + $0x1d8] sm:$0xff] %v268_v59 }
  0x4f   : > { %271 = vst [vmem:[%s1653_s27 + $0x1e0] sm:$0xff] %v270_v60 }
  0x50   : > { %273 = vst [vmem:[%s1653_s27 + $0x1e8] sm:$0xff] %v272_v61 }
  0x51   : > { %275 = vst [vmem:[%s1653_s27 + $0x1f0] sm:$0xff] %v274_v62 }
  0x52   : > { %277 = vst [vmem:[%s1653_s27 + $0x1f8] sm:$0xff] %v276_v63 }
  0x53   : > { %279 = vst [vmem:[%s1653_s27 + $0x200] sm:$0xff] %v278_v0 }
  0x54   : > { %281 = vst [vmem:[%s1653_s27 + $0x208] sm:$0xff] %v280_v1 }
  0x55   : > { %283 = vst [vmem:[%s1653_s27 + $0x210] sm:$0xff] %v282_v2 }
  0x56   : > { %285 = vst [vmem:[%s1653_s27 + $0x218] sm:$0xff] %v284_v3 }
  0x57   : > { %287 = vst [vmem:[%s1653_s27 + $0x220] sm:$0xff] %v286_v4 }
  0x58   : > { %289 = vst [vmem:[%s1653_s27 + $0x228] sm:$0xff] %v288_v5 }
  0x59   : > { %291 = vst [vmem:[%s1653_s27 + $0x230] sm:$0xff] %v290_v6 }
  0x5a   : > { %293 = vst [vmem:[%s1653_s27 + $0x238] sm:$0xff] %v292_v7 }
  0x5b PF: > { %p1148_p7 = scmp.ge.s32.totalorder %s1585_s14, 1  ;;  %p298_p8 = scmp.lt.s32.totalorder %s1585_s14, 3 }
  0x5d   : > { %p299_p9 = pnand %p1148_p7, %p298_p8 }
  0x5e   : > { %s305_s28 = sand.u32 (!%p299_p9), 1, %s1577_s12  }
  0x5f   : > { %302 = sbr.rel (%p299_p9) target bundleno = 344 (0x158), region = 51  ;;  %s1149_s23 = sshll.u32 (!%p299_p9), %s305_s28, 6 }
  0x60   : > { %s1536_s29 = smul.u32 (!%p299_p9), 576, %s305_s28  ;;  %s2004_s24 = scalar_lea.vmem (!%p299_p9), [#allocation3], %s1149_s23 }
  0x62   : > { %s1801_s30 = scalar_lea.vmem (!%p299_p9), [#allocation2], %s1536_s29 }
  0x64   : > { %vm785_vm0 = vcmask 130048   ;;  %v1384_v8 = vld [vmem:[%s1801_s30 + $0x1c0] sm:$0xf]  ;;  %v1460_v11 = vld [vmem:[%s2050_s0 + $0x4] sm:$0xf]  ;;  %s1534_s12 = sshll.u32 (%p1638_p5), %s1142_s15, 5 }
  0x65   : > { %v1522_v9 = vld [vmem:[%s1801_s30 + $0x1dc] sm:$0xf0]  ;;  %v1154_v12 = vld [vmem:[%s2050_s0 + $0x8] sm:$0xf0]  ;;  %v1392_v15 = vld [vmem:[%s1801_s30 + $0x1c8] sm:$0xf]  ;;  %s1054_s27 = scalar_lea.vmem (%p1638_p5), %s2053_s3, %s1534_s12 }
  0x66   : > { %v1416_v10 = vld [vmem:[%s1801_s30 + $0x200] sm:$0xf]  ;;  %v1385_v13 = vor.u32 %v1522_v9, %v1384_v8  ;;  %v1523_v16 = vld [vmem:[%s1801_s30 + $0x1e4] sm:$0xf0]  ;;  %v1518_v19 = vld [vmem:[%s1801_s30 + $0x1c4] sm:$0xf]  ;;  %v1827_v35 = vor.u32 %v1460_v11, %v1154_v12 }
  0x67   : > { %v1530_v14 = vld [vmem:[%s1801_s30 + $0x21c] sm:$0xf0]  ;;  %v1393_v18 = vor.u32 %v1523_v16, %v1392_v15  ;;  %v1386_v20 = vld [vmem:[%s1801_s30 + $0x1e0] sm:$0xf0]  ;;  %v1360_v28 = vld [vmem:[%s1801_s30 + $0x188] sm:$0xf] }
  0x68   : > { %v1417_v17 = vor.u32 %v1530_v14, %v1416_v10  ;;  %v1526_v21 = vld [vmem:[%s1801_s30 + $0x204] sm:$0xf]  ;;  %789 = vmatpush.bf16.msra.mxu0 %v1385_v13  ;;  %v1389_v22 = vor.u32 %v1518_v19, %v1386_v20  ;;  %v1352_v24 = vld [vmem:[%s1801_s30 + $0x180] sm:$0xf]  ;;  %v1515_v29 = vld [vmem:[%s1801_s30 + $0x1a4] sm:$0xf0] }
  0x69   : > { %v1418_v23 = vld [vmem:[%s1801_s30 + $0x220] sm:$0xf0]  ;;  %v1514_v25 = vld [vmem:[%s1801_s30 + $0x19c] sm:$0xf0]  ;;  %845 = vmatpush.bf16.msra.mxu1 %v1393_v18  ;;  %v1361_v31 = vor.u32 %v1515_v29, %v1360_v28  ;;  %v1424_v33 = vld [vmem:[%s1801_s30 + $0x208] sm:$0xf] }
  0x6a   : > { %810 = vmatpush.bf16.msra.mxu2 %v1417_v17  ;;  %v1421_v26 = vor.u32 %v1526_v21, %v1418_v23  ;;  %v1353_v27 = vor.u32 %v1514_v25, %v1352_v24  ;;  %v1510_v30 = vld [vmem:[%s1801_s30 + $0x184] sm:$0xf]  ;;  %v1531_v34 = vld [vmem:[%s1801_s30 + $0x224] sm:$0xf0]  ;;  %v1519_v38 = vld [vmem:[%s1801_s30 + $0x1cc] sm:$0xf] }
  0x6b   : > { %v1354_v32 = vld [vmem:[%s1801_s30 + $0x1a0] sm:$0xf0]  ;;  %v1425_v37 = vor.u32 %v1531_v34, %v1424_v33  ;;  %v1394_v39 = vld [vmem:[%s1801_s30 + $0x1e8] sm:$0xf0]  ;;  %v1320_v40 = vld [vmem:[%s1801_s30 + $0x140] sm:$0xf] }
  0x6c   : > { %838 = vmatpush.bf16.msra.mxu3 %v1421_v26  ;;  %v1357_v36 = vor.u32 %v1510_v30, %v1354_v32  ;;  %790 = vmatpush.bf16.msra.mxu0 %v1353_v27  ;;  %v1397_v41 = vor.u32 %v1519_v38, %v1394_v39  ;;  %v1506_v42 = vld [vmem:[%s1801_s30 + $0x15c] sm:$0xf0]  ;;  %v1328_v43 = vld [vmem:[%s1801_s30 + $0x148] sm:$0xf]  ;;  %v1502_v47 = vld [vmem:[%s1801_s30 + $0x144] sm:$0xf] }
  0x6d   : > { %v1507_v44 = vld [vmem:[%s1801_s30 + $0x164] sm:$0xf0]  ;;  %1446 = vmatmul.msk.bf16.vlgmr.msra.gmra.mxu2 %vm785_vm0, %v1827_v35  ;;  %846 = vmatpush.bf16.msra.mxu1 %v1361_v31  ;;  %v1321_v45 = vor.u32 %v1506_v42, %v1320_v40  ;;  %v1322_v48 = vld [vmem:[%s1801_s30 + $0x160] sm:$0xf0]  ;;  %v1511_v49 = vld [vmem:[%s1801_s30 + $0x18c] sm:$0xf] }
  0x6e   : > { %817 = vmatpush.bf16.msrb.mxu2 %v1389_v22  ;;  %v1329_v46 = vor.u32 %v1507_v44, %v1328_v43  ;;  %v1325_v50 = vor.u32 %v1502_v47, %v1322_v48  ;;  %v1362_v51 = vld [vmem:[%s1801_s30 + $0x1a8] sm:$0xf0]  ;;  %v1288_v52 = vld [vmem:[%s1801_s30 + $0x100] sm:$0xf]  ;;  %v1296_v55 = vld [vmem:[%s1801_s30 + $0x108] sm:$0xf] }
  0x6f   : > { %1447 = vmatmul.msk.bf16.vlgmr.msra.gmra.mxu3 %vm785_vm0, %v1827_v35  ;;  %v1498_v53 = vld [vmem:[%s1801_s30 + $0x11c] sm:$0xf0]  ;;  %v1365_v54 = vor.u32 %v1511_v49, %v1362_v51  ;;  %v1499_v56 = vld [vmem:[%s1801_s30 + $0x124] sm:$0xf0]  ;;  %v1494_v57 = vld [vmem:[%s1801_s30 + $0x104] sm:$0xf] }
  0x70   : > { %866 = vmatpush.bf16.msrb.mxu3 %v1425_v37  ;;  %791 = vmatpush.bf16.msra.mxu0 %v1321_v45  ;;  %v1289_v58 = vor.u32 %v1498_v53, %v1288_v52  ;;  %v1290_v59 = vld [vmem:[%s1801_s30 + $0x120] sm:$0xf0]  ;;  %v1503_v60 = vld [vmem:[%s1801_s30 + $0x14c] sm:$0xf]  ;;  %v1297_v62 = vor.u32 %v1499_v56, %v1296_v55  ;;  %v1256_v63 = vld [vmem:[%s1801_s30 + $0xc0] sm:$0xf] }
  0x71   : > { %v1330_v61 = vld [vmem:[%s1801_s30 + $0x168] sm:$0xf0]  ;;  %847 = vmatpush.bf16.msra.mxu1 %v1329_v46  ;;  %v1490_v0 = vld [vmem:[%s1801_s30 + $0xdc] sm:$0xf0]  ;;  %v1293_v1 = vor.u32 %v1494_v57, %v1290_v59  ;;  %v1264_v2 = vld [vmem:[%s1801_s30 + $0xc8] sm:$0xf] }
  0x72   : > { %818 = vmatpush.bf16.msrb.mxu2 %v1357_v36  ;;  %v1491_v3 = vld [vmem:[%s1801_s30 + $0xe4] sm:$0xf0]  ;;  %v1333_v4 = vor.u32 %v1503_v60, %v1330_v61  ;;  %v1486_v5 = vld [vmem:[%s1801_s30 + $0xc4] sm:$0xf]  ;;  %v1257_v7 = vor.u32 %v1490_v0, %v1256_v63  ;;  %v1495_v8 = vld [vmem:[%s1801_s30 + $0x10c] sm:$0xf] }
  0x73   : > { %v1258_v6 = vld [vmem:[%s1801_s30 + $0xe0] sm:$0xf0]  ;;  %v1298_v9 = vld [vmem:[%s1801_s30 + $0x128] sm:$0xf0]  ;;  %v1265_v10 = vor.u32 %v1491_v3, %v1264_v2  ;;  %v1224_v11 = vld [vmem:[%s1801_s30 + $0x80] sm:$0xf] }
  0x74   : > { %873 = vmatpush.bf16.msra.mxu3 %v1397_v41  ;;  %792 = vmatpush.bf16.msra.mxu0 %v1289_v58  ;;  %v1482_v12 = vld [vmem:[%s1801_s30 + $0x9c] sm:$0xf0]  ;;  %v1261_v13 = vor.u32 %v1486_v5, %v1258_v6  ;;  %v1232_v14 = vld [vmem:[%s1801_s30 + $0x88] sm:$0xf]  ;;  %v1301_v16 = vor.u32 %v1495_v8, %v1298_v9  ;;  %v1478_v17 = vld [vmem:[%s1801_s30 + $0x84] sm:$0xf] }
  0x75   : > { %848 = vmatpush.bf16.msra.mxu1 %v1297_v62  ;;  %v1483_v15 = vld [vmem:[%s1801_s30 + $0xa4] sm:$0xf0]  ;;  %v1226_v18 = vld [vmem:[%s1801_s30 + $0xa0] sm:$0xf0]  ;;  %v1225_v19 = vor.u32 %v1482_v12, %v1224_v11  ;;  %v1487_v20 = vld [vmem:[%s1801_s30 + $0xcc] sm:$0xf] }
  0x76   : > { %819 = vmatpush.bf16.msrb.mxu2 %v1325_v50  ;;  %v1266_v21 = vld [vmem:[%s1801_s30 + $0xe8] sm:$0xf0]  ;;  %v1233_v22 = vor.u32 %v1483_v15, %v1232_v14  ;;  %v1192_v23 = vld [vmem:[%s1801_s30 + $0x40] sm:$0xf]  ;;  %v1229_v25 = vor.u32 %v1478_v17, %v1226_v18  ;;  %v1200_v26 = vld [vmem:[%s1801_s30 + $0x48] sm:$0xf] }
  0x77   : > { %v1474_v24 = vld [vmem:[%s1801_s30 + $0x5c] sm:$0xf0]  ;;  %v1475_v27 = vld [vmem:[%s1801_s30 + $0x64] sm:$0xf0]  ;;  %v1269_v28 = vor.u32 %v1487_v20, %v1266_v21  ;;  %v1470_v29 = vld [vmem:[%s1801_s30 + $0x44] sm:$0xf] }
  0x78   : > { %874 = vmatpush.bf16.msra.mxu3 %v1365_v54  ;;  %793 = vmatpush.bf16.msra.mxu0 %v1257_v7  ;;  %v1194_v30 = vld [vmem:[%s1801_s30 + $0x60] sm:$0xf0]  ;;  %v1479_v31 = vld [vmem:[%s1801_s30 + $0x8c] sm:$0xf]  ;;  %v1193_v32 = vor.u32 %v1474_v24, %v1192_v23  ;;  %v1160_v34 = vld [vmem:[%s1801_s30] sm:$0xf]  ;;  %v1201_v37 = vor.u32 %v1475_v27, %v1200_v26 }
  0x79   : > { %849 = vmatpush.bf16.msra.mxu1 %v1265_v10  ;;  %v1234_v33 = vld [vmem:[%s1801_s30 + $0xa8] sm:$0xf0]  ;;  %v1466_v36 = vld [vmem:[%s1801_s30 + $0x1c] sm:$0xf0]  ;;  %v1168_v38 = vld [vmem:[%s1801_s30 + $0x8] sm:$0xf]  ;;  %v1197_v41 = vor.u32 %v1470_v29, %v1194_v30 }
  0x7a   : > { %820 = vmatpush.bf16.msrb.mxu2 %v1293_v1  ;;  %v1467_v39 = vld [vmem:[%s1801_s30 + $0x24] sm:$0xf0]  ;;  %v1462_v40 = vld [vmem:[%s1801_s30 + $0x4] sm:$0xf]  ;;  %v1527_v43 = vld [vmem:[%s1801_s30 + $0x20c] sm:$0xf]  ;;  %v1237_v45 = vor.u32 %v1479_v31, %v1234_v33  ;;  %v1161_v49 = vor.u32 %v1466_v36, %v1160_v34 }
  0x7b   : > { %v1162_v42 = vld [vmem:[%s1801_s30 + $0x20] sm:$0xf0]  ;;  %v1426_v44 = vld [vmem:[%s1801_s30 + $0x228] sm:$0xf0]  ;;  %v1400_v46 = vld [vmem:[%s1801_s30 + $0x1d0] sm:$0xf]  ;;  %v1169_v53 = vor.u32 %v1467_v39, %v1168_v38 }
  0x7c   : > { %875 = vmatpush.bf16.msra.mxu3 %v1333_v4  ;;  %794 = vmatpush.bf16.msra.mxu0 %v1225_v19  ;;  %v1432_v47 = vld [vmem:[%s1801_s30 + $0x210] sm:$0xf]  ;;  %v1152_v51 = vld [vmem:[%s2050_s0] sm:$0xf]  ;;  %v1461_v52 = vld [vmem:[%s2050_s0 + $0x4] sm:$0xf0]  ;;  %v1429_v56 = vor.u32 %v1527_v43, %v1426_v44  ;;  %v1165_v57 = vor.u32 %v1462_v40, %v1162_v42 }
  0x7d   : > { %850 = vmatpush.bf16.msra.mxu1 %v1233_v22  ;;  %v1532_v48 = vld [vmem:[%s1801_s30 + $0x22c] sm:$0xf0]  ;;  %v1471_v54 = vld [vmem:[%s1801_s30 + $0x4c] sm:$0xf]  ;;  %v1520_v58 = vld [vmem:[%s1801_s30 + $0x1d4] sm:$0xf]  ;;  %v1899_v62 = vor.u32 %v1461_v52, %v1152_v51 }
  0x7e   : > { %821 = vmatpush.bf16.msrb.mxu2 %v1261_v13  ;;  %v1524_v50 = vld [vmem:[%s1801_s30 + $0x1ec] sm:$0xf0]  ;;  %v1202_v55 = vld [vmem:[%s1801_s30 + $0x68] sm:$0xf0]  ;;  %v1402_v59 = vld [vmem:[%s1801_s30 + $0x1f0] sm:$0xf0]  ;;  %v1433_v60 = vor.u32 %v1532_v48, %v1432_v47 }
  0x7f   : > { %1448 = vmatmul.msk.bf16.vlgmr.msrb.gmra.mxu3 %vm785_vm0, %v1827_v35  ;;  %v1401_v61 = vor.u32 %v1524_v50, %v1400_v46  ;;  %v1205_v63 = vor.u32 %v1471_v54, %v1202_v55  ;;  %v1368_v0 = vld [vmem:[%s1801_s30 + $0x190] sm:$0xf]  ;;  %v1463_v2 = vld [vmem:[%s1801_s30 + $0xc] sm:$0xf]  ;;  %v1587_v3 = vmov 0   ;;  %v1405_v4 = vor.u32 %v1520_v58, %v1402_v59  ;;  %v404_v12 = vld [vmem:[%s2052_s2] sm:$0xff] }
  0x80   : > { %876 = vmatpush.bf16.msra.mxu3 %v1301_v16  ;;  %795 = vmatpush.bf16.msra.mxu0 %v1193_v32  ;;  %v1516_v1 = vld [vmem:[%s1801_s30 + $0x1ac] sm:$0xf0]  ;;  %v1170_v5 = vld [vmem:[%s1801_s30 + $0x28] sm:$0xf0]  ;;  %v1512_v6 = vld [vmem:[%s1801_s30 + $0x194] sm:$0xf] }
  0x81   : > { %851 = vmatpush.bf16.msra.mxu1 %v1201_v37  ;;  %1562 = vset.pattern.permute.xlu0 %v1587_v3  ;;  %v1370_v7 = vld [vmem:[%s1801_s30 + $0x1b0] sm:$0xf0]  ;;  %v1408_v8 = vld [vmem:[%s1801_s30 + $0x1d8] sm:$0xf]  ;;  %v1369_v11 = vor.u32 %v1516_v1, %v1368_v0  ;;  %v1173_v14 = vor.u32 %v1463_v2, %v1170_v5  ;;  %v1336_v15 = vld [vmem:[%s1801_s30 + $0x150] sm:$0xf] }
  0x82   : > { %822 = vmatpush.bf16.msrb.mxu2 %v1229_v25  ;;  %v1525_v9 = vld [vmem:[%s1801_s30 + $0x1f4] sm:$0xf0]  ;;  %v1528_v10 = vld [vmem:[%s1801_s30 + $0x214] sm:$0xf]  ;;  %v1508_v16 = vld [vmem:[%s1801_s30 + $0x16c] sm:$0xf0]  ;;  %v1373_v18 = vor.u32 %v1512_v6, %v1370_v7  ;;  %408 = vperm.xlu0 %1562, %v404_v12  }
  0x83   : > { %v1434_v13 = vld [vmem:[%s1801_s30 + $0x230] sm:$0xf0]  ;;  %v1409_v19 = vor.u32 %v1525_v9, %v1408_v8  ;;  %v1376_v22 = vld [vmem:[%s1801_s30 + $0x198] sm:$0xf]  ;;  %v1337_v24 = vor.u32 %v1508_v16, %v1336_v15  ;;  %v1304_v25 = vld [vmem:[%s1801_s30 + $0x110] sm:$0xf] }
  0x84   : > { %877 = vmatpush.bf16.msra.mxu3 %v1269_v28  ;;  %796 = vmatpush.bf16.msra.mxu0 %v1161_v49  ;;  %v1437_v17 = vor.u32 %v1528_v10, %v1434_v13  ;;  %v1504_v20 = vld [vmem:[%s1801_s30 + $0x154] sm:$0xf]  ;;  %v1517_v23 = vld [vmem:[%s1801_s30 + $0x1b4] sm:$0xf0]  ;;  %v1500_v26 = vld [vmem:[%s1801_s30 + $0x12c] sm:$0xf0] }
  0x85   : > { %852 = vmatpush.bf16.msra.mxu1 %v1169_v53  ;;  %v1338_v21 = vld [vmem:[%s1801_s30 + $0x170] sm:$0xf0]  ;;  %v1377_v28 = vor.u32 %v1517_v23, %v1376_v22  ;;  %v1344_v31 = vld [vmem:[%s1801_s30 + $0x158] sm:$0xf]  ;;  %v1305_v33 = vor.u32 %v1500_v26, %v1304_v25  ;;  %v405_v34 = vld [vmem:[%s2052_s2 + $0x8] sm:$0xff] }
  0x86   : > { %823 = vmatpush.bf16.msrb.mxu2 %v1197_v41  ;;  %v1341_v27 = vor.u32 %v1504_v20, %v1338_v21  ;;  %v1496_v29 = vld [vmem:[%s1801_s30 + $0x114] sm:$0xf]  ;;  %v1509_v32 = vld [vmem:[%s1801_s30 + $0x174] sm:$0xf0]  ;;  %v1272_v36 = vld [vmem:[%s1801_s30 + $0xd0] sm:$0xf] }
  0x87   : > { %797 = vmatmul.bf16.vlgmr.msra.gmra.mxu0 %v1899_v62  ;;  %v1306_v30 = vld [vmem:[%s1801_s30 + $0x130] sm:$0xf0]  ;;  %v1492_v37 = vld [vmem:[%s1801_s30 + $0xec] sm:$0xf0]  ;;  %v1345_v39 = vor.u32 %v1509_v32, %v1344_v31  ;;  %v1312_v42 = vld [vmem:[%s1801_s30 + $0x118] sm:$0xf] }
  0x88   : > { %878 = vmatpush.bf16.msra.mxu3 %v1237_v45  ;;  %894 = vmatpush.bf16.msrb.mxu0 %v1429_v56  ;;  %v1309_v38 = vor.u32 %v1496_v29, %v1306_v30  ;;  %v1488_v40 = vld [vmem:[%s1801_s30 + $0xd4] sm:$0xf]  ;;  %v1501_v43 = vld [vmem:[%s1801_s30 + $0x134] sm:$0xf0]  ;;  %v1273_v44 = vor.u32 %v1492_v37, %v1272_v36  ;;  %v1521_v45 = vld [vmem:[%s1801_s30 + $0x1dc] sm:$0xf] }
  0x89   : > { %922 = vmatpush.bf16.msrb.mxu1 %v1433_v60  ;;  %v1274_v41 = vld [vmem:[%s1801_s30 + $0xf0] sm:$0xf0]  ;;  %v1410_v46 = vld [vmem:[%s1801_s30 + $0x1f8] sm:$0xf0]  ;;  %v1240_v47 = vld [vmem:[%s1801_s30 + $0x90] sm:$0xf]  ;;  %v1313_v50 = vor.u32 %v1501_v43, %v1312_v42 }
  0x8a   : > { %824 = vmatpush.bf16.msrb.mxu2 %v1165_v57  ;;  %853 = vmatmul.bf16.vlgmr.msra.gmra.mxu1 %v1899_v62  ;;  %v1484_v48 = vld [vmem:[%s1801_s30 + $0xac] sm:$0xf0]  ;;  %v1277_v49 = vor.u32 %v1488_v40, %v1274_v41  ;;  %v1480_v51 = vld [vmem:[%s1801_s30 + $0x94] sm:$0xf]  ;;  %v1413_v52 = vor.u32 %v1521_v45, %v1410_v46  ;;  %v1280_v54 = vld [vmem:[%s1801_s30 + $0xd8] sm:$0xf] }
  0x8b   : > { %413 = vperm.xlu0 %1562, %v405_v34   ;;  %v1242_v53 = vld [vmem:[%s1801_s30 + $0xb0] sm:$0xf0]  ;;  %v1493_v55 = vld [vmem:[%s1801_s30 + $0xf4] sm:$0xf0]  ;;  %v1241_v56 = vor.u32 %v1484_v48, %v1240_v47  ;;  %v1513_v57 = vld [vmem:[%s1801_s30 + $0x19c] sm:$0xf] }
  0x8c   : > { %879 = vmatpush.bf16.msra.mxu3 %v1205_v63  ;;  %929 = vmatpush.bf16.msra.mxu0 %v1405_v4  ;;  %v1378_v58 = vld [vmem:[%s1801_s30 + $0x1b8] sm:$0xf0]  ;;  %v1208_v59 = vld [vmem:[%s1801_s30 + $0x50] sm:$0xf]  ;;  %v1281_v63 = vor.u32 %v1493_v55, %v1280_v54  ;;  %v1472_v0 = vld [vmem:[%s1801_s30 + $0x54] sm:$0xf] }
  0x8d   : > { %825 = vmatmul.bf16.vlgmr.msrb.gmra.mxu2 %v1899_v62  ;;  %950 = vmatpush.bf16.msra.mxu1 %v1437_v17  ;;  %v1476_v60 = vld [vmem:[%s1801_s30 + $0x6c] sm:$0xf0]  ;;  %v1381_v1 = vor.u32 %v1513_v57, %v1378_v58  ;;  %v1210_v2 = vld [vmem:[%s1801_s30 + $0x70] sm:$0xf0]  ;;  %v1248_v3 = vld [vmem:[%s1801_s30 + $0x98] sm:$0xf] }
  0x8e   : > { %901 = vmatpush.bf16.msra.mxu2 %v1401_v61  ;;  %v1245_v61 = vor.u32 %v1480_v51, %v1242_v53  ;;  %v1485_v4 = vld [vmem:[%s1801_s30 + $0xb4] sm:$0xf0]  ;;  %v1209_v5 = vor.u32 %v1476_v60, %v1208_v59  ;;  %v1505_v6 = vld [vmem:[%s1801_s30 + $0x15c] sm:$0xf]  ;;  %v1176_v8 = vld [vmem:[%s1801_s30 + $0x10] sm:$0xf]  ;;  %v1213_v10 = vor.u32 %v1472_v0, %v1210_v2 }
  0x8f   : > { %v1346_v7 = vld [vmem:[%s1801_s30 + $0x178] sm:$0xf0]  ;;  %v1468_v9 = vld [vmem:[%s1801_s30 + $0x2c] sm:$0xf0]  ;;  %v1464_v12 = vld [vmem:[%s1801_s30 + $0x14] sm:$0xf] }
  0x90   : > { %880 = vmatpush.bf16.msra.mxu3 %v1173_v14  ;;  %930 = vmatpush.bf16.msra.mxu0 %v1373_v18  ;;  %v1440_v13 = vld [vmem:[%s1801_s30 + $0x218] sm:$0xf]  ;;  %v1349_v15 = vor.u32 %v1505_v6, %v1346_v7  ;;  %v1178_v16 = vld [vmem:[%s1801_s30 + $0x30] sm:$0xf0]  ;;  %v1497_v20 = vld [vmem:[%s1801_s30 + $0x11c] sm:$0xf] }
  0x91   : > { %v1533_v14 = vld [vmem:[%s1801_s30 + $0x234] sm:$0xf0]  ;;  %v1314_v21 = vld [vmem:[%s1801_s30 + $0x138] sm:$0xf0]  ;;  %v1181_v25 = vor.u32 %v1464_v12, %v1178_v16 }
  0x92   : > { %902 = vmatpush.bf16.msra.mxu2 %v1369_v11  ;;  %v1249_v11 = vor.u32 %v1485_v4, %v1248_v3  ;;  %v1216_v17 = vld [vmem:[%s1801_s30 + $0x58] sm:$0xf]  ;;  %v1441_v22 = vor.u32 %v1533_v14, %v1440_v13  ;;  %v1529_v23 = vld [vmem:[%s1801_s30 + $0x21c] sm:$0xf] }
  0x93   : > { %881 = vmatmul.bf16.vlgmr.msra.gmra.mxu3 %v1899_v62  ;;  %v1477_v18 = vld [vmem:[%s1801_s30 + $0x74] sm:$0xf0]  ;;  %v1489_v30 = vld [vmem:[%s1801_s30 + $0xdc] sm:$0xf] }
  0x94   : > { %957 = vmatpush.bf16.msrb.mxu3 %v1409_v19  ;;  %931 = vmatpush.bf16.msra.mxu0 %v1341_v27  ;;  %v1177_v19 = vor.u32 %v1468_v9, %v1176_v8  ;;  %v1217_v26 = vor.u32 %v1477_v18, %v1216_v17  ;;  %v1317_v27 = vor.u32 %v1497_v20, %v1314_v21  ;;  %v1469_v29 = vld [vmem:[%s1801_s30 + $0x34] sm:$0xf0]  ;;  %v1282_v31 = vld [vmem:[%s1801_s30 + $0xf8] sm:$0xf0] }
  0x95   : > { %v1285_v34 = vor.u32 %v1489_v30, %v1282_v31  ;;  %v1481_v36 = vld [vmem:[%s1801_s30 + $0x9c] sm:$0xf] }
  0x96   : > { %903 = vmatpush.bf16.msra.mxu2 %v1337_v24  ;;  %v1442_v24 = vld [vmem:[%s1801_s30 + $0x238] sm:$0xf0] }
  0x97   : > { %1449 = vmatmul.msk.bf16.vlgmr.msrb.gmra.mxu0 %vm785_vm0, %v1827_v35  ;;  %v1445_v32 = vor.u32 %v1529_v23, %v1442_v24  ;;  %v1250_v37 = vld [vmem:[%s1801_s30 + $0xb8] sm:$0xf0] }
  0x98   : > { %958 = vmatpush.bf16.msrb.mxu3 %v1377_v28  ;;  %932 = vmatpush.bf16.msra.mxu0 %v1309_v38  ;;  %v1184_v28 = vld [vmem:[%s1801_s30 + $0x18] sm:$0xf]  ;;  %v1253_v38 = vor.u32 %v1481_v36, %v1250_v37  ;;  %v1218_v40 = vld [vmem:[%s1801_s30 + $0x78] sm:$0xf0] }
  0x99   : > { %v1465_v42 = vld [vmem:[%s1801_s30 + $0x1c] sm:$0xf] }
  0x9a   : > { %904 = vmatpush.bf16.msra.mxu2 %v1305_v33  ;;  %1450 = vmatmul.msk.bf16.vlgmr.msrb.gmra.mxu1 %vm785_vm0, %v1827_v35  ;;  %v1185_v33 = vor.u32 %v1469_v29, %v1184_v28  ;;  %v1186_v43 = vld [vmem:[%s1801_s30 + $0x38] sm:$0xf0] }
  0x9b   : > { %985 = vmatpush.bf16.msrb.mxu1 %v1413_v52 }
  0x9c   : > { %959 = vmatpush.bf16.msrb.mxu3 %v1345_v39  ;;  %933 = vmatpush.bf16.msra.mxu0 %v1277_v49  ;;  %v1473_v39 = vld [vmem:[%s1801_s30 + $0x5c] sm:$0xf] }
  0x9d   : > { %v1221_v41 = vor.u32 %v1473_v39, %v1218_v40 }
  0x9e   : > { %905 = vmatpush.bf16.msra.mxu2 %v1273_v44  ;;  %v1189_v44 = vor.u32 %v1465_v42, %v1186_v43 }
  0x9f   : > { %986 = vmatpush.bf16.msrb.mxu1 %v1381_v1 }
  0xa0   : > { %960 = vmatpush.bf16.msrb.mxu3 %v1313_v50  ;;  %934 = vmatpush.bf16.msra.mxu0 %v1245_v61 }
  0xa2   : > { %906 = vmatpush.bf16.msra.mxu2 %v1241_v56 }
  0xa3   : > { %987 = vmatpush.bf16.msrb.mxu1 %v1349_v15 }
  0xa4   : > { %961 = vmatpush.bf16.msrb.mxu3 %v1281_v63  ;;  %935 = vmatpush.bf16.msra.mxu0 %v1213_v10 }
  0xa6   : > { %907 = vmatpush.bf16.msra.mxu2 %v1209_v5 }
  0xa7   : > { %988 = vmatpush.bf16.msrb.mxu1 %v1317_v27 }
  0xa8   : > { %962 = vmatpush.bf16.msrb.mxu3 %v1249_v11  ;;  %936 = vmatpush.bf16.msra.mxu0 %v1181_v25 }
  0xaa   : > { %908 = vmatpush.bf16.msra.mxu2 %v1177_v19  ;;  %1451 = vmatmul.msk.bf16.vlgmr.msra.gmra.mxu1 %vm785_vm0, %v1827_v35 }
  0xab   : > { %937 = vmatmul.bf16.vlgmr.msra.gmra.mxu0 %v1899_v62  ;;  %989 = vmatpush.bf16.msrb.mxu1 %v1285_v34 }
  0xac   : > { %963 = vmatpush.bf16.msrb.mxu3 %v1217_v26  ;;  %1006 = vmatpush.bf16.msrb.mxu0 %v1445_v32 }
  0xad   : > { %909 = vmatmul.bf16.vlgmr.msra.gmra.mxu2 %v1899_v62 }
  0xae   : > { %978 = vmatpush.bf16.msrb.mxu2 %v1441_v22 }
  0xaf   : > { %990 = vmatpush.bf16.msrb.mxu1 %v1253_v38 }
  0xb0   : > { %964 = vmatpush.bf16.msrb.mxu3 %v1185_v33 }
  0xb3   : > { %965 = vmatmul.bf16.vlgmr.msrb.gmra.mxu3 %v1899_v62  ;;  %991 = vmatpush.bf16.msrb.mxu1 %v1221_v41 }
  0xb7   : > { %992 = vmatpush.bf16.msrb.mxu1 %v1189_v44 }
  0xba   : > { %993 = vmatmul.bf16.vlgmr.msrb.gmra.mxu1 %v1899_v62 }
  0xbb   : > { %1453 = vmatmul.msk.bf16.vlgmr.msrb.gmra.mxu0 %vm785_vm0, %v1827_v35 }
  0xbd   : > { %1452 = vmatmul.msk.bf16.vlgmr.msrb.gmra.mxu2 %vm785_vm0, %v1827_v35 }
  0xf0   : > { %v812_v46 = vpop.f32.mrf.mxu2 }
  0xf2   : > { %v840_v45 = vpop.f32.mrf.mxu3 }
  0xf4   : > { %v1993_v50 = vpop.permute.xlu0 %408 }
  0xf8   : > { %v814_v49 = vpop.f32.mrf.mxu2 }
  0xfa   : > { %v842_v47 = vpop.f32.mrf.mxu3 }
  0xfd   : > { %v1997_v62 = vpop.permute.xlu0 %413 }
 0x102   : > { %v868_v48 = vpop.f32.mrf.mxu3 }
 0x104   : > { %v798_v51 = vpop.f32.mrf.mxu0 }
 0x105   : > { %v799_v53 = vadd.f32 %v798_v51, %v1993_v50 }
 0x107   : > { %v854_v52 = vpop.f32.mrf.mxu1  ;;  %v813_v57 = vadd.f32 %v812_v46, %v799_v53 }
 0x108   : > { %v855_v59 = vadd.f32 %v854_v52, %v1993_v50 }
 0x109   : > { %v1013_v61 = vmax.f32 %v813_v57, 0.0 }
 0x10a   : > { %v870_v54 = vpop.f32.mrf.mxu3  ;;  %v869_v2 = vadd.f32 %v868_v48, %v855_v59 }
 0x10c   : > { %v800_v56 = vpop.f32.mrf.mxu0  ;;  %v1015_v11 = vmax.f32 %v869_v2, 0.0 }
 0x10d   : > { %v801_v0 = vadd.f32 %v800_v56, %v1997_v62 }
 0x10f   : > { %v856_v58 = vpop.f32.mrf.mxu1  ;;  %v815_v7 = vadd.f32 %v814_v49, %v801_v0 }
 0x110   : > { %v826_v55 = vpop.f32.mrf.mxu2  ;;  %v857_v12 = vadd.f32 %v856_v58, %v1997_v62 }
 0x111   : > { %v827_v35 = vadd.f32 %v826_v55, %v1993_v50  ;;  %v1021_v15 = vmax.f32 %v815_v7, 0.0 }
 0x112   : > { %v871_v19 = vadd.f32 %v870_v54, %v857_v12 }
 0x113   : > { %v841_v60 = vadd.f32 %v840_v45, %v827_v35 }
 0x114   : > { %v896_v6 = vpop.f32.mrf.mxu0  ;;  %v1023_v25 = vmax.f32 %v871_v19, 0.0 }
 0x115   : > { %v1014_v63 = vmax.f32 %v841_v60, 0.0 }
 0x116   : > { %v882_v1 = vpop.f32.mrf.mxu3 }
 0x117   : > { %v1029_v3 = vpack.c.bf16 %v1014_v63, %v1013_v61  ;;  %v883_v4 = vadd.f32 %v882_v1, %v1993_v50  ;;  %v924_v10 = vpop.f32.mrf.mxu1 }
 0x118   : > { %v828_v5 = vpop.f32.mrf.mxu2 }
 0x119   : > { %1037 = vst [vmem:[%s2004_s24] sm:$0xff] %v1029_v3  ;;  %v829_v8 = vadd.f32 %v828_v5, %v1997_v62  ;;  %v897_v9 = vadd.f32 %v896_v6, %v883_v4 }
 0x11b   : > { %v843_v13 = vadd.f32 %v842_v47, %v829_v8  ;;  %v1016_v14 = vmax.f32 %v897_v9, 0.0 }
 0x11c   : > { %v898_v22 = vpop.f32.mrf.mxu0 }
 0x11d   : > { %v1022_v16 = vmax.f32 %v843_v13, 0.0  ;;  %v1030_v17 = vpack.c.bf16 %v1016_v14, %v1015_v11 }
 0x11e   : > { %v884_v18 = vpop.f32.mrf.mxu3 }
 0x11f   : > { %v1033_v20 = vpack.c.bf16 %v1022_v16, %v1021_v15  ;;  %1038 = vst [vmem:[%s2004_s24 + $0x8] sm:$0xff] %v1030_v17  ;;  %v885_v21 = vadd.f32 %v884_v18, %v1997_v62  ;;  %v926_v24 = vpop.f32.mrf.mxu1 }
 0x121   : > { %1041 = vst [vmem:[%s2004_s24 + $0x20] sm:$0xff] %v1033_v20  ;;  %v899_v23 = vadd.f32 %v898_v22, %v885_v21 }
 0x123   : > { %v1024_v26 = vmax.f32 %v899_v23, 0.0 }
 0x125   : > { %v1034_v27 = vpack.c.bf16 %v1024_v26, %v1023_v25 }
 0x126   : > { %v1069_v7 = vld [vmem:[%s2004_s24 + $0x8] sm:$0xff] (%p1638_p5) }
 0x127   : > { %1042 = vst [vmem:[%s2004_s24 + $0x28] sm:$0xff] %v1034_v27  ;;  %v952_v29 = vpop.f32.mrf.mxu1 }
 0x128   : > { %v938_v28 = vpop.f32.mrf.mxu0  ;;  %1070 = vst [vmem:[%s1054_s27 + $0x8] sm:$0xff] (%p1638_p5), %v1069_v7 }
 0x129   : > { %v939_v30 = vadd.f32 %v938_v28, %v1993_v50 }
 0x12b   : > { %v953_v32 = vadd.f32 %v952_v29, %v939_v30 }
 0x12d   : > { %v1018_v38 = vmax.f32 %v953_v32, 0.0 }
 0x12e   : > { %v1077_v11 = vld [vmem:[%s2004_s24 + $0x28] sm:$0xff] (%p1638_p5) }
 0x12f   : > { %v954_v37 = vpop.f32.mrf.mxu1  ;;  %1078 = vst [vmem:[%s1054_s27 + $0x48] sm:$0xff] (%p1638_p5), %v1077_v11 }
 0x130   : > { %v910_v31 = vpop.f32.mrf.mxu2  ;;  %v940_v36 = vpop.f32.mrf.mxu0 }
 0x131   : > { %v911_v33 = vadd.f32 %v910_v31, %v1993_v50  ;;  %v941_v40 = vadd.f32 %v940_v36, %v1997_v62 }
 0x133   : > { %v925_v34 = vadd.f32 %v924_v10, %v911_v33  ;;  %v955_v43 = vadd.f32 %v954_v37, %v941_v40  ;;  %v1075_v10 = vld [vmem:[%s2004_s24 + $0x20] sm:$0xff] (%p1638_p5) }
 0x134   : > { %1076 = vst [vmem:[%s1054_s27 + $0x40] sm:$0xff] (%p1638_p5), %v1075_v10 }
 0x135   : > { %v1017_v39 = vmax.f32 %v925_v34, 0.0  ;;  %v1026_v47 = vmax.f32 %v955_v43, 0.0 }
 0x136   : > { %v966_v45 = vpop.f32.mrf.mxu3 }
 0x137   : > { %v1031_v41 = vpack.c.bf16 %v1018_v38, %v1017_v39  ;;  %v967_v48 = vadd.f32 %v966_v45, %v1993_v50  ;;  %v994_v51 = vpop.f32.mrf.mxu1 }
 0x138   : > { %v912_v42 = vpop.f32.mrf.mxu2  ;;  %v1008_v52 = vpop.f32.mrf.mxu0  ;;  %v995_v53 = vadd.f32 %v994_v51, %v1993_v50 }
 0x139   : > { %1039 = vst [vmem:[%s2004_s24 + $0x10] sm:$0xff] %v1031_v41  ;;  %v913_v44 = vadd.f32 %v912_v42, %v1997_v62 }
 0x13a   : > { %v1009_v55 = vadd.f32 %v1008_v52, %v995_v53 }
 0x13b   : > { %v927_v46 = vadd.f32 %v926_v24, %v913_v44 }
 0x13c   : > { %v1020_v35 = vmax.f32 %v1009_v55, 0.0 }
 0x13d   : > { %v1025_v49 = vmax.f32 %v927_v46, 0.0 }
 0x13e   : > { %v968_v59 = vpop.f32.mrf.mxu3 }
 0x13f   : > { %v1035_v54 = vpack.c.bf16 %v1026_v47, %v1025_v49  ;;  %v996_v61 = vpop.f32.mrf.mxu1  ;;  %v969_v0 = vadd.f32 %v968_v59, %v1997_v62 }
 0x140   : > { %v980_v56 = vpop.f32.mrf.mxu2  ;;  %v997_v63 = vadd.f32 %v996_v61, %v1997_v62  ;;  %v1010_v1 = vpop.f32.mrf.mxu0  ;;  %v1067_v62 = vld [vmem:[%s2004_s24] sm:$0xff] (%p1638_p5)  ;;  %v1071_v8 = vld [vmem:[%s2004_s24 + $0x10] sm:$0xff] (%p1638_p5) }
 0x141   : > { %1043 = vst [vmem:[%s2004_s24 + $0x30] sm:$0xff] %v1035_v54  ;;  %v981_v57 = vadd.f32 %v980_v56, %v967_v48 }
 0x142   : > { %v1011_v2 = vadd.f32 %v1010_v1, %v997_v63  ;;  %1068 = vst [vmem:[%s1054_s27] sm:$0xff] (%p1638_p5), %v1067_v62 }
 0x143   : > { %v1019_v58 = vmax.f32 %v981_v57, 0.0  ;;  %1072 = vst [vmem:[%s1054_s27 + $0x10] sm:$0xff] (%p1638_p5), %v1071_v8 }
 0x144   : > { %v1028_v4 = vmax.f32 %v1011_v2, 0.0 }
 0x145   : > { %v1032_v60 = vpack.c.bf16 %v1020_v35, %v1019_v58 }
 0x147   : > { %1040 = vst [vmem:[%s2004_s24 + $0x18] sm:$0xff] %v1032_v60 }
 0x148   : > { %v982_v3 = vpop.f32.mrf.mxu2  ;;  %v1079_v12 = vld [vmem:[%s2004_s24 + $0x30] sm:$0xff] (%p1638_p5) }
 0x149   : > { %v983_v50 = vadd.f32 %v982_v3, %v969_v0  ;;  %1080 = vst [vmem:[%s1054_s27 + $0x50] sm:$0xff] (%p1638_p5), %v1079_v12 }
 0x14b   : > { %v1027_v5 = vmax.f32 %v983_v50, 0.0  ;;  %1051 = sbr.rel (!%p1638_p5) target bundleno = 344 (0x158), region = 59 }
 0x14d   : > { %v1036_v6 = vpack.c.bf16 %v1028_v4, %v1027_v5 }
 0x14e   : > { %v1073_v9 = vld [vmem:[%s2004_s24 + $0x18] sm:$0xff] (%p1638_p5) }
 0x14f   : > { %1044 = vst [vmem:[%s2004_s24 + $0x38] sm:$0xff] %v1036_v6 }
 0x150   : > { %1074 = vst [vmem:[%s1054_s27 + $0x18] sm:$0xff] %v1073_v9 }
 0x156   : > { %v1081_v13 = vld [vmem:[%s2004_s24 + $0x38] sm:$0xff] }
 0x157   : > { %1082 = vst [vmem:[%s1054_s27 + $0x58] sm:$0xff] %v1081_v13 }
 0x158 PF: > { %p10_p10 = scmp.ge.s32.totalorder %s1625_s16, 4   ;;  %s2055_s12 = smov %s1581_s13 }
 0x159   : > { %s2056_s13 = smov %s1636_s19  ;;  %s2057_s14 = smov %s1625_s16 }
 0x15a   :  { %12 = sbr.rel (!%p10_p10) target bundleno = 2 (0x2), region = 113 }

// kernel: cifar_resnet_forward.9
= control target key start
LH: loop header
LB: loop body
LE: loop exit
PB: predicated region body
PF: predicated region fallthrough
CT: control target
= control target key end

     0   :  { %s1758_s15 = smov 0   ;;  %s1760_s16 = smov 0   ;;  %s2227_s0 = inlined_call_operand.vmem [shape: bf16[16,144], index: 0, kind: input, shape index: {}]   ;;  %s2228_s1 = inlined_call_operand.vmem [shape: bf16[144,2048], index: 1, kind: input, shape index: {}]   ;;  %s2229_s2 = inlined_call_operand.vmem [shape: f32[16,1], index: 2, kind: input, shape index: {}]   ;;  %s2230_s3 = inlined_call_operand.vmem [shape: bf16[16,2048], index: 3, kind: input, shape index: {}]   ;;  %s2231_s4 = inlined_call_operand.vmem [shape: bf16[16,2048], index: 4, kind: output, shape index: {}]  }
   0x1   :  { %s1762_s17 = smov 0  }
   0x2 LB: > { %s1282_s18 = sadd.s32 4294967295, %s1730_s17   ;;  %s1775_s19 = sadd.s32 1, %s1730_s17   ;;  %s1730_s17 = sphi %s1762_s17, %s2236_s17   ;;  %s1726_s16 = sphi %s1760_s16, %s2235_s16   ;;  %s1722_s15 = sphi %s1758_s15, %s2234_s15  }
   0x3   : > { %s39_s20 = ssub.s32 %s1730_s17, %s1775_s19  ;;  %s42_s21 = sadd.s32 1, %s1726_s16 }
   0x4   : > { %p40_p0 = scmp.eq.s32.totalorder %s39_s20, 0  ;;  %p49_p1 = scmp.ne.s32.totalorder %s1726_s16, %s1722_s15 }
   0x5   : > { %p50_p2 = scmp.eq.s32.totalorder %s1730_s17, 0  ;;  %p126_p3 = scmp.eq.s32.totalorder %s1282_s18, 1 }
   0x6   : > { %s1786_s22 = scalar_select %p40_p0, %s1726_s16, %s42_s21  }
   0x7   : > { %p1788_p4 = por %p50_p2, %p49_p1  ;;  %p1792_p5 = por %p126_p3, %p49_p1 }
   0x8   : > { %p1285_p6 = scmp.ge.s32.totalorder %s1730_s17, 2 }
   0xa   : > { %154 = sbr.rel (%p1285_p6) target bundleno = 103 (0x67), region = 24 }
   0xf   : > { %157 = sbr.rel (!%p1788_p4) target bundleno = 91 (0x5b), region = 28  ;;  %s159_s25 = sand.u32 (%p1788_p4), 1, %s1726_s16  }
  0x10   : > { %s1603_s26 = sshll.u32 (%p1788_p4), %s1730_s17, 5  ;;  %s1680_s27 = smul.u32 (%p1788_p4), 576, %s159_s25 }
  0x11   : > { %s1804_s30 = scalar_lea.vmem (%p1788_p4), %s2228_s1, %s1603_s26 }
  0x12   : > { %v177_v0 = vld [vmem:[%s1804_s30] sm:$0xff] (%p1788_p4)  ;;  %v179_v1 = vld [vmem:[%s1804_s30 + $0x8] sm:$0xff] (%p1788_p4)  ;;  %v181_v2 = vld [vmem:[%s1804_s30 + $0x10] sm:$0xff] (%p1788_p4)  ;;  %s1809_s5 = scalar_lea.vmem (%p1788_p4), [#allocation2], %s1680_s27 }
  0x13   : > { %178 = vst [vmem:[%s1809_s5] sm:$0xff] (%p1788_p4), %v177_v0  ;;  %v183_v3 = vld [vmem:[%s1804_s30 + $0x18] sm:$0xff] (%p1788_p4)  ;;  %v185_v4 = vld [vmem:[%s1804_s30 + $0x40] sm:$0xff] (%p1788_p4)  ;;  %v187_v5 = vld [vmem:[%s1804_s30 + $0x48] sm:$0xff] (%p1788_p4) }
  0x14   : > { %180 = vst [vmem:[%s1809_s5 + $0x8] sm:$0xff] %v179_v1  ;;  %v189_v6 = vld [vmem:[%s1804_s30 + $0x50] sm:$0xff]  ;;  %v191_v7 = vld [vmem:[%s1804_s30 + $0x58] sm:$0xff]  ;;  %v193_v8 = vld [vmem:[%s1804_s30 + $0x80] sm:$0xff] }
  0x15   : > { %182 = vst [vmem:[%s1809_s5 + $0x10] sm:$0xff] %v181_v2  ;;  %v195_v9 = vld [vmem:[%s1804_s30 + $0x88] sm:$0xff]  ;;  %v197_v10 = vld [vmem:[%s1804_s30 + $0x90] sm:$0xff]  ;;  %v199_v11 = vld [vmem:[%s1804_s30 + $0x98] sm:$0xff] }
  0x16   : > { %184 = vst [vmem:[%s1809_s5 + $0x18] sm:$0xff] %v183_v3  ;;  %v201_v12 = vld [vmem:[%s1804_s30 + $0xc0] sm:$0xff]  ;;  %v203_v13 = vld [vmem:[%s1804_s30 + $0xc8] sm:$0xff]  ;;  %v205_v14 = vld [vmem:[%s1804_s30 + $0xd0] sm:$0xff] }
  0x17   : > { %186 = vst [vmem:[%s1809_s5 + $0x20] sm:$0xff] %v185_v4  ;;  %v207_v15 = vld [vmem:[%s1804_s30 + $0xd8] sm:$0xff]  ;;  %v209_v16 = vld [vmem:[%s1804_s30 + $0x100] sm:$0xff]  ;;  %v211_v17 = vld [vmem:[%s1804_s30 + $0x108] sm:$0xff] }
  0x18   : > { %188 = vst [vmem:[%s1809_s5 + $0x28] sm:$0xff] %v187_v5  ;;  %v213_v18 = vld [vmem:[%s1804_s30 + $0x110] sm:$0xff]  ;;  %v215_v19 = vld [vmem:[%s1804_s30 + $0x118] sm:$0xff]  ;;  %v217_v20 = vld [vmem:[%s1804_s30 + $0x140] sm:$0xff] }
  0x19   : > { %190 = vst [vmem:[%s1809_s5 + $0x30] sm:$0xff] %v189_v6  ;;  %v219_v21 = vld [vmem:[%s1804_s30 + $0x148] sm:$0xff]  ;;  %v221_v22 = vld [vmem:[%s1804_s30 + $0x150] sm:$0xff]  ;;  %v223_v23 = vld [vmem:[%s1804_s30 + $0x158] sm:$0xff] }
  0x1a   : > { %192 = vst [vmem:[%s1809_s5 + $0x38] sm:$0xff] %v191_v7  ;;  %v225_v24 = vld [vmem:[%s1804_s30 + $0x180] sm:$0xff]  ;;  %v227_v25 = vld [vmem:[%s1804_s30 + $0x188] sm:$0xff]  ;;  %v229_v26 = vld [vmem:[%s1804_s30 + $0x190] sm:$0xff] }
  0x1b   : > { %194 = vst [vmem:[%s1809_s5 + $0x40] sm:$0xff] %v193_v8  ;;  %v231_v27 = vld [vmem:[%s1804_s30 + $0x198] sm:$0xff]  ;;  %v233_v28 = vld [vmem:[%s1804_s30 + $0x1c0] sm:$0xff]  ;;  %v235_v29 = vld [vmem:[%s1804_s30 + $0x1c8] sm:$0xff] }
  0x1c   : > { %196 = vst [vmem:[%s1809_s5 + $0x48] sm:$0xff] %v195_v9  ;;  %v237_v30 = vld [vmem:[%s1804_s30 + $0x1d0] sm:$0xff]  ;;  %v239_v31 = vld [vmem:[%s1804_s30 + $0x1d8] sm:$0xff]  ;;  %v241_v32 = vld [vmem:[%s1804_s30 + $0x200] sm:$0xff] }
  0x1d   : > { %198 = vst [vmem:[%s1809_s5 + $0x50] sm:$0xff] %v197_v10  ;;  %v243_v33 = vld [vmem:[%s1804_s30 + $0x208] sm:$0xff]  ;;  %v245_v34 = vld [vmem:[%s1804_s30 + $0x210] sm:$0xff]  ;;  %v247_v35 = vld [vmem:[%s1804_s30 + $0x218] sm:$0xff] }
  0x1e   : > { %200 = vst [vmem:[%s1809_s5 + $0x58] sm:$0xff] %v199_v11  ;;  %v249_v36 = vld [vmem:[%s1804_s30 + $0x240] sm:$0xff]  ;;  %v251_v37 = vld [vmem:[%s1804_s30 + $0x248] sm:$0xff]  ;;  %v253_v38 = vld [vmem:[%s1804_s30 + $0x250] sm:$0xff] }
  0x1f   : > { %202 = vst [vmem:[%s1809_s5 + $0x60] sm:$0xff] %v201_v12  ;;  %v255_v39 = vld [vmem:[%s1804_s30 + $0x258] sm:$0xff]  ;;  %v257_v40 = vld [vmem:[%s1804_s30 + $0x280] sm:$0xff]  ;;  %v259_v41 = vld [vmem:[%s1804_s30 + $0x288] sm:$0xff] }
  0x20   : > { %204 = vst [vmem:[%s1809_s5 + $0x68] sm:$0xff] %v203_v13  ;;  %v261_v42 = vld [vmem:[%s1804_s30 + $0x290] sm:$0xff]  ;;  %v263_v43 = vld [vmem:[%s1804_s30 + $0x298] sm:$0xff]  ;;  %v265_v44 = vld [vmem:[%s1804_s30 + $0x2c0] sm:$0xff] }
  0x21   : > { %206 = vst [vmem:[%s1809_s5 + $0x70] sm:$0xff] %v205_v14  ;;  %v267_v45 = vld [vmem:[%s1804_s30 + $0x2c8] sm:$0xff]  ;;  %v269_v46 = vld [vmem:[%s1804_s30 + $0x2d0] sm:$0xff]  ;;  %v271_v47 = vld [vmem:[%s1804_s30 + $0x2d8] sm:$0xff] }
  0x22   : > { %208 = vst [vmem:[%s1809_s5 + $0x78] sm:$0xff] %v207_v15  ;;  %v273_v48 = vld [vmem:[%s1804_s30 + $0x300] sm:$0xff]  ;;  %v275_v49 = vld [vmem:[%s1804_s30 + $0x308] sm:$0xff]  ;;  %v277_v50 = vld [vmem:[%s1804_s30 + $0x310] sm:$0xff] }
  0x23   : > { %210 = vst [vmem:[%s1809_s5 + $0x80] sm:$0xff] %v209_v16  ;;  %v279_v51 = vld [vmem:[%s1804_s30 + $0x318] sm:$0xff]  ;;  %v281_v52 = vld [vmem:[%s1804_s30 + $0x340] sm:$0xff]  ;;  %v283_v53 = vld [vmem:[%s1804_s30 + $0x348] sm:$0xff] }
  0x24   : > { %212 = vst [vmem:[%s1809_s5 + $0x88] sm:$0xff] %v211_v17  ;;  %v285_v54 = vld [vmem:[%s1804_s30 + $0x350] sm:$0xff]  ;;  %v287_v55 = vld [vmem:[%s1804_s30 + $0x358] sm:$0xff]  ;;  %v289_v56 = vld [vmem:[%s1804_s30 + $0x380] sm:$0xff] }
  0x25   : > { %214 = vst [vmem:[%s1809_s5 + $0x90] sm:$0xff] %v213_v18  ;;  %v291_v57 = vld [vmem:[%s1804_s30 + $0x388] sm:$0xff]  ;;  %v293_v58 = vld [vmem:[%s1804_s30 + $0x390] sm:$0xff]  ;;  %v295_v59 = vld [vmem:[%s1804_s30 + $0x398] sm:$0xff] }
  0x26   : > { %216 = vst [vmem:[%s1809_s5 + $0x98] sm:$0xff] %v215_v19  ;;  %v297_v60 = vld [vmem:[%s1804_s30 + $0x3c0] sm:$0xff]  ;;  %v299_v61 = vld [vmem:[%s1804_s30 + $0x3c8] sm:$0xff]  ;;  %v301_v62 = vld [vmem:[%s1804_s30 + $0x3d0] sm:$0xff] }
  0x27   : > { %218 = vst [vmem:[%s1809_s5 + $0xa0] sm:$0xff] %v217_v20  ;;  %v303_v63 = vld [vmem:[%s1804_s30 + $0x3d8] sm:$0xff]  ;;  %v305_v0 = vld [vmem:[%s1804_s30 + $0x400] sm:$0xff]  ;;  %v307_v1 = vld [vmem:[%s1804_s30 + $0x408] sm:$0xff] }
  0x28   : > { %220 = vst [vmem:[%s1809_s5 + $0xa8] sm:$0xff] %v219_v21  ;;  %v309_v2 = vld [vmem:[%s1804_s30 + $0x410] sm:$0xff]  ;;  %v311_v3 = vld [vmem:[%s1804_s30 + $0x418] sm:$0xff]  ;;  %v313_v4 = vld [vmem:[%s1804_s30 + $0x440] sm:$0xff] }
  0x29   : > { %222 = vst [vmem:[%s1809_s5 + $0xb0] sm:$0xff] %v221_v22  ;;  %v315_v5 = vld [vmem:[%s1804_s30 + $0x448] sm:$0xff]  ;;  %v317_v6 = vld [vmem:[%s1804_s30 + $0x450] sm:$0xff]  ;;  %v319_v7 = vld [vmem:[%s1804_s30 + $0x458] sm:$0xff] }
  0x2a   : > { %224 = vst [vmem:[%s1809_s5 + $0xb8] sm:$0xff] %v223_v23 }
  0x2b   : > { %226 = vst [vmem:[%s1809_s5 + $0xc0] sm:$0xff] %v225_v24 }
  0x2c   : > { %228 = vst [vmem:[%s1809_s5 + $0xc8] sm:$0xff] %v227_v25 }
  0x2d   : > { %230 = vst [vmem:[%s1809_s5 + $0xd0] sm:$0xff] %v229_v26 }
  0x2e   : > { %232 = vst [vmem:[%s1809_s5 + $0xd8] sm:$0xff] %v231_v27 }
  0x2f   : > { %234 = vst [vmem:[%s1809_s5 + $0xe0] sm:$0xff] %v233_v28 }
  0x30   : > { %236 = vst [vmem:[%s1809_s5 + $0xe8] sm:$0xff] %v235_v29 }
  0x31   : > { %238 = vst [vmem:[%s1809_s5 + $0xf0] sm:$0xff] %v237_v30 }
  0x32   : > { %240 = vst [vmem:[%s1809_s5 + $0xf8] sm:$0xff] %v239_v31 }
  0x33   : > { %242 = vst [vmem:[%s1809_s5 + $0x100] sm:$0xff] %v241_v32 }
  0x34   : > { %244 = vst [vmem:[%s1809_s5 + $0x108] sm:$0xff] %v243_v33 }
  0x35   : > { %246 = vst [vmem:[%s1809_s5 + $0x110] sm:$0xff] %v245_v34 }
  0x36   : > { %248 = vst [vmem:[%s1809_s5 + $0x118] sm:$0xff] %v247_v35 }
  0x37   : > { %250 = vst [vmem:[%s1809_s5 + $0x120] sm:$0xff] %v249_v36 }
  0x38   : > { %252 = vst [vmem:[%s1809_s5 + $0x128] sm:$0xff] %v251_v37 }
  0x39   : > { %254 = vst [vmem:[%s1809_s5 + $0x130] sm:$0xff] %v253_v38 }
  0x3a   : > { %256 = vst [vmem:[%s1809_s5 + $0x138] sm:$0xff] %v255_v39 }
  0x3b   : > { %258 = vst [vmem:[%s1809_s5 + $0x140] sm:$0xff] %v257_v40 }
  0x3c   : > { %260 = vst [vmem:[%s1809_s5 + $0x148] sm:$0xff] %v259_v41 }
  0x3d   : > { %262 = vst [vmem:[%s1809_s5 + $0x150] sm:$0xff] %v261_v42 }
  0x3e   : > { %264 = vst [vmem:[%s1809_s5 + $0x158] sm:$0xff] %v263_v43 }
  0x3f   : > { %266 = vst [vmem:[%s1809_s5 + $0x160] sm:$0xff] %v265_v44 }
  0x40   : > { %268 = vst [vmem:[%s1809_s5 + $0x168] sm:$0xff] %v267_v45 }
  0x41   : > { %270 = vst [vmem:[%s1809_s5 + $0x170] sm:$0xff] %v269_v46 }
  0x42   : > { %272 = vst [vmem:[%s1809_s5 + $0x178] sm:$0xff] %v271_v47 }
  0x43   : > { %274 = vst [vmem:[%s1809_s5 + $0x180] sm:$0xff] %v273_v48 }
  0x44   : > { %276 = vst [vmem:[%s1809_s5 + $0x188] sm:$0xff] %v275_v49 }
  0x45   : > { %278 = vst [vmem:[%s1809_s5 + $0x190] sm:$0xff] %v277_v50 }
  0x46   : > { %280 = vst [vmem:[%s1809_s5 + $0x198] sm:$0xff] %v279_v51 }
  0x47   : > { %282 = vst [vmem:[%s1809_s5 + $0x1a0] sm:$0xff] %v281_v52 }
  0x48   : > { %284 = vst [vmem:[%s1809_s5 + $0x1a8] sm:$0xff] %v283_v53 }
  0x49   : > { %286 = vst [vmem:[%s1809_s5 + $0x1b0] sm:$0xff] %v285_v54 }
  0x4a   : > { %288 = vst [vmem:[%s1809_s5 + $0x1b8] sm:$0xff] %v287_v55 }
  0x4b   : > { %290 = vst [vmem:[%s1809_s5 + $0x1c0] sm:$0xff] %v289_v56 }
  0x4c   : > { %292 = vst [vmem:[%s1809_s5 + $0x1c8] sm:$0xff] %v291_v57 }
  0x4d   : > { %294 = vst [vmem:[%s1809_s5 + $0x1d0] sm:$0xff] %v293_v58 }
  0x4e   : > { %296 = vst [vmem:[%s1809_s5 + $0x1d8] sm:$0xff] %v295_v59 }
  0x4f   : > { %298 = vst [vmem:[%s1809_s5 + $0x1e0] sm:$0xff] %v297_v60 }
  0x50   : > { %300 = vst [vmem:[%s1809_s5 + $0x1e8] sm:$0xff] %v299_v61 }
  0x51   : > { %302 = vst [vmem:[%s1809_s5 + $0x1f0] sm:$0xff] %v301_v62 }
  0x52   : > { %304 = vst [vmem:[%s1809_s5 + $0x1f8] sm:$0xff] %v303_v63 }
  0x53   : > { %306 = vst [vmem:[%s1809_s5 + $0x200] sm:$0xff] %v305_v0 }
  0x54   : > { %308 = vst [vmem:[%s1809_s5 + $0x208] sm:$0xff] %v307_v1 }
  0x55   : > { %310 = vst [vmem:[%s1809_s5 + $0x210] sm:$0xff] %v309_v2 }
  0x56   : > { %312 = vst [vmem:[%s1809_s5 + $0x218] sm:$0xff] %v311_v3 }
  0x57   : > { %314 = vst [vmem:[%s1809_s5 + $0x220] sm:$0xff] %v313_v4 }
  0x58   : > { %316 = vst [vmem:[%s1809_s5 + $0x228] sm:$0xff] %v315_v5 }
  0x59   : > { %318 = vst [vmem:[%s1809_s5 + $0x230] sm:$0xff] %v317_v6 }
  0x5a   : > { %320 = vst [vmem:[%s1809_s5 + $0x238] sm:$0xff] %v319_v7 }
  0x5b PF: > { %326 = sbr.rel (!%p1788_p4) target bundleno = 103 (0x67), region = 51  ;;  %s328_s6 = sand.u32 (%p1788_p4), 1, %s1726_s16  }
  0x5c   : > { %s1604_s7 = sshll.u32 (%p1788_p4), %s1730_s17, 5  ;;  %s1288_s8 = sshll.u32 (%p1788_p4), %s328_s6, 6 }
  0x5d   : > { %s333_s11 = scalar_lea.vmem (%p1788_p4), %s2230_s3, %s1604_s7  ;;  %s330_s12 = scalar_lea.vmem (%p1788_p4), [#allocation3], %s1288_s8 }
  0x5e   : > { %v346_v8 = vld [vmem:[%s333_s11] sm:$0xff] (%p1788_p4)  ;;  %v348_v9 = vld [vmem:[%s333_s11 + $0x8] sm:$0xff] (%p1788_p4)  ;;  %v350_v10 = vld [vmem:[%s333_s11 + $0x10] sm:$0xff] (%p1788_p4) }
  0x5f   : > { %347 = vst [vmem:[%s330_s12] sm:$0xff] (%p1788_p4), %v346_v8  ;;  %v352_v11 = vld [vmem:[%s333_s11 + $0x18] sm:$0xff] (%p1788_p4)  ;;  %v354_v12 = vld [vmem:[%s333_s11 + $0x40] sm:$0xff] (%p1788_p4)  ;;  %v356_v13 = vld [vmem:[%s333_s11 + $0x48] sm:$0xff] (%p1788_p4) }
  0x60   : > { %349 = vst [vmem:[%s330_s12 + $0x8] sm:$0xff] %v348_v9  ;;  %v358_v14 = vld [vmem:[%s333_s11 + $0x50] sm:$0xff]  ;;  %v360_v15 = vld [vmem:[%s333_s11 + $0x58] sm:$0xff] }
  0x61   : > { %351 = vst [vmem:[%s330_s12 + $0x10] sm:$0xff] %v350_v10 }
  0x62   : > { %353 = vst [vmem:[%s330_s12 + $0x18] sm:$0xff] %v352_v11 }
  0x63   : > { %355 = vst [vmem:[%s330_s12 + $0x20] sm:$0xff] %v354_v12 }
  0x64   : > { %357 = vst [vmem:[%s330_s12 + $0x28] sm:$0xff] %v356_v13 }
  0x65   : > { %359 = vst [vmem:[%s330_s12 + $0x30] sm:$0xff] %v358_v14 }
  0x66   : > { %361 = vst [vmem:[%s330_s12 + $0x38] sm:$0xff] %v360_v15 }
  0x67 PF: > { %p1291_p7 = scmp.ge.s32.totalorder %s1730_s17, 1  ;;  %p366_p8 = scmp.lt.s32.totalorder %s1730_s17, 3 }
  0x69   : > { %p367_p9 = pnand %p1291_p7, %p366_p8 }
  0x6a   : > { %s373_s13 = sand.u32 (!%p367_p9), 1, %s1722_s15  }
  0x6b   : > { %370 = sbr.rel (%p367_p9) target bundleno = 358 (0x166), region = 74  ;;  %s2160_s9 = sshll.u32 (!%p367_p9), %s373_s13, 6 }
  0x6c   : > { %s1681_s14 = smul.u32 (!%p367_p9), 576, %s373_s13  ;;  %s2164_s10 = scalar_lea.vmem (!%p367_p9), [#allocation3], %s2160_s9 }
  0x6d   : > { %s2179_s15 = scalar_lea.vmem (!%p367_p9), [#allocation4], %s2160_s9 }
  0x6e   : > { %s1964_s20 = scalar_lea.vmem (!%p367_p9), [#allocation2], %s1681_s14 }
  0x70   : > { %vm867_vm0 = vcmask 130048   ;;  %v1528_v16 = vld [vmem:[%s1964_s20 + $0x1c0] sm:$0xf]  ;;  %v1605_v19 = vld [vmem:[%s2227_s0 + $0x4] sm:$0xf]  ;;  %s1679_s11 = sshll.u32 (%p1792_p5), %s1282_s18, 5 }
  0x71   : > { %v1667_v17 = vld [vmem:[%s1964_s20 + $0x1dc] sm:$0xf0]  ;;  %v1298_v20 = vld [vmem:[%s2227_s0 + $0x8] sm:$0xf0]  ;;  %v1536_v23 = vld [vmem:[%s1964_s20 + $0x1c8] sm:$0xf]  ;;  %s1176_s14 = scalar_lea.vmem (%p1792_p5), %s2231_s4, %s1679_s11 }
  0x72   : > { %v1560_v18 = vld [vmem:[%s1964_s20 + $0x200] sm:$0xf]  ;;  %v1529_v21 = vor.u32 %v1667_v17, %v1528_v16  ;;  %v1668_v24 = vld [vmem:[%s1964_s20 + $0x1e4] sm:$0xf0]  ;;  %v1663_v27 = vld [vmem:[%s1964_s20 + $0x1c4] sm:$0xf]  ;;  %v1990_v43 = vor.u32 %v1605_v19, %v1298_v20 }
  0x73   : > { %v1675_v22 = vld [vmem:[%s1964_s20 + $0x21c] sm:$0xf0]  ;;  %v1537_v26 = vor.u32 %v1668_v24, %v1536_v23  ;;  %v1530_v28 = vld [vmem:[%s1964_s20 + $0x1e0] sm:$0xf0]  ;;  %v1504_v36 = vld [vmem:[%s1964_s20 + $0x188] sm:$0xf] }
  0x74   : > { %v1561_v25 = vor.u32 %v1675_v22, %v1560_v18  ;;  %v1671_v29 = vld [vmem:[%s1964_s20 + $0x204] sm:$0xf]  ;;  %871 = vmatpush.bf16.msra.mxu0 %v1529_v21  ;;  %v1533_v30 = vor.u32 %v1663_v27, %v1530_v28  ;;  %v1496_v32 = vld [vmem:[%s1964_s20 + $0x180] sm:$0xf]  ;;  %v1660_v37 = vld [vmem:[%s1964_s20 + $0x1a4] sm:$0xf0] }
  0x75   : > { %v1562_v31 = vld [vmem:[%s1964_s20 + $0x220] sm:$0xf0]  ;;  %v1659_v33 = vld [vmem:[%s1964_s20 + $0x19c] sm:$0xf0]  ;;  %927 = vmatpush.bf16.msra.mxu1 %v1537_v26  ;;  %v1505_v39 = vor.u32 %v1660_v37, %v1504_v36  ;;  %v1568_v41 = vld [vmem:[%s1964_s20 + $0x208] sm:$0xf] }
  0x76   : > { %892 = vmatpush.bf16.msra.mxu2 %v1561_v25  ;;  %v1565_v34 = vor.u32 %v1671_v29, %v1562_v31  ;;  %v1497_v35 = vor.u32 %v1659_v33, %v1496_v32  ;;  %v1655_v38 = vld [vmem:[%s1964_s20 + $0x184] sm:$0xf]  ;;  %v1676_v42 = vld [vmem:[%s1964_s20 + $0x224] sm:$0xf0]  ;;  %v1664_v46 = vld [vmem:[%s1964_s20 + $0x1cc] sm:$0xf] }
  0x77   : > { %v1498_v40 = vld [vmem:[%s1964_s20 + $0x1a0] sm:$0xf0]  ;;  %v1569_v45 = vor.u32 %v1676_v42, %v1568_v41  ;;  %v1538_v47 = vld [vmem:[%s1964_s20 + $0x1e8] sm:$0xf0]  ;;  %v1464_v48 = vld [vmem:[%s1964_s20 + $0x140] sm:$0xf] }
  0x78   : > { %920 = vmatpush.bf16.msra.mxu3 %v1565_v34  ;;  %v1501_v44 = vor.u32 %v1655_v38, %v1498_v40  ;;  %872 = vmatpush.bf16.msra.mxu0 %v1497_v35  ;;  %v1541_v49 = vor.u32 %v1664_v46, %v1538_v47  ;;  %v1651_v50 = vld [vmem:[%s1964_s20 + $0x15c] sm:$0xf0]  ;;  %v1472_v51 = vld [vmem:[%s1964_s20 + $0x148] sm:$0xf]  ;;  %v1647_v55 = vld [vmem:[%s1964_s20 + $0x144] sm:$0xf] }
  0x79   : > { %v1652_v52 = vld [vmem:[%s1964_s20 + $0x164] sm:$0xf0]  ;;  %1590 = vmatmul.msk.bf16.vlgmr.msra.gmra.mxu2 %vm867_vm0, %v1990_v43  ;;  %928 = vmatpush.bf16.msra.mxu1 %v1505_v39  ;;  %v1465_v53 = vor.u32 %v1651_v50, %v1464_v48  ;;  %v1466_v56 = vld [vmem:[%s1964_s20 + $0x160] sm:$0xf0]  ;;  %v1656_v57 = vld [vmem:[%s1964_s20 + $0x18c] sm:$0xf] }
  0x7a   : > { %899 = vmatpush.bf16.msrb.mxu2 %v1533_v30  ;;  %v1473_v54 = vor.u32 %v1652_v52, %v1472_v51  ;;  %v1469_v58 = vor.u32 %v1647_v55, %v1466_v56  ;;  %v1506_v59 = vld [vmem:[%s1964_s20 + $0x1a8] sm:$0xf0]  ;;  %v1432_v60 = vld [vmem:[%s1964_s20 + $0x100] sm:$0xf]  ;;  %v1440_v63 = vld [vmem:[%s1964_s20 + $0x108] sm:$0xf] }
  0x7b   : > { %1591 = vmatmul.msk.bf16.vlgmr.msra.gmra.mxu3 %vm867_vm0, %v1990_v43  ;;  %v1643_v61 = vld [vmem:[%s1964_s20 + $0x11c] sm:$0xf0]  ;;  %v1509_v62 = vor.u32 %v1656_v57, %v1506_v59  ;;  %v1644_v0 = vld [vmem:[%s1964_s20 + $0x124] sm:$0xf0]  ;;  %v1639_v1 = vld [vmem:[%s1964_s20 + $0x104] sm:$0xf] }
  0x7c   : > { %948 = vmatpush.bf16.msrb.mxu3 %v1569_v45  ;;  %873 = vmatpush.bf16.msra.mxu0 %v1465_v53  ;;  %v1433_v2 = vor.u32 %v1643_v61, %v1432_v60  ;;  %v1434_v3 = vld [vmem:[%s1964_s20 + $0x120] sm:$0xf0]  ;;  %v1648_v4 = vld [vmem:[%s1964_s20 + $0x14c] sm:$0xf]  ;;  %v1441_v6 = vor.u32 %v1644_v0, %v1440_v63  ;;  %v1400_v7 = vld [vmem:[%s1964_s20 + $0xc0] sm:$0xf] }
  0x7d   : > { %v1474_v5 = vld [vmem:[%s1964_s20 + $0x168] sm:$0xf0]  ;;  %929 = vmatpush.bf16.msra.mxu1 %v1473_v54  ;;  %v1635_v8 = vld [vmem:[%s1964_s20 + $0xdc] sm:$0xf0]  ;;  %v1437_v9 = vor.u32 %v1639_v1, %v1434_v3  ;;  %v1408_v10 = vld [vmem:[%s1964_s20 + $0xc8] sm:$0xf] }
  0x7e   : > { %900 = vmatpush.bf16.msrb.mxu2 %v1501_v44  ;;  %v1636_v11 = vld [vmem:[%s1964_s20 + $0xe4] sm:$0xf0]  ;;  %v1477_v12 = vor.u32 %v1648_v4, %v1474_v5  ;;  %v1631_v13 = vld [vmem:[%s1964_s20 + $0xc4] sm:$0xf]  ;;  %v1401_v15 = vor.u32 %v1635_v8, %v1400_v7  ;;  %v1640_v16 = vld [vmem:[%s1964_s20 + $0x10c] sm:$0xf] }
  0x7f   : > { %v1402_v14 = vld [vmem:[%s1964_s20 + $0xe0] sm:$0xf0]  ;;  %v1442_v17 = vld [vmem:[%s1964_s20 + $0x128] sm:$0xf0]  ;;  %v1409_v18 = vor.u32 %v1636_v11, %v1408_v10  ;;  %v1368_v19 = vld [vmem:[%s1964_s20 + $0x80] sm:$0xf] }
  0x80   : > { %955 = vmatpush.bf16.msra.mxu3 %v1541_v49  ;;  %874 = vmatpush.bf16.msra.mxu0 %v1433_v2  ;;  %v1627_v20 = vld [vmem:[%s1964_s20 + $0x9c] sm:$0xf0]  ;;  %v1405_v21 = vor.u32 %v1631_v13, %v1402_v14  ;;  %v1376_v22 = vld [vmem:[%s1964_s20 + $0x88] sm:$0xf]  ;;  %v1445_v24 = vor.u32 %v1640_v16, %v1442_v17  ;;  %v1623_v25 = vld [vmem:[%s1964_s20 + $0x84] sm:$0xf] }
  0x81   : > { %930 = vmatpush.bf16.msra.mxu1 %v1441_v6  ;;  %v1628_v23 = vld [vmem:[%s1964_s20 + $0xa4] sm:$0xf0]  ;;  %v1370_v26 = vld [vmem:[%s1964_s20 + $0xa0] sm:$0xf0]  ;;  %v1369_v27 = vor.u32 %v1627_v20, %v1368_v19  ;;  %v1632_v28 = vld [vmem:[%s1964_s20 + $0xcc] sm:$0xf] }
  0x82   : > { %901 = vmatpush.bf16.msrb.mxu2 %v1469_v58  ;;  %v1410_v29 = vld [vmem:[%s1964_s20 + $0xe8] sm:$0xf0]  ;;  %v1377_v30 = vor.u32 %v1628_v23, %v1376_v22  ;;  %v1336_v31 = vld [vmem:[%s1964_s20 + $0x40] sm:$0xf]  ;;  %v1373_v33 = vor.u32 %v1623_v25, %v1370_v26  ;;  %v1344_v34 = vld [vmem:[%s1964_s20 + $0x48] sm:$0xf] }
  0x83   : > { %v1619_v32 = vld [vmem:[%s1964_s20 + $0x5c] sm:$0xf0]  ;;  %v1620_v35 = vld [vmem:[%s1964_s20 + $0x64] sm:$0xf0]  ;;  %v1413_v36 = vor.u32 %v1632_v28, %v1410_v29  ;;  %v1615_v37 = vld [vmem:[%s1964_s20 + $0x44] sm:$0xf] }
  0x84   : > { %956 = vmatpush.bf16.msra.mxu3 %v1509_v62  ;;  %875 = vmatpush.bf16.msra.mxu0 %v1401_v15  ;;  %v1338_v38 = vld [vmem:[%s1964_s20 + $0x60] sm:$0xf0]  ;;  %v1624_v39 = vld [vmem:[%s1964_s20 + $0x8c] sm:$0xf]  ;;  %v1337_v40 = vor.u32 %v1619_v32, %v1336_v31  ;;  %v1304_v42 = vld [vmem:[%s1964_s20] sm:$0xf]  ;;  %v1345_v45 = vor.u32 %v1620_v35, %v1344_v34 }
  0x85   : > { %931 = vmatpush.bf16.msra.mxu1 %v1409_v18  ;;  %v1378_v41 = vld [vmem:[%s1964_s20 + $0xa8] sm:$0xf0]  ;;  %v1611_v44 = vld [vmem:[%s1964_s20 + $0x1c] sm:$0xf0]  ;;  %v1312_v46 = vld [vmem:[%s1964_s20 + $0x8] sm:$0xf]  ;;  %v1341_v49 = vor.u32 %v1615_v37, %v1338_v38 }
  0x86   : > { %902 = vmatpush.bf16.msrb.mxu2 %v1437_v9  ;;  %v1612_v47 = vld [vmem:[%s1964_s20 + $0x24] sm:$0xf0]  ;;  %v1607_v48 = vld [vmem:[%s1964_s20 + $0x4] sm:$0xf]  ;;  %v1672_v51 = vld [vmem:[%s1964_s20 + $0x20c] sm:$0xf]  ;;  %v1381_v53 = vor.u32 %v1624_v39, %v1378_v41  ;;  %v1305_v57 = vor.u32 %v1611_v44, %v1304_v42 }
  0x87   : > { %v1306_v50 = vld [vmem:[%s1964_s20 + $0x20] sm:$0xf0]  ;;  %v1570_v52 = vld [vmem:[%s1964_s20 + $0x228] sm:$0xf0]  ;;  %v1544_v54 = vld [vmem:[%s1964_s20 + $0x1d0] sm:$0xf]  ;;  %v1313_v61 = vor.u32 %v1612_v47, %v1312_v46 }
  0x88   : > { %957 = vmatpush.bf16.msra.mxu3 %v1477_v12  ;;  %876 = vmatpush.bf16.msra.mxu0 %v1369_v27  ;;  %v1576_v55 = vld [vmem:[%s1964_s20 + $0x210] sm:$0xf]  ;;  %v1296_v59 = vld [vmem:[%s2227_s0] sm:$0xf]  ;;  %v1606_v60 = vld [vmem:[%s2227_s0 + $0x4] sm:$0xf0]  ;;  %v1573_v0 = vor.u32 %v1672_v51, %v1570_v52  ;;  %v1309_v1 = vor.u32 %v1607_v48, %v1306_v50 }
  0x89   : > { %932 = vmatpush.bf16.msra.mxu1 %v1377_v30  ;;  %v1677_v56 = vld [vmem:[%s1964_s20 + $0x22c] sm:$0xf0]  ;;  %v1616_v62 = vld [vmem:[%s1964_s20 + $0x4c] sm:$0xf]  ;;  %v1665_v2 = vld [vmem:[%s1964_s20 + $0x1d4] sm:$0xf]  ;;  %v2062_v6 = vor.u32 %v1606_v60, %v1296_v59 }
  0x8a   : > { %903 = vmatpush.bf16.msrb.mxu2 %v1405_v21  ;;  %v1669_v58 = vld [vmem:[%s1964_s20 + $0x1ec] sm:$0xf0]  ;;  %v1346_v63 = vld [vmem:[%s1964_s20 + $0x68] sm:$0xf0]  ;;  %v1546_v3 = vld [vmem:[%s1964_s20 + $0x1f0] sm:$0xf0]  ;;  %v1577_v4 = vor.u32 %v1677_v56, %v1576_v55 }
  0x8b   : > { %1592 = vmatmul.msk.bf16.vlgmr.msrb.gmra.mxu3 %vm867_vm0, %v1990_v43  ;;  %v1545_v5 = vor.u32 %v1669_v58, %v1544_v54  ;;  %v1349_v7 = vor.u32 %v1616_v62, %v1346_v63  ;;  %v1512_v8 = vld [vmem:[%s1964_s20 + $0x190] sm:$0xf]  ;;  %v1608_v10 = vld [vmem:[%s1964_s20 + $0xc] sm:$0xf]  ;;  %v1732_v11 = vmov 0   ;;  %v1549_v12 = vor.u32 %v1665_v2, %v1546_v3  ;;  %v486_v20 = vld [vmem:[%s2229_s2] sm:$0xff] }
  0x8c   : > { %958 = vmatpush.bf16.msra.mxu3 %v1445_v24  ;;  %877 = vmatpush.bf16.msra.mxu0 %v1337_v40  ;;  %v1661_v9 = vld [vmem:[%s1964_s20 + $0x1ac] sm:$0xf0]  ;;  %v1314_v13 = vld [vmem:[%s1964_s20 + $0x28] sm:$0xf0]  ;;  %v1657_v14 = vld [vmem:[%s1964_s20 + $0x194] sm:$0xf] }
  0x8d   : > { %933 = vmatpush.bf16.msra.mxu1 %v1345_v45  ;;  %1707 = vset.pattern.permute.xlu0 %v1732_v11  ;;  %v1514_v15 = vld [vmem:[%s1964_s20 + $0x1b0] sm:$0xf0]  ;;  %v1552_v16 = vld [vmem:[%s1964_s20 + $0x1d8] sm:$0xf]  ;;  %v1513_v19 = vor.u32 %v1661_v9, %v1512_v8  ;;  %v1317_v22 = vor.u32 %v1608_v10, %v1314_v13  ;;  %v1480_v23 = vld [vmem:[%s1964_s20 + $0x150] sm:$0xf] }
  0x8e   : > { %904 = vmatpush.bf16.msrb.mxu2 %v1373_v33  ;;  %v1670_v17 = vld [vmem:[%s1964_s20 + $0x1f4] sm:$0xf0]  ;;  %v1673_v18 = vld [vmem:[%s1964_s20 + $0x214] sm:$0xf]  ;;  %v1653_v24 = vld [vmem:[%s1964_s20 + $0x16c] sm:$0xf0]  ;;  %v1517_v26 = vor.u32 %v1657_v14, %v1514_v15  ;;  %490 = vperm.xlu0 %1707, %v486_v20  }
  0x8f   : > { %v1578_v21 = vld [vmem:[%s1964_s20 + $0x230] sm:$0xf0]  ;;  %v1553_v27 = vor.u32 %v1670_v17, %v1552_v16  ;;  %v1520_v30 = vld [vmem:[%s1964_s20 + $0x198] sm:$0xf]  ;;  %v1481_v32 = vor.u32 %v1653_v24, %v1480_v23  ;;  %v1448_v33 = vld [vmem:[%s1964_s20 + $0x110] sm:$0xf] }
  0x90   : > { %959 = vmatpush.bf16.msra.mxu3 %v1413_v36  ;;  %878 = vmatpush.bf16.msra.mxu0 %v1305_v57  ;;  %v1581_v25 = vor.u32 %v1673_v18, %v1578_v21  ;;  %v1649_v28 = vld [vmem:[%s1964_s20 + $0x154] sm:$0xf]  ;;  %v1662_v31 = vld [vmem:[%s1964_s20 + $0x1b4] sm:$0xf0]  ;;  %v1645_v34 = vld [vmem:[%s1964_s20 + $0x12c] sm:$0xf0] }
  0x91   : > { %934 = vmatpush.bf16.msra.mxu1 %v1313_v61  ;;  %v1482_v29 = vld [vmem:[%s1964_s20 + $0x170] sm:$0xf0]  ;;  %v1521_v36 = vor.u32 %v1662_v31, %v1520_v30  ;;  %v1488_v39 = vld [vmem:[%s1964_s20 + $0x158] sm:$0xf]  ;;  %v1449_v41 = vor.u32 %v1645_v34, %v1448_v33  ;;  %v487_v42 = vld [vmem:[%s2229_s2 + $0x8] sm:$0xff] }
  0x92   : > { %905 = vmatpush.bf16.msrb.mxu2 %v1341_v49  ;;  %v1485_v35 = vor.u32 %v1649_v28, %v1482_v29  ;;  %v1641_v37 = vld [vmem:[%s1964_s20 + $0x114] sm:$0xf]  ;;  %v1654_v40 = vld [vmem:[%s1964_s20 + $0x174] sm:$0xf0]  ;;  %v1416_v44 = vld [vmem:[%s1964_s20 + $0xd0] sm:$0xf] }
  0x93   : > { %879 = vmatmul.bf16.vlgmr.msra.gmra.mxu0 %v2062_v6  ;;  %v1450_v38 = vld [vmem:[%s1964_s20 + $0x130] sm:$0xf0]  ;;  %v1637_v45 = vld [vmem:[%s1964_s20 + $0xec] sm:$0xf0]  ;;  %v1489_v47 = vor.u32 %v1654_v40, %v1488_v39  ;;  %v1456_v50 = vld [vmem:[%s1964_s20 + $0x118] sm:$0xf] }
  0x94   : > { %960 = vmatpush.bf16.msra.mxu3 %v1381_v53  ;;  %976 = vmatpush.bf16.msrb.mxu0 %v1573_v0  ;;  %v1453_v46 = vor.u32 %v1641_v37, %v1450_v38  ;;  %v1633_v48 = vld [vmem:[%s1964_s20 + $0xd4] sm:$0xf]  ;;  %v1646_v51 = vld [vmem:[%s1964_s20 + $0x134] sm:$0xf0]  ;;  %v1417_v52 = vor.u32 %v1637_v45, %v1416_v44  ;;  %v1666_v53 = vld [vmem:[%s1964_s20 + $0x1dc] sm:$0xf] }
  0x95   : > { %1004 = vmatpush.bf16.msrb.mxu1 %v1577_v4  ;;  %v1418_v49 = vld [vmem:[%s1964_s20 + $0xf0] sm:$0xf0]  ;;  %v1554_v54 = vld [vmem:[%s1964_s20 + $0x1f8] sm:$0xf0]  ;;  %v1384_v55 = vld [vmem:[%s1964_s20 + $0x90] sm:$0xf]  ;;  %v1457_v58 = vor.u32 %v1646_v51, %v1456_v50 }
  0x96   : > { %906 = vmatpush.bf16.msrb.mxu2 %v1309_v1  ;;  %935 = vmatmul.bf16.vlgmr.msra.gmra.mxu1 %v2062_v6  ;;  %v1629_v56 = vld [vmem:[%s1964_s20 + $0xac] sm:$0xf0]  ;;  %v1421_v57 = vor.u32 %v1633_v48, %v1418_v49  ;;  %v1625_v59 = vld [vmem:[%s1964_s20 + $0x94] sm:$0xf]  ;;  %v1557_v60 = vor.u32 %v1666_v53, %v1554_v54  ;;  %v1424_v62 = vld [vmem:[%s1964_s20 + $0xd8] sm:$0xf] }
  0x97   : > { %495 = vperm.xlu0 %1707, %v487_v42   ;;  %v1386_v61 = vld [vmem:[%s1964_s20 + $0xb0] sm:$0xf0]  ;;  %v1638_v63 = vld [vmem:[%s1964_s20 + $0xf4] sm:$0xf0]  ;;  %v1385_v0 = vor.u32 %v1629_v56, %v1384_v55  ;;  %v1658_v1 = vld [vmem:[%s1964_s20 + $0x19c] sm:$0xf] }
  0x98   : > { %961 = vmatpush.bf16.msra.mxu3 %v1349_v7  ;;  %1011 = vmatpush.bf16.msra.mxu0 %v1549_v12  ;;  %v1522_v2 = vld [vmem:[%s1964_s20 + $0x1b8] sm:$0xf0]  ;;  %v1352_v3 = vld [vmem:[%s1964_s20 + $0x50] sm:$0xf]  ;;  %v1425_v7 = vor.u32 %v1638_v63, %v1424_v62  ;;  %v1617_v8 = vld [vmem:[%s1964_s20 + $0x54] sm:$0xf] }
  0x99   : > { %907 = vmatmul.bf16.vlgmr.msrb.gmra.mxu2 %v2062_v6  ;;  %1032 = vmatpush.bf16.msra.mxu1 %v1581_v25  ;;  %v1621_v4 = vld [vmem:[%s1964_s20 + $0x6c] sm:$0xf0]  ;;  %v1525_v9 = vor.u32 %v1658_v1, %v1522_v2  ;;  %v1354_v10 = vld [vmem:[%s1964_s20 + $0x70] sm:$0xf0]  ;;  %v1392_v11 = vld [vmem:[%s1964_s20 + $0x98] sm:$0xf] }
  0x9a   : > { %983 = vmatpush.bf16.msra.mxu2 %v1545_v5  ;;  %v1389_v5 = vor.u32 %v1625_v59, %v1386_v61  ;;  %v1630_v12 = vld [vmem:[%s1964_s20 + $0xb4] sm:$0xf0]  ;;  %v1353_v13 = vor.u32 %v1621_v4, %v1352_v3  ;;  %v1650_v14 = vld [vmem:[%s1964_s20 + $0x15c] sm:$0xf]  ;;  %v1320_v16 = vld [vmem:[%s1964_s20 + $0x10] sm:$0xf]  ;;  %v1357_v18 = vor.u32 %v1617_v8, %v1354_v10 }
  0x9b   : > { %v1490_v15 = vld [vmem:[%s1964_s20 + $0x178] sm:$0xf0]  ;;  %v1613_v17 = vld [vmem:[%s1964_s20 + $0x2c] sm:$0xf0]  ;;  %v1609_v20 = vld [vmem:[%s1964_s20 + $0x14] sm:$0xf] }
  0x9c   : > { %962 = vmatpush.bf16.msra.mxu3 %v1317_v22  ;;  %1012 = vmatpush.bf16.msra.mxu0 %v1517_v26  ;;  %v1584_v21 = vld [vmem:[%s1964_s20 + $0x218] sm:$0xf]  ;;  %v1493_v23 = vor.u32 %v1650_v14, %v1490_v15  ;;  %v1322_v24 = vld [vmem:[%s1964_s20 + $0x30] sm:$0xf0]  ;;  %v1642_v28 = vld [vmem:[%s1964_s20 + $0x11c] sm:$0xf] }
  0x9d   : > { %v1678_v22 = vld [vmem:[%s1964_s20 + $0x234] sm:$0xf0]  ;;  %v1458_v29 = vld [vmem:[%s1964_s20 + $0x138] sm:$0xf0]  ;;  %v1325_v33 = vor.u32 %v1609_v20, %v1322_v24  ;;  %v1096_v4 = vld [vmem:[%s2164_s10 + $0x8] sm:$0xff] }
  0x9e   : > { %984 = vmatpush.bf16.msra.mxu2 %v1513_v19  ;;  %v1393_v19 = vor.u32 %v1630_v12, %v1392_v11  ;;  %v1360_v25 = vld [vmem:[%s1964_s20 + $0x58] sm:$0xf]  ;;  %v1585_v30 = vor.u32 %v1678_v22, %v1584_v21  ;;  %v1674_v31 = vld [vmem:[%s1964_s20 + $0x21c] sm:$0xf]  ;;  %v1099_v12 = vld [vmem:[%s2164_s10 + $0x20] sm:$0xff]  ;;  %v1105_v14 = vunpack.c.l.bf16 %v1096_v4 }
  0x9f   : > { %963 = vmatmul.bf16.vlgmr.msra.gmra.mxu3 %v2062_v6  ;;  %v1622_v26 = vld [vmem:[%s1964_s20 + $0x74] sm:$0xf0]  ;;  %v1634_v38 = vld [vmem:[%s1964_s20 + $0xdc] sm:$0xf] }
  0xa0   : > { %1039 = vmatpush.bf16.msrb.mxu3 %v1553_v27  ;;  %1013 = vmatpush.bf16.msra.mxu0 %v1485_v35  ;;  %v1321_v27 = vor.u32 %v1613_v17, %v1320_v16  ;;  %v1361_v34 = vor.u32 %v1622_v26, %v1360_v25  ;;  %v1461_v35 = vor.u32 %v1642_v28, %v1458_v29  ;;  %v1614_v37 = vld [vmem:[%s1964_s20 + $0x34] sm:$0xf0]  ;;  %v1426_v39 = vld [vmem:[%s1964_s20 + $0xf8] sm:$0xf0]  ;;  %v1111_v16 = vunpack.c.l.bf16 %v1099_v12  ;;  %v1100_v29 = vld [vmem:[%s2164_s10 + $0x28] sm:$0xff] }
  0xa1   : > { %v1429_v42 = vor.u32 %v1634_v38, %v1426_v39  ;;  %v1626_v44 = vld [vmem:[%s1964_s20 + $0x9c] sm:$0xf]  ;;  %v1112_v25 = vunpack.c.h.bf16 %v1099_v12 }
  0xa2   : > { %985 = vmatpush.bf16.msra.mxu2 %v1481_v32  ;;  %v1586_v32 = vld [vmem:[%s1964_s20 + $0x238] sm:$0xf0] }
  0xa3   : > { %1593 = vmatmul.msk.bf16.vlgmr.msrb.gmra.mxu0 %vm867_vm0, %v1990_v43  ;;  %v1589_v40 = vor.u32 %v1674_v31, %v1586_v32  ;;  %v1394_v45 = vld [vmem:[%s1964_s20 + $0xb8] sm:$0xf0] }
  0xa4   : > { %1040 = vmatpush.bf16.msrb.mxu3 %v1521_v36  ;;  %1014 = vmatpush.bf16.msra.mxu0 %v1453_v46  ;;  %v1328_v36 = vld [vmem:[%s1964_s20 + $0x18] sm:$0xf]  ;;  %v1397_v46 = vor.u32 %v1626_v44, %v1394_v45  ;;  %v1362_v48 = vld [vmem:[%s1964_s20 + $0x78] sm:$0xf0] }
  0xa5   : > { %v1610_v50 = vld [vmem:[%s1964_s20 + $0x1c] sm:$0xf] }
  0xa6   : > { %986 = vmatpush.bf16.msra.mxu2 %v1449_v41  ;;  %1594 = vmatmul.msk.bf16.vlgmr.msrb.gmra.mxu1 %vm867_vm0, %v1990_v43  ;;  %v1329_v41 = vor.u32 %v1614_v37, %v1328_v36  ;;  %v1330_v51 = vld [vmem:[%s1964_s20 + $0x38] sm:$0xf0]  ;;  %v1113_v36 = vunpack.c.l.bf16 %v1100_v29 }
  0xa7   : > { %1067 = vmatpush.bf16.msrb.mxu1 %v1557_v60 }
  0xa8   : > { %1041 = vmatpush.bf16.msrb.mxu3 %v1489_v47  ;;  %1015 = vmatpush.bf16.msra.mxu0 %v1421_v57  ;;  %v1618_v47 = vld [vmem:[%s1964_s20 + $0x5c] sm:$0xf] }
  0xa9   : > { %v1365_v49 = vor.u32 %v1618_v47, %v1362_v48 }
  0xaa   : > { %987 = vmatpush.bf16.msra.mxu2 %v1417_v52  ;;  %v1333_v52 = vor.u32 %v1610_v50, %v1330_v51 }
  0xab   : > { %1068 = vmatpush.bf16.msrb.mxu1 %v1525_v9 }
  0xac   : > { %1042 = vmatpush.bf16.msrb.mxu3 %v1457_v58  ;;  %1016 = vmatpush.bf16.msra.mxu0 %v1389_v5 }
  0xae   : > { %988 = vmatpush.bf16.msra.mxu2 %v1385_v0 }
  0xaf   : > { %1069 = vmatpush.bf16.msrb.mxu1 %v1493_v23 }
  0xb0   : > { %1043 = vmatpush.bf16.msrb.mxu3 %v1425_v7  ;;  %1017 = vmatpush.bf16.msra.mxu0 %v1357_v18  ;;  %v1106_v18 = vunpack.c.h.bf16 %v1096_v4 }
  0xb2   : > { %989 = vmatpush.bf16.msra.mxu2 %v1353_v13 }
  0xb3   : > { %1070 = vmatpush.bf16.msrb.mxu1 %v1461_v35 }
  0xb4   : > { %1044 = vmatpush.bf16.msrb.mxu3 %v1393_v19  ;;  %1018 = vmatpush.bf16.msra.mxu0 %v1325_v33 }
  0xb6   : > { %990 = vmatpush.bf16.msra.mxu2 %v1321_v27  ;;  %1595 = vmatmul.msk.bf16.vlgmr.msra.gmra.mxu1 %vm867_vm0, %v1990_v43 }
  0xb7   : > { %1019 = vmatmul.bf16.vlgmr.msra.gmra.mxu0 %v2062_v6  ;;  %1071 = vmatpush.bf16.msrb.mxu1 %v1429_v42  ;;  %v1114_v42 = vunpack.c.h.bf16 %v1100_v29 }
  0xb8   : > { %1045 = vmatpush.bf16.msrb.mxu3 %v1361_v34  ;;  %1088 = vmatpush.bf16.msrb.mxu0 %v1589_v40 }
  0xb9   : > { %991 = vmatmul.bf16.vlgmr.msra.gmra.mxu2 %v2062_v6 }
  0xba   : > { %1060 = vmatpush.bf16.msrb.mxu2 %v1585_v30 }
  0xbb   : > { %1072 = vmatpush.bf16.msrb.mxu1 %v1397_v46 }
  0xbc   : > { %1046 = vmatpush.bf16.msrb.mxu3 %v1329_v41 }
  0xbf   : > { %1047 = vmatmul.bf16.vlgmr.msrb.gmra.mxu3 %v2062_v6  ;;  %1073 = vmatpush.bf16.msrb.mxu1 %v1365_v49 }
  0xc3   : > { %1074 = vmatpush.bf16.msrb.mxu1 %v1333_v52 }
  0xc6   : > { %1075 = vmatmul.bf16.vlgmr.msrb.gmra.mxu1 %v2062_v6 }
  0xc7   : > { %1597 = vmatmul.msk.bf16.vlgmr.msrb.gmra.mxu0 %vm867_vm0, %v1990_v43 }
  0xc9   : > { %1596 = vmatmul.msk.bf16.vlgmr.msrb.gmra.mxu2 %vm867_vm0, %v1990_v43  ;;  %v1095_v43 = vld [vmem:[%s2164_s10] sm:$0xff] }
  0xca   : > { %v1103_v63 = vunpack.c.l.bf16 %v1095_v43  ;;  %v1104_v7 = vunpack.c.h.bf16 %v1095_v43 }
  0xfc   : > { %v894_v54 = vpop.f32.mrf.mxu2 }
  0xfe   : > { %v922_v53 = vpop.f32.mrf.mxu3 }
 0x100   : > { %v2156_v57 = vpop.permute.xlu0 %490 }
 0x104   : > { %v896_v58 = vpop.f32.mrf.mxu2 }
 0x106   : > { %v924_v55 = vpop.f32.mrf.mxu3 }
 0x109   : > { %v2167_v0 = vpop.permute.xlu0 %495 }
 0x10e   : > { %v950_v56 = vpop.f32.mrf.mxu3 }
 0x110   : > { %v880_v59 = vpop.f32.mrf.mxu0 }
 0x111   : > { %v881_v61 = vadd.f32 %v880_v59, %v2156_v57 }
 0x113   : > { %v936_v60 = vpop.f32.mrf.mxu1  ;;  %v895_v62 = vadd.f32 %v894_v54, %v881_v61 }
 0x114   : > { %v937_v1 = vadd.f32 %v936_v60, %v2156_v57  ;;  %v1097_v60 = vld [vmem:[%s2164_s10 + $0x10] sm:$0xff] }
 0x115   : > { %v1119_v9 = vadd.f32 %v1103_v63, %v895_v62 }
 0x116   : > { %v952_v6 = vpop.f32.mrf.mxu3  ;;  %v951_v13 = vadd.f32 %v950_v56, %v937_v1  ;;  %v1107_v1 = vunpack.c.l.bf16 %v1097_v60 }
 0x117   : > { %v1135_v19 = vmax.f32 %v1119_v9, 0.0 }
 0x118   : > { %v882_v3 = vpop.f32.mrf.mxu0  ;;  %v1121_v23 = vadd.f32 %v1105_v14, %v951_v13 }
 0x119   : > { %v883_v11 = vadd.f32 %v882_v3, %v2167_v0 }
 0x11a   : > { %v1137_v37 = vmax.f32 %v1121_v23, 0.0 }
 0x11b   : > { %v938_v8 = vpop.f32.mrf.mxu1  ;;  %v897_v21 = vadd.f32 %v896_v58, %v883_v11 }
 0x11c   : > { %v908_v2 = vpop.f32.mrf.mxu2  ;;  %v939_v28 = vadd.f32 %v938_v8, %v2167_v0 }
 0x11d   : > { %v909_v5 = vadd.f32 %v908_v2, %v2156_v57  ;;  %v1127_v33 = vadd.f32 %v1111_v16, %v897_v21  ;;  %v1098_v21 = vld [vmem:[%s2164_s10 + $0x18] sm:$0xff] }
 0x11e   : > { %v953_v38 = vadd.f32 %v952_v6, %v939_v28  ;;  %v1108_v6 = vunpack.c.h.bf16 %v1097_v60 }
 0x11f   : > { %v923_v10 = vadd.f32 %v922_v53, %v909_v5  ;;  %v1143_v44 = vmax.f32 %v1127_v33, 0.0 }
 0x120   : > { %v978_v26 = vpop.f32.mrf.mxu0  ;;  %v1129_v49 = vadd.f32 %v1113_v36, %v953_v38 }
 0x121   : > { %v1120_v15 = vadd.f32 %v1104_v7, %v923_v10  ;;  %v1101_v7 = vld [vmem:[%s2164_s10 + $0x30] sm:$0xff] }
 0x122   : > { %v964_v17 = vpop.f32.mrf.mxu3  ;;  %v1145_v54 = vmax.f32 %v1129_v49, 0.0  ;;  %v1116_v13 = vunpack.c.h.bf16 %v1101_v7 }
 0x123   : > { %v1136_v20 = vmax.f32 %v1120_v15, 0.0  ;;  %v965_v22 = vadd.f32 %v964_v17, %v2156_v57  ;;  %v1006_v32 = vpop.f32.mrf.mxu1  ;;  %v1115_v17 = vunpack.c.l.bf16 %v1101_v7 }
 0x124   : > { %v910_v24 = vpop.f32.mrf.mxu2 }
 0x125   : > { %v1151_v27 = vpack.c.bf16 %v1136_v20, %v1135_v19  ;;  %v911_v30 = vadd.f32 %v910_v24, %v2167_v0  ;;  %v979_v31 = vadd.f32 %v978_v26, %v965_v22 }
 0x127   : > { %1159 = vst [vmem:[%s2179_s15] sm:$0xff] %v1151_v27  ;;  %v925_v34 = vadd.f32 %v924_v55, %v911_v30  ;;  %v1122_v35 = vadd.f32 %v1106_v18, %v979_v31  ;;  %v1110_v27 = vunpack.c.h.bf16 %v1098_v21  ;;  %v1109_v30 = vunpack.c.l.bf16 %v1098_v21 }
 0x128   : > { %v980_v48 = vpop.f32.mrf.mxu0 }
 0x129   : > { %v1128_v39 = vadd.f32 %v1112_v25, %v925_v34  ;;  %v1138_v40 = vmax.f32 %v1122_v35, 0.0 }
 0x12a   : > { %v966_v41 = vpop.f32.mrf.mxu3 }
 0x12b   : > { %v1144_v45 = vmax.f32 %v1128_v39, 0.0  ;;  %v1152_v46 = vpack.c.bf16 %v1138_v40, %v1137_v37  ;;  %v967_v47 = vadd.f32 %v966_v41, %v2167_v0  ;;  %v1008_v52 = vpop.f32.mrf.mxu1  ;;  %v1102_v37 = vld [vmem:[%s2164_s10 + $0x38] sm:$0xff] }
 0x12d   : > { %v1155_v50 = vpack.c.bf16 %v1144_v45, %v1143_v44  ;;  %1160 = vst [vmem:[%s2179_s15 + $0x8] sm:$0xff] %v1152_v46  ;;  %v981_v51 = vadd.f32 %v980_v48, %v967_v47  ;;  %v1117_v47 = vunpack.c.l.bf16 %v1102_v37 }
 0x12f   : > { %1163 = vst [vmem:[%s2179_s15 + $0x20] sm:$0xff] %v1155_v50  ;;  %v1130_v53 = vadd.f32 %v1114_v42, %v981_v51  ;;  %v1118_v42 = vunpack.c.h.bf16 %v1102_v37 }
 0x131   : > { %v1146_v55 = vmax.f32 %v1130_v53, 0.0 }
 0x133   : > { %v1156_v56 = vpack.c.bf16 %v1146_v55, %v1145_v54  ;;  %v1034_v59 = vpop.f32.mrf.mxu1 }
 0x134   : > { %v1020_v58 = vpop.f32.mrf.mxu0 }
 0x135   : > { %1164 = vst [vmem:[%s2179_s15 + $0x28] sm:$0xff] %v1156_v56  ;;  %v1021_v61 = vadd.f32 %v1020_v58, %v2156_v57  ;;  %v1191_v56 = vld [vmem:[%s2179_s15 + $0x8] sm:$0xff] (%p1792_p5) }
 0x136   : > { %1192 = vst [vmem:[%s1176_s14 + $0x8] sm:$0xff] (%p1792_p5), %v1191_v56  ;;  %v1197_v60 = vld [vmem:[%s2179_s15 + $0x20] sm:$0xff] (%p1792_p5) }
 0x137   : > { %v1035_v43 = vadd.f32 %v1034_v59, %v1021_v61  ;;  %1198 = vst [vmem:[%s1176_s14 + $0x40] sm:$0xff] (%p1792_p5), %v1197_v60 }
 0x139   : > { %v1124_v2 = vadd.f32 %v1108_v6, %v1035_v43 }
 0x13b   : > { %v1036_v5 = vpop.f32.mrf.mxu1  ;;  %v1140_v10 = vmax.f32 %v1124_v2, 0.0 }
 0x13c   : > { %v992_v62 = vpop.f32.mrf.mxu2  ;;  %v1022_v4 = vpop.f32.mrf.mxu0  ;;  %v1199_v61 = vld [vmem:[%s2179_s15 + $0x28] sm:$0xff] (%p1792_p5) }
 0x13d   : > { %v993_v63 = vadd.f32 %v992_v62, %v2156_v57  ;;  %v1023_v9 = vadd.f32 %v1022_v4, %v2167_v0  ;;  %1200 = vst [vmem:[%s1176_s14 + $0x48] sm:$0xff] (%p1792_p5), %v1199_v61 }
 0x13f   : > { %v1007_v3 = vadd.f32 %v1006_v32, %v993_v63  ;;  %v1037_v12 = vadd.f32 %v1036_v5, %v1023_v9 }
 0x141   : > { %v1123_v8 = vadd.f32 %v1107_v1, %v1007_v3  ;;  %v1132_v19 = vadd.f32 %v1116_v13, %v1037_v12 }
 0x142   : > { %v1048_v18 = vpop.f32.mrf.mxu3 }
 0x143   : > { %v1139_v11 = vmax.f32 %v1123_v8, 0.0  ;;  %v1049_v22 = vadd.f32 %v1048_v18, %v2156_v57  ;;  %v1076_v24 = vpop.f32.mrf.mxu1  ;;  %v1148_v28 = vmax.f32 %v1132_v19, 0.0 }
 0x144   : > { %v994_v14 = vpop.f32.mrf.mxu2  ;;  %v1090_v25 = vpop.f32.mrf.mxu0  ;;  %v1077_v26 = vadd.f32 %v1076_v24, %v2156_v57 }
 0x145   : > { %v1153_v15 = vpack.c.bf16 %v1140_v10, %v1139_v11  ;;  %v995_v16 = vadd.f32 %v994_v14, %v2167_v0 }
 0x146   : > { %v1091_v31 = vadd.f32 %v1090_v25, %v1077_v26 }
 0x147   : > { %1161 = vst [vmem:[%s2179_s15 + $0x10] sm:$0xff] %v1153_v15  ;;  %v1009_v20 = vadd.f32 %v1008_v52, %v995_v16 }
 0x148   : > { %v1126_v35 = vadd.f32 %v1110_v27, %v1091_v31 }
 0x149   : > { %v1131_v23 = vadd.f32 %v1115_v17, %v1009_v20 }
 0x14a   : > { %v1142_v38 = vmax.f32 %v1126_v35, 0.0  ;;  %v1050_v39 = vpop.f32.mrf.mxu3 }
 0x14b   : > { %v1147_v29 = vmax.f32 %v1131_v23, 0.0  ;;  %v1078_v41 = vpop.f32.mrf.mxu1  ;;  %v1051_v44 = vadd.f32 %v1050_v39, %v2167_v0 }
 0x14c   : > { %v1062_v32 = vpop.f32.mrf.mxu2  ;;  %v1079_v57 = vadd.f32 %v1078_v41, %v2167_v0  ;;  %v1092_v46 = vpop.f32.mrf.mxu0  ;;  %v1189_v0 = vld [vmem:[%s2179_s15] sm:$0xff] (%p1792_p5) }
 0x14d   : > { %v1157_v33 = vpack.c.bf16 %v1148_v28, %v1147_v29  ;;  %v1063_v34 = vadd.f32 %v1062_v32, %v1049_v22  ;;  %1190 = vst [vmem:[%s1176_s14] sm:$0xff] (%p1792_p5), %v1189_v0 }
 0x14e   : > { %v1093_v48 = vadd.f32 %v1092_v46, %v1079_v57  ;;  %v1193_v58 = vld [vmem:[%s2179_s15 + $0x10] sm:$0xff] (%p1792_p5) }
 0x14f   : > { %1165 = vst [vmem:[%s2179_s15 + $0x30] sm:$0xff] %v1157_v33  ;;  %v1125_v36 = vadd.f32 %v1109_v30, %v1063_v34 }
 0x150   : > { %v1134_v51 = vadd.f32 %v1118_v42, %v1093_v48  ;;  %1194 = vst [vmem:[%s1176_s14 + $0x10] sm:$0xff] (%p1792_p5), %v1193_v58 }
 0x151   : > { %v1141_v40 = vmax.f32 %v1125_v36, 0.0 }
 0x152   : > { %v1150_v53 = vmax.f32 %v1134_v51, 0.0 }
 0x153   : > { %v1154_v45 = vpack.c.bf16 %v1142_v38, %v1141_v40 }
 0x154   : > { %v1064_v49 = vpop.f32.mrf.mxu2 }
 0x155   : > { %1162 = vst [vmem:[%s2179_s15 + $0x18] sm:$0xff] %v1154_v45  ;;  %v1065_v50 = vadd.f32 %v1064_v49, %v1051_v44 }
 0x156   : > { %v1201_v43 = vld [vmem:[%s2179_s15 + $0x30] sm:$0xff] (%p1792_p5) }
 0x157   : > { %v1133_v52 = vadd.f32 %v1117_v47, %v1065_v50  ;;  %1202 = vst [vmem:[%s1176_s14 + $0x50] sm:$0xff] (%p1792_p5), %v1201_v43 }
 0x159   : > { %v1149_v54 = vmax.f32 %v1133_v52, 0.0  ;;  %1173 = sbr.rel (!%p1792_p5) target bundleno = 358 (0x166), region = 86 }
 0x15b   : > { %v1158_v55 = vpack.c.bf16 %v1150_v53, %v1149_v54 }
 0x15c   : > { %v1195_v59 = vld [vmem:[%s2179_s15 + $0x18] sm:$0xff] (%p1792_p5) }
 0x15d   : > { %1166 = vst [vmem:[%s2179_s15 + $0x38] sm:$0xff] %v1158_v55 }
 0x15e   : > { %1196 = vst [vmem:[%s1176_s14 + $0x18] sm:$0xff] %v1195_v59 }
 0x164   : > { %v1203_v6 = vld [vmem:[%s2179_s15 + $0x38] sm:$0xff] }
 0x165   : > { %1204 = vst [vmem:[%s1176_s14 + $0x58] sm:$0xff] %v1203_v6 }
 0x166 PF: > { %p11_p10 = scmp.ge.s32.totalorder %s1775_s19, 4   ;;  %s2234_s15 = smov %s1726_s16 }
 0x167   : > { %s2235_s16 = smov %s1786_s22  ;;  %s2236_s17 = smov %s1775_s19 }
 0x168   :  { %13 = sbr.rel (!%p11_p10) target bundleno = 2 (0x2), region = 148 }

// kernel: cifar_resnet_forward.10
= control target key start
LH: loop header
LB: loop body
LE: loop exit
PB: predicated region body
PF: predicated region fallthrough
CT: control target
= control target key end

     0   :  { %s1092_s15 = smov 0   ;;  %s1094_s16 = smov 0   ;;  %s1344_s0 = inlined_call_operand.vmem [shape: bf16[64,144], index: 0, kind: input, shape index: {}]   ;;  %s1345_s1 = inlined_call_operand.vmem [shape: bf16[144,512], index: 1, kind: input, shape index: {}]   ;;  %s1346_s2 = inlined_call_operand.vmem [shape: f32[64,1], index: 2, kind: input, shape index: {}]   ;;  %s1347_s3 = inlined_call_operand.vmem [shape: bf16[32,512], index: 3, kind: output, shape index: {0}]   ;;  %s1348_s4 = inlined_call_operand.vmem [shape: bf16[32,512], index: 4, kind: output, shape index: {1}]  }
   0x1   :  { %s1096_s17 = smov 0  }
   0x2 LB: > { %s1108_s18 = sadd.s32 4294967295, %s1064_s17   ;;  %s1111_s19 = sadd.s32 1, %s1064_s17   ;;  %s1064_s17 = sphi %s1096_s17, %s1352_s17   ;;  %s1060_s16 = sphi %s1094_s16, %s1351_s16   ;;  %s1056_s15 = sphi %s1092_s15, %s1350_s15  }
   0x3   : > { %s40_s20 = ssub.s32 %s1064_s17, %s1111_s19  ;;  %s43_s21 = sadd.s32 1, %s1060_s16 }
   0x4   : > { %p41_p0 = scmp.eq.s32.totalorder %s40_s20, 0  ;;  %p50_p1 = scmp.ne.s32.totalorder %s1060_s16, %s1056_s15 }
   0x5   : > { %p51_p2 = scmp.eq.s32.totalorder %s1064_s17, 0  ;;  %p101_p3 = scmp.eq.s32.totalorder %s1108_s18, 1 }
   0x6   : > { %s1121_s22 = scalar_select %p41_p0, %s1060_s16, %s43_s21  }
   0x7   : > { %p52_p4 = por %p51_p2, %p50_p1  ;;  %p1123_p5 = por %p101_p3, %p50_p1 }
   0x8   : > { %p857_p6 = scmp.ge.s32.totalorder %s1064_s17, 2 }
   0xa   : > { %155 = sbr.rel (%p857_p6) target bundleno = 37 (0x25), region = 24 }
   0xf   : > { %158 = sbr.rel (!%p52_p4) target bundleno = 37 (0x25), region = 28  ;;  %s160_s24 = sand.u32 (%p52_p4), 1, %s1060_s16  }
  0x10   : > { %s983_s25 = sshll.u32 (%p52_p4), %s1064_s17, 3  ;;  %s1012_s26 = smul.u32 (%p52_p4), 144, %s160_s24 }
  0x11   : > { %s1133_s29 = scalar_lea.vmem (%p52_p4), %s1345_s1, %s983_s25 }
  0x12   : > { %v228_v0 = vld [vmem:[%s1133_s29] sm:$0xff] (%p52_p4)  ;;  %v230_v1 = vld [vmem:[%s1133_s29 + $0x10] sm:$0xff] (%p52_p4)  ;;  %s1138_s30 = scalar_lea.vmem (%p52_p4), [#allocation2], %s1012_s26 }
  0x13   : > { %v232_v2 = vld [vmem:[%s1133_s29 + $0x20] sm:$0xff] (%p52_p4)  ;;  %229 = vst [vmem:[%s1138_s30] sm:$0xff] (%p52_p4), %v228_v0  ;;  %v234_v3 = vld [vmem:[%s1133_s29 + $0x30] sm:$0xff] (%p52_p4) }
  0x14   : > { %231 = vst [vmem:[%s1138_s30 + $0x8] sm:$0xff] %v230_v1  ;;  %v236_v4 = vld [vmem:[%s1133_s29 + $0x40] sm:$0xff]  ;;  %v238_v5 = vld [vmem:[%s1133_s29 + $0x50] sm:$0xff] }
  0x15   : > { %233 = vst [vmem:[%s1138_s30 + $0x10] sm:$0xff] %v232_v2  ;;  %v240_v6 = vld [vmem:[%s1133_s29 + $0x60] sm:$0xff]  ;;  %v242_v7 = vld [vmem:[%s1133_s29 + $0x70] sm:$0xff] }
  0x16   : > { %235 = vst [vmem:[%s1138_s30 + $0x18] sm:$0xff] %v234_v3  ;;  %v244_v8 = vld [vmem:[%s1133_s29 + $0x80] sm:$0xff]  ;;  %v246_v9 = vld [vmem:[%s1133_s29 + $0x90] sm:$0xff] }
  0x17   : > { %237 = vst [vmem:[%s1138_s30 + $0x20] sm:$0xff] %v236_v4  ;;  %v248_v10 = vld [vmem:[%s1133_s29 + $0xa0] sm:$0xff]  ;;  %v250_v11 = vld [vmem:[%s1133_s29 + $0xb0] sm:$0xff] }
  0x18   : > { %239 = vst [vmem:[%s1138_s30 + $0x28] sm:$0xff] %v238_v5  ;;  %v252_v12 = vld [vmem:[%s1133_s29 + $0xc0] sm:$0xff]  ;;  %v254_v13 = vld [vmem:[%s1133_s29 + $0xd0] sm:$0xff] }
  0x19   : > { %241 = vst [vmem:[%s1138_s30 + $0x30] sm:$0xff] %v240_v6  ;;  %v256_v14 = vld [vmem:[%s1133_s29 + $0xe0] sm:$0xff]  ;;  %v258_v15 = vld [vmem:[%s1133_s29 + $0xf0] sm:$0xff] }
  0x1a   : > { %243 = vst [vmem:[%s1138_s30 + $0x38] sm:$0xff] %v242_v7  ;;  %v260_v16 = vld [vmem:[%s1133_s29 + $0x100] sm:$0xff]  ;;  %v262_v17 = vld [vmem:[%s1133_s29 + $0x110] sm:$0xff] }
  0x1b   : > { %245 = vst [vmem:[%s1138_s30 + $0x40] sm:$0xff] %v244_v8 }
  0x1c   : > { %247 = vst [vmem:[%s1138_s30 + $0x48] sm:$0xff] %v246_v9 }
  0x1d   : > { %249 = vst [vmem:[%s1138_s30 + $0x50] sm:$0xff] %v248_v10 }
  0x1e   : > { %251 = vst [vmem:[%s1138_s30 + $0x58] sm:$0xff] %v250_v11 }
  0x1f   : > { %253 = vst [vmem:[%s1138_s30 + $0x60] sm:$0xff] %v252_v12 }
  0x20   : > { %255 = vst [vmem:[%s1138_s30 + $0x68] sm:$0xff] %v254_v13 }
  0x21   : > { %257 = vst [vmem:[%s1138_s30 + $0x70] sm:$0xff] %v256_v14 }
  0x22   : > { %259 = vst [vmem:[%s1138_s30 + $0x78] sm:$0xff] %v258_v15 }
  0x23   : > { %261 = vst [vmem:[%s1138_s30 + $0x80] sm:$0xff] %v260_v16 }
  0x24   : > { %263 = vst [vmem:[%s1138_s30 + $0x88] sm:$0xff] %v262_v17 }
  0x25 PF: > { %p860_p7 = scmp.ge.s32.totalorder %s1064_s17, 1  ;;  %p268_p8 = scmp.lt.s32.totalorder %s1064_s17, 3 }
  0x27   : > { %p269_p9 = pnand %p860_p7, %p268_p8 }
  0x28   : > { %s275_s5 = sand.u32 (!%p269_p9), 1, %s1056_s15  }
  0x29   : > { %272 = sbr.rel (%p269_p9) target bundleno = 284 (0x11c), region = 66  ;;  %s1298_s24 = sshll.u32 (!%p269_p9), %s275_s5, 5 }
  0x2a   : > { %s1013_s6 = smul.u32 (!%p269_p9), 144, %s275_s5  ;;  %s1301_s25 = scalar_lea.vmem (!%p269_p9), [#allocation3], %s1298_s24 }
  0x2b   : > { %s1308_s15 = scalar_lea.vmem (!%p269_p9), [#allocation4], %s1298_s24 }
  0x2c   : > { %s1178_s7 = scalar_lea.vmem (!%p269_p9), [#allocation2], %s1013_s6 }
  0x2e   : > { %v953_v18 = vld [vmem:[%s1178_s7 + $0x70] sm:$0xf]  ;;  %v1007_v19 = vld [vmem:[%s1178_s7 + $0x74] sm:$0xf0]  ;;  %v1006_v20 = vld [vmem:[%s1178_s7 + $0x74] sm:$0xf] }
  0x2f   : > { %v954_v21 = vor.u32 %v1007_v19, %v953_v18  ;;  %v955_v22 = vld [vmem:[%s1178_s7 + $0x78] sm:$0xf0]  ;;  %v945_v23 = vld [vmem:[%s1178_s7 + $0x60] sm:$0xf]  ;;  %v1005_v24 = vld [vmem:[%s1178_s7 + $0x64] sm:$0xf0] }
  0x30   : > { %v958_v25 = vor.u32 %v1006_v20, %v955_v22  ;;  %v1004_v26 = vld [vmem:[%s1178_s7 + $0x64] sm:$0xf]  ;;  %v947_v27 = vld [vmem:[%s1178_s7 + $0x68] sm:$0xf0]  ;;  %v946_v28 = vor.u32 %v1005_v24, %v945_v23  ;;  %v937_v30 = vld [vmem:[%s1178_s7 + $0x50] sm:$0xf] }
  0x31   : > { %520 = vmatpush.bf16.msra.mxu0 %v954_v21  ;;  %v950_v29 = vor.u32 %v1004_v26, %v947_v27  ;;  %v1003_v31 = vld [vmem:[%s1178_s7 + $0x54] sm:$0xf0]  ;;  %v1002_v32 = vld [vmem:[%s1178_s7 + $0x54] sm:$0xf]  ;;  %v939_v33 = vld [vmem:[%s1178_s7 + $0x58] sm:$0xf0] }
  0x32   : > { %578 = vmatpush.bf16.msra.mxu2 %v958_v25  ;;  %v938_v34 = vor.u32 %v1003_v31, %v937_v30  ;;  %v929_v35 = vld [vmem:[%s1178_s7 + $0x40] sm:$0xf]  ;;  %v984_v36 = vld [vmem:[%s1344_s0 + $0x4] sm:$0xf]  ;;  %v867_v37 = vld [vmem:[%s1344_s0 + $0x8] sm:$0xf0]  ;;  %v942_v38 = vor.u32 %v1002_v32, %v939_v33 }
  0x33   : > { %v1001_v39 = vld [vmem:[%s1178_s7 + $0x44] sm:$0xf0]  ;;  %v1008_v40 = vld [vmem:[%s1178_s7 + $0x84] sm:$0xf]  ;;  %v963_v41 = vld [vmem:[%s1178_s7 + $0x88] sm:$0xf0]  ;;  %v870_v45 = vor.u32 %v984_v36, %v867_v37 }
  0x34   : > { %v1000_v42 = vld [vmem:[%s1178_s7 + $0x44] sm:$0xf]  ;;  %v931_v43 = vld [vmem:[%s1178_s7 + $0x48] sm:$0xf0]  ;;  %v966_v44 = vor.u32 %v1008_v40, %v963_v41  ;;  %v961_v46 = vld [vmem:[%s1178_s7 + $0x80] sm:$0xf]  ;;  %v930_v47 = vor.u32 %v1001_v39, %v929_v35 }
  0x35   : > { %521 = vmatpush.bf16.msra.mxu0 %v946_v28  ;;  %vm507_vm0 = vcmask 130048   ;;  %v1009_v48 = vld [vmem:[%s1178_s7 + $0x84] sm:$0xf0]  ;;  %v934_v49 = vor.u32 %v1000_v42, %v931_v43  ;;  %v921_v50 = vld [vmem:[%s1178_s7 + $0x30] sm:$0xf]  ;;  %v1066_v56 = vmov 0  }
  0x36   : > { %579 = vmatpush.bf16.msra.mxu2 %v950_v29  ;;  %614 = vmatpush.bf16.msra.mxu3 %v966_v44  ;;  %v999_v51 = vld [vmem:[%s1178_s7 + $0x34] sm:$0xf0]  ;;  %v962_v52 = vor.u32 %v1009_v48, %v961_v46  ;;  %v333_v53 = vld [vmem:[%s1346_s2] sm:$0xff]  ;;  %v923_v55 = vld [vmem:[%s1178_s7 + $0x38] sm:$0xf0]  ;;  %s1010_s5 = sshll.u32 (%p1123_p5), %s1108_s18, 3 }
  0x37   : > { %v998_v54 = vld [vmem:[%s1178_s7 + $0x34] sm:$0xf]  ;;  %1039 = vset.pattern.permute.xlu0 %v1066_v56  ;;  %1040 = vset.pattern.permute.xlu1 %v1066_v56  ;;  %v922_v57 = vor.u32 %v999_v51, %v921_v50  ;;  %v913_v59 = vld [vmem:[%s1178_s7 + $0x20] sm:$0xf]  ;;  %v997_v60 = vld [vmem:[%s1178_s7 + $0x24] sm:$0xf0]  ;;  %s673_s28 = scalar_lea.vmem (%p1123_p5), %s1347_s3, %s1010_s5 }
  0x38   : > { %556 = vmatpush.bf16.msra.mxu1 %v962_v52  ;;  %343 = vperm.xlu0 %1039, %v333_v53   ;;  %v926_v58 = vor.u32 %v998_v54, %v923_v55  ;;  %v996_v61 = vld [vmem:[%s1178_s7 + $0x24] sm:$0xf]  ;;  %v915_v62 = vld [vmem:[%s1178_s7 + $0x28] sm:$0xf0]  ;;  %v914_v63 = vor.u32 %v997_v60, %v913_v59  ;;  %v905_v0 = vld [vmem:[%s1178_s7 + $0x10] sm:$0xf] }
  0x39   : > { %522 = vmatpush.bf16.msra.mxu0 %v938_v34  ;;  %971 = vmatmul.msk.bf16.vlgmr.msra.gmra.mxu3 %vm507_vm0, %v870_v45  ;;  %v918_v1 = vor.u32 %v996_v61, %v915_v62  ;;  %v995_v2 = vld [vmem:[%s1178_s7 + $0x14] sm:$0xf0]  ;;  %v335_v4 = vld [vmem:[%s1346_s2 + $0x10] sm:$0xff]  ;;  %v907_v6 = vld [vmem:[%s1178_s7 + $0x18] sm:$0xf0] }
  0x3a   : > { %580 = vmatpush.bf16.msra.mxu2 %v942_v38  ;;  %1041 = vset.pattern.permute.xlu2 %v1066_v56  ;;  %v334_v3 = vld [vmem:[%s1346_s2 + $0x8] sm:$0xff]  ;;  %v994_v5 = vld [vmem:[%s1178_s7 + $0x14] sm:$0xf]  ;;  %v906_v7 = vor.u32 %v995_v2, %v905_v0  ;;  %v875_v9 = vld [vmem:[%s1344_s0 + $0x18] sm:$0xf0] }
  0x3b   : > { %967 = vmatmul.msk.bf16.vlgmr.msra.gmra.mxu1 %vm507_vm0, %v870_v45  ;;  %353 = vperm.xlu1 %1040, %v335_v4   ;;  %v986_v8 = vld [vmem:[%s1344_s0 + $0x14] sm:$0xf]  ;;  %v910_v10 = vor.u32 %v994_v5, %v907_v6  ;;  %v897_v11 = vld [vmem:[%s1178_s7] sm:$0xf]  ;;  %v993_v12 = vld [vmem:[%s1178_s7 + $0x4] sm:$0xf0] }
  0x3c   : > { %v992_v13 = vld [vmem:[%s1178_s7 + $0x4] sm:$0xf]  ;;  %v899_v14 = vld [vmem:[%s1178_s7 + $0x8] sm:$0xf0]  ;;  %v878_v15 = vor.u32 %v986_v8, %v875_v9  ;;  %v898_v16 = vor.u32 %v993_v12, %v897_v11  ;;  %v865_v17 = vld [vmem:[%s1344_s0] sm:$0xf] }
  0x3d   : > { %523 = vmatpush.bf16.msra.mxu0 %v930_v47  ;;  %v985_v18 = vld [vmem:[%s1344_s0 + $0x4] sm:$0xf0]  ;;  %v902_v19 = vor.u32 %v992_v13, %v899_v14  ;;  %v336_v21 = vld [vmem:[%s1346_s2 + $0x18] sm:$0xff]  ;;  %v988_v22 = vld [vmem:[%s1344_s0 + $0x24] sm:$0xf] }
  0x3e   : > { %581 = vmatpush.bf16.msra.mxu2 %v934_v49  ;;  %v866_v20 = vor.u32 %v985_v18, %v865_v17  ;;  %v883_v23 = vld [vmem:[%s1344_s0 + $0x28] sm:$0xf0]  ;;  %v873_v25 = vld [vmem:[%s1344_s0 + $0x10] sm:$0xf]  ;;  %v987_v26 = vld [vmem:[%s1344_s0 + $0x14] sm:$0xf0] }
  0x3f   : > { %v886_v24 = vor.u32 %v988_v22, %v883_v23  ;;  %v874_v27 = vor.u32 %v987_v26, %v873_v25  ;;  %v340_v28 = vld [vmem:[%s1346_s2 + $0x38] sm:$0xff]  ;;  %v339_v29 = vld [vmem:[%s1346_s2 + $0x30] sm:$0xff]  ;;  %v337_v30 = vld [vmem:[%s1346_s2 + $0x20] sm:$0xff] }
  0x40   : > { %348 = vperm.xlu0 %1039, %v334_v3   ;;  %363 = vperm.xlu2 %1041, %v337_v30   ;;  %v990_v31 = vld [vmem:[%s1344_s0 + $0x34] sm:$0xf]  ;;  %v891_v32 = vld [vmem:[%s1344_s0 + $0x38] sm:$0xf0]  ;;  %v338_v34 = vld [vmem:[%s1346_s2 + $0x28] sm:$0xff] }
  0x41   : > { %524 = vmatpush.bf16.msra.mxu0 %v922_v57  ;;  %v894_v33 = vor.u32 %v990_v31, %v891_v32  ;;  %v881_v35 = vld [vmem:[%s1344_s0 + $0x20] sm:$0xf]  ;;  %v989_v36 = vld [vmem:[%s1344_s0 + $0x24] sm:$0xf0]  ;;  %v889_v38 = vld [vmem:[%s1344_s0 + $0x30] sm:$0xf] }
  0x42   : > { %582 = vmatpush.bf16.msra.mxu2 %v926_v58  ;;  %v882_v37 = vor.u32 %v989_v36, %v881_v35  ;;  %v991_v39 = vld [vmem:[%s1344_s0 + $0x34] sm:$0xf0] }
  0x43   : > { %358 = vperm.xlu1 %1040, %v336_v21   ;;  %v890_v40 = vor.u32 %v991_v39, %v889_v38 }
  0x45   : > { %525 = vmatpush.bf16.msra.mxu0 %v914_v63 }
  0x46   : > { %583 = vmatpush.bf16.msra.mxu2 %v918_v1 }
  0x48   : > { %373 = vperm.xlu0 %1039, %v339_v29   ;;  %368 = vperm.xlu2 %1041, %v338_v34  }
  0x49   : > { %526 = vmatpush.bf16.msra.mxu0 %v906_v7  ;;  %972 = vmatmul.msk.bf16.gmra.mxu3 %vm507_vm0, %v878_v15 }
  0x4a   : > { %584 = vmatpush.bf16.msra.mxu2 %v910_v10 }
  0x4b   : > { %968 = vmatmul.msk.bf16.gmra.mxu1 %vm507_vm0, %v878_v15  ;;  %378 = vperm.xlu1 %1040, %v340_v28  }
  0x4d   : > { %527 = vmatpush.bf16.msra.mxu0 %v898_v16 }
  0x4e   : > { %585 = vmatpush.bf16.msra.mxu2 %v902_v19 }
  0x50   : > { %528 = vmatmul.bf16.vlgmr.msra.gmra.mxu0 %v866_v20 }
  0x51   : > { %586 = vmatmul.bf16.vlgmr.msra.gmra.mxu2 %v866_v20 }
  0x59   : > { %973 = vmatmul.msk.bf16.gmra.mxu3 %vm507_vm0, %v886_v24 }
  0x5b   : > { %969 = vmatmul.msk.bf16.gmra.mxu1 %vm507_vm0, %v886_v24 }
  0x60   : > { %533 = vmatmul.bf16.gmra.mxu0 %v874_v27 }
  0x61   : > { %591 = vmatmul.bf16.gmra.mxu2 %v874_v27 }
  0x69   : > { %974 = vmatmul.msk.bf16.gmra.mxu3 %vm507_vm0, %v894_v33 }
  0x6b   : > { %970 = vmatmul.msk.bf16.gmra.mxu1 %vm507_vm0, %v894_v33 }
  0x70   : > { %538 = vmatmul.bf16.gmra.mxu0 %v882_v37 }
  0x71   : > { %596 = vmatmul.bf16.gmra.mxu2 %v882_v37 }
  0x80   : > { %543 = vmatmul.bf16.gmra.mxu0 %v890_v40 }
  0x81   : > { %601 = vmatmul.bf16.gmra.mxu2 %v890_v40 }
  0x9a   : > { %v364_v22 = vpop.permute.xlu2 %363 }
  0xa2   : > { %v369_v35 = vpop.permute.xlu2 %368 }
  0xaa   : > { %v344_v43 = vpop.permute.xlu0 %343 }
  0xad   : > { %v354_v58 = vpop.permute.xlu1 %353 }
  0xb2   : > { %v349_v52 = vpop.permute.xlu0 %348 }
  0xb5   : > { %v359_v11 = vpop.permute.xlu1 %358 }
  0xb8   : > { %v558_v41 = vpop.f32.mrf.mxu1 }
  0xbc   : > { %v616_v42 = vpop.f32.mrf.mxu3 }
  0xc0   : > { %v560_v46 = vpop.f32.mrf.mxu1 }
  0xc4   : > { %v618_v47 = vpop.f32.mrf.mxu3 }
  0xc8   : > { %v563_v59 = vpop.f32.mrf.mxu1 }
  0xcc   : > { %v621_v61 = vpop.f32.mrf.mxu3 }
  0xcd   : > { %v529_v44 = vpop.f32.mrf.mxu0 }
  0xce   : > { %v530_v45 = vadd.f32 %v529_v44, %v344_v43 }
  0xd0   : > { %v559_v48 = vadd.f32 %v558_v41, %v530_v45  ;;  %v565_v10 = vpop.f32.mrf.mxu1 }
  0xd2   : > { %v636_v53 = vmax.f32 %v559_v48, 0.0 }
  0xd4   : > { %v587_v49 = vpop.f32.mrf.mxu2  ;;  %v623_v12 = vpop.f32.mrf.mxu3 }
  0xd5   : > { %v588_v50 = vadd.f32 %v587_v49, %v344_v43  ;;  %v531_v51 = vpop.f32.mrf.mxu0 }
  0xd6   : > { %v532_v56 = vadd.f32 %v531_v51, %v349_v52 }
  0xd7   : > { %v617_v54 = vadd.f32 %v616_v42, %v588_v50 }
  0xd8   : > { %v561_v62 = vadd.f32 %v560_v46, %v532_v56  ;;  %v568_v24 = vpop.f32.mrf.mxu1  ;;  %v374_v46 = vpop.permute.xlu0 %373 }
  0xd9   : > { %v637_v55 = vmax.f32 %v617_v54, 0.0  ;;  %v379_v56 = vpop.permute.xlu1 %378 }
  0xda   : > { %v638_v3 = vmax.f32 %v561_v62, 0.0 }
  0xdb   : > { %v644_v57 = vpack.c.bf16 %v637_v55, %v636_v53 }
  0xdc   : > { %v589_v60 = vpop.f32.mrf.mxu2  ;;  %v626_v25 = vpop.f32.mrf.mxu3 }
  0xdd   : > { %648 = vst [vmem:[%s1301_s25] sm:$0xff] %v644_v57  ;;  %v590_v63 = vadd.f32 %v589_v60, %v349_v52  ;;  %v534_v0 = vpop.f32.mrf.mxu0 }
  0xde   : > { %v535_v2 = vadd.f32 %v534_v0, %v354_v58 }
  0xdf   : > { %v619_v1 = vadd.f32 %v618_v47, %v590_v63 }
  0xe0   : > { %v564_v6 = vadd.f32 %v563_v59, %v535_v2  ;;  %v570_v37 = vpop.f32.mrf.mxu1 }
  0xe1   : > { %v639_v4 = vmax.f32 %v619_v1, 0.0 }
  0xe2   : > { %v640_v13 = vmax.f32 %v564_v6, 0.0 }
  0xe3   : > { %v645_v5 = vpack.c.bf16 %v639_v4, %v638_v3 }
  0xe4   : > { %v592_v7 = vpop.f32.mrf.mxu2  ;;  %v628_v38 = vpop.f32.mrf.mxu3  ;;  %v708_v1 = vld [vmem:[%s1301_s25] sm:$0xff] (%p1123_p5) }
  0xe5   : > { %649 = vst [vmem:[%s1301_s25 + $0x8] sm:$0xff] %v645_v5  ;;  %v593_v8 = vadd.f32 %v592_v7, %v354_v58  ;;  %v536_v9 = vpop.f32.mrf.mxu0 }
  0xe6   : > { %v537_v16 = vadd.f32 %v536_v9, %v359_v11  ;;  %709 = vst [vmem:[%s673_s28] sm:$0xff] (%p1123_p5), %v708_v1 }
  0xe7   : > { %v622_v14 = vadd.f32 %v621_v61, %v593_v8 }
  0xe8   : > { %v566_v19 = vadd.f32 %v565_v10, %v537_v16  ;;  %v573_v48 = vpop.f32.mrf.mxu1 }
  0xe9   : > { %v641_v15 = vmax.f32 %v622_v14, 0.0 }
  0xea   : > { %v642_v26 = vmax.f32 %v566_v19, 0.0 }
  0xeb   : > { %v646_v17 = vpack.c.bf16 %v641_v15, %v640_v13 }
  0xec   : > { %v594_v18 = vpop.f32.mrf.mxu2  ;;  %v631_v49 = vpop.f32.mrf.mxu3  ;;  %v710_v2 = vld [vmem:[%s1301_s25 + $0x8] sm:$0xff] (%p1123_p5) }
  0xed   : > { %650 = vst [vmem:[%s1301_s25 + $0x10] sm:$0xff] %v646_v17  ;;  %v595_v20 = vadd.f32 %v594_v18, %v359_v11  ;;  %v539_v21 = vpop.f32.mrf.mxu0 }
  0xee   : > { %v540_v28 = vadd.f32 %v539_v21, %v364_v22  ;;  %711 = vst [vmem:[%s673_s28 + $0x10] sm:$0xff] (%p1123_p5), %v710_v2 }
  0xef   : > { %v624_v23 = vadd.f32 %v623_v12, %v595_v20 }
  0xf0   : > { %v569_v31 = vadd.f32 %v568_v24, %v540_v28  ;;  %v575_v60 = vpop.f32.mrf.mxu1 }
  0xf1   : > { %v643_v27 = vmax.f32 %v624_v23, 0.0 }
  0xf3   : > { %v647_v29 = vpack.c.bf16 %v643_v27, %v642_v26 }
  0xf4   : > { %v597_v30 = vpop.f32.mrf.mxu2  ;;  %v633_v61 = vpop.f32.mrf.mxu3  ;;  %v712_v3 = vld [vmem:[%s1301_s25 + $0x10] sm:$0xff] (%p1123_p5) }
  0xf5   : > { %651 = vst [vmem:[%s1301_s25 + $0x18] sm:$0xff] %v647_v29  ;;  %v598_v32 = vadd.f32 %v597_v30, %v364_v22  ;;  %v541_v33 = vpop.f32.mrf.mxu0 }
  0xf6   : > { %v542_v39 = vadd.f32 %v541_v33, %v369_v35  ;;  %713 = vst [vmem:[%s673_s28 + $0x20] sm:$0xff] (%p1123_p5), %v712_v3 }
  0xf7   : > { %v627_v34 = vadd.f32 %v626_v25, %v598_v32 }
  0xf8   : > { %v571_v43 = vadd.f32 %v570_v37, %v542_v39 }
  0xf9   : > { %v652_v36 = vpack.c.bf16 %v627_v34, %v569_v31 }
  0xfb   : > { %656 = vst [vmem:[%s1308_s15] sm:$0xff] %v652_v36 }
  0xfc   : > { %v599_v40 = vpop.f32.mrf.mxu2  ;;  %v714_v4 = vld [vmem:[%s1301_s25 + $0x18] sm:$0xff] (%p1123_p5) }
  0xfd   : > { %v600_v41 = vadd.f32 %v599_v40, %v369_v35  ;;  %v544_v42 = vpop.f32.mrf.mxu0  ;;  %715 = vst [vmem:[%s673_s28 + $0x30] sm:$0xff] (%p1123_p5), %v714_v4 }
  0xfe   : > { %v545_v47 = vadd.f32 %v544_v42, %v374_v46 }
  0xff   : > { %v629_v44 = vadd.f32 %v628_v38, %v600_v41 }
 0x100   : > { %v574_v52 = vadd.f32 %v573_v48, %v545_v47 }
 0x101   : > { %v653_v45 = vpack.c.bf16 %v629_v44, %v571_v43 }
 0x103   : > { %657 = vst [vmem:[%s1308_s15 + $0x8] sm:$0xff] %v653_v45 }
 0x104   : > { %v602_v50 = vpop.f32.mrf.mxu2 }
 0x105   : > { %v603_v51 = vadd.f32 %v602_v50, %v374_v46  ;;  %v546_v54 = vpop.f32.mrf.mxu0 }
 0x106   : > { %v547_v57 = vadd.f32 %v546_v54, %v379_v56 }
 0x107   : > { %v632_v53 = vadd.f32 %v631_v49, %v603_v51 }
 0x108   : > { %v576_v62 = vadd.f32 %v575_v60, %v547_v57 }
 0x109   : > { %v654_v55 = vpack.c.bf16 %v632_v53, %v574_v52 }
 0x10b   : > { %658 = vst [vmem:[%s1308_s15 + $0x10] sm:$0xff] %v654_v55 }
 0x10c   : > { %v604_v58 = vpop.f32.mrf.mxu2 }
 0x10d   : > { %v605_v59 = vadd.f32 %v604_v58, %v379_v56 }
 0x10f   : > { %v634_v63 = vadd.f32 %v633_v61, %v605_v59  ;;  %670 = sbr.rel (!%p1123_p5) target bundleno = 276 (0x114), region = 74 }
 0x111   : > { %v655_v0 = vpack.c.bf16 %v634_v63, %v576_v62 }
 0x113   : > { %659 = vst [vmem:[%s1308_s15 + $0x18] sm:$0xff] %v655_v0 }
 0x114 PF: > { %721 = sbr.rel (!%p1123_p5) target bundleno = 284 (0x11c), region = 112  ;;  %s1011_s29 = sshll.u32 (%p1123_p5), %s1108_s18, 3  ;;  %v759_v5 = vld [vmem:[%s1308_s15] sm:$0xff] (%p1123_p5)  ;;  %v761_v6 = vld [vmem:[%s1308_s15 + $0x8] sm:$0xff] (%p1123_p5)  ;;  %v763_v7 = vld [vmem:[%s1308_s15 + $0x10] sm:$0xff] (%p1123_p5) }
 0x115   : > { %s724_s7 = scalar_lea.vmem (%p1123_p5), %s1348_s4, %s1011_s29 }
 0x116   : > { %760 = vst [vmem:[%s724_s7] sm:$0xff] (%p1123_p5), %v759_v5 }
 0x117   : > { %762 = vst [vmem:[%s724_s7 + $0x10] sm:$0xff] (%p1123_p5), %v761_v6 }
 0x118   : > { %764 = vst [vmem:[%s724_s7 + $0x20] sm:$0xff] (%p1123_p5), %v763_v7 }
 0x11a   : > { %v765_v8 = vld [vmem:[%s1308_s15 + $0x18] sm:$0xff] }
 0x11b   : > { %766 = vst [vmem:[%s724_s7 + $0x30] sm:$0xff] %v765_v8 }
 0x11c PF: > { %p12_p10 = scmp.ge.s32.totalorder %s1111_s19, 4   ;;  %s1350_s15 = smov %s1060_s16 }
 0x11d   : > { %s1351_s16 = smov %s1121_s22  ;;  %s1352_s17 = smov %s1111_s19 }
 0x11e   :  { %14 = sbr.rel (!%p12_p10) target bundleno = 2 (0x2), region = 193 }

// kernel: cifar_resnet_forward.11
= control target key start
LH: loop header
LB: loop body
LE: loop exit
PB: predicated region body
PF: predicated region fallthrough
CT: control target
= control target key end

     0   :  { %s1319_s15 = smov 0   ;;  %s1321_s16 = smov 0   ;;  %s1610_s0 = inlined_call_operand.vmem [shape: bf16[32,288], index: 0, kind: input, shape index: {}]   ;;  %s1611_s1 = inlined_call_operand.vmem [shape: bf16[288,512], index: 1, kind: input, shape index: {}]   ;;  %s1612_s2 = inlined_call_operand.vmem [shape: f32[32,1], index: 2, kind: input, shape index: {}]   ;;  %s1613_s3 = inlined_call_operand.vmem [shape: bf16[32,512], index: 3, kind: input, shape index: {}]   ;;  %s1614_s4 = inlined_call_operand.vmem [shape: bf16[32,512], index: 4, kind: output, shape index: {}]  }
   0x1   :  { %s1323_s17 = smov 0  }
   0x2 LB: > { %s1004_s18 = sadd.s32 4294967295, %s1291_s17   ;;  %s1336_s19 = sadd.s32 1, %s1291_s17   ;;  %s1291_s17 = sphi %s1323_s17, %s1619_s17   ;;  %s1287_s16 = sphi %s1321_s16, %s1618_s16   ;;  %s1283_s15 = sphi %s1319_s15, %s1617_s15  }
   0x3   : > { %s39_s20 = ssub.s32 %s1291_s17, %s1336_s19  ;;  %s42_s21 = sadd.s32 1, %s1287_s16 }
   0x4   : > { %p40_p0 = scmp.eq.s32.totalorder %s39_s20, 0  ;;  %p49_p1 = scmp.ne.s32.totalorder %s1287_s16, %s1283_s15 }
   0x5   : > { %p50_p2 = scmp.eq.s32.totalorder %s1291_s17, 0  ;;  %p126_p3 = scmp.eq.s32.totalorder %s1004_s18, 1 }
   0x6   : > { %s1347_s22 = scalar_select %p40_p0, %s1287_s16, %s42_s21  }
   0x7   : > { %p1349_p4 = por %p50_p2, %p49_p1  ;;  %p1353_p5 = por %p126_p3, %p49_p1 }
   0x8   : > { %p1007_p6 = scmp.ge.s32.totalorder %s1291_s17, 2 }
   0xa   : > { %154 = sbr.rel (%p1007_p6) target bundleno = 63 (0x3f), region = 24 }
   0xf   : > { %157 = sbr.rel (!%p1349_p4) target bundleno = 55 (0x37), region = 28  ;;  %s159_s25 = sand.u32 (%p1349_p4), 1, %s1287_s16  }
  0x10   : > { %s1193_s26 = sshll.u32 (%p1349_p4), %s1291_s17, 3  ;;  %s1240_s27 = smul.u32 (%p1349_p4), 288, %s159_s25 }
  0x11   : > { %s1365_s30 = scalar_lea.vmem (%p1349_p4), %s1611_s1, %s1193_s26 }
  0x12   : > { %v263_v0 = vld [vmem:[%s1365_s30] sm:$0xff] (%p1349_p4)  ;;  %v265_v1 = vld [vmem:[%s1365_s30 + $0x10] sm:$0xff] (%p1349_p4)  ;;  %s1370_s5 = scalar_lea.vmem (%p1349_p4), [#allocation2], %s1240_s27 }
  0x13   : > { %v267_v2 = vld [vmem:[%s1365_s30 + $0x20] sm:$0xff] (%p1349_p4)  ;;  %264 = vst [vmem:[%s1370_s5] sm:$0xff] (%p1349_p4), %v263_v0  ;;  %v269_v3 = vld [vmem:[%s1365_s30 + $0x30] sm:$0xff] (%p1349_p4) }
  0x14   : > { %266 = vst [vmem:[%s1370_s5 + $0x8] sm:$0xff] %v265_v1  ;;  %v271_v4 = vld [vmem:[%s1365_s30 + $0x40] sm:$0xff]  ;;  %v273_v5 = vld [vmem:[%s1365_s30 + $0x50] sm:$0xff] }
  0x15   : > { %268 = vst [vmem:[%s1370_s5 + $0x10] sm:$0xff] %v267_v2  ;;  %v275_v6 = vld [vmem:[%s1365_s30 + $0x60] sm:$0xff]  ;;  %v277_v7 = vld [vmem:[%s1365_s30 + $0x70] sm:$0xff] }
  0x16   : > { %270 = vst [vmem:[%s1370_s5 + $0x18] sm:$0xff] %v269_v3  ;;  %v279_v8 = vld [vmem:[%s1365_s30 + $0x80] sm:$0xff]  ;;  %v281_v9 = vld [vmem:[%s1365_s30 + $0x90] sm:$0xff] }
  0x17   : > { %272 = vst [vmem:[%s1370_s5 + $0x20] sm:$0xff] %v271_v4  ;;  %v283_v10 = vld [vmem:[%s1365_s30 + $0xa0] sm:$0xff]  ;;  %v285_v11 = vld [vmem:[%s1365_s30 + $0xb0] sm:$0xff] }
  0x18   : > { %274 = vst [vmem:[%s1370_s5 + $0x28] sm:$0xff] %v273_v5  ;;  %v287_v12 = vld [vmem:[%s1365_s30 + $0xc0] sm:$0xff]  ;;  %v289_v13 = vld [vmem:[%s1365_s30 + $0xd0] sm:$0xff] }
  0x19   : > { %276 = vst [vmem:[%s1370_s5 + $0x30] sm:$0xff] %v275_v6  ;;  %v291_v14 = vld [vmem:[%s1365_s30 + $0xe0] sm:$0xff]  ;;  %v293_v15 = vld [vmem:[%s1365_s30 + $0xf0] sm:$0xff] }
  0x1a   : > { %278 = vst [vmem:[%s1370_s5 + $0x38] sm:$0xff] %v277_v7  ;;  %v295_v16 = vld [vmem:[%s1365_s30 + $0x100] sm:$0xff]  ;;  %v297_v17 = vld [vmem:[%s1365_s30 + $0x110] sm:$0xff] }
  0x1b   : > { %280 = vst [vmem:[%s1370_s5 + $0x40] sm:$0xff] %v279_v8  ;;  %v299_v18 = vld [vmem:[%s1365_s30 + $0x120] sm:$0xff]  ;;  %v301_v19 = vld [vmem:[%s1365_s30 + $0x130] sm:$0xff] }
  0x1c   : > { %282 = vst [vmem:[%s1370_s5 + $0x48] sm:$0xff] %v281_v9  ;;  %v303_v20 = vld [vmem:[%s1365_s30 + $0x140] sm:$0xff]  ;;  %v305_v21 = vld [vmem:[%s1365_s30 + $0x150] sm:$0xff] }
  0x1d   : > { %284 = vst [vmem:[%s1370_s5 + $0x50] sm:$0xff] %v283_v10  ;;  %v307_v22 = vld [vmem:[%s1365_s30 + $0x160] sm:$0xff]  ;;  %v309_v23 = vld [vmem:[%s1365_s30 + $0x170] sm:$0xff] }
  0x1e   : > { %286 = vst [vmem:[%s1370_s5 + $0x58] sm:$0xff] %v285_v11  ;;  %v311_v24 = vld [vmem:[%s1365_s30 + $0x180] sm:$0xff]  ;;  %v313_v25 = vld [vmem:[%s1365_s30 + $0x190] sm:$0xff] }
  0x1f   : > { %288 = vst [vmem:[%s1370_s5 + $0x60] sm:$0xff] %v287_v12  ;;  %v315_v26 = vld [vmem:[%s1365_s30 + $0x1a0] sm:$0xff]  ;;  %v317_v27 = vld [vmem:[%s1365_s30 + $0x1b0] sm:$0xff] }
  0x20   : > { %290 = vst [vmem:[%s1370_s5 + $0x68] sm:$0xff] %v289_v13  ;;  %v319_v28 = vld [vmem:[%s1365_s30 + $0x1c0] sm:$0xff]  ;;  %v321_v29 = vld [vmem:[%s1365_s30 + $0x1d0] sm:$0xff] }
  0x21   : > { %292 = vst [vmem:[%s1370_s5 + $0x70] sm:$0xff] %v291_v14  ;;  %v323_v30 = vld [vmem:[%s1365_s30 + $0x1e0] sm:$0xff]  ;;  %v325_v31 = vld [vmem:[%s1365_s30 + $0x1f0] sm:$0xff] }
  0x22   : > { %294 = vst [vmem:[%s1370_s5 + $0x78] sm:$0xff] %v293_v15  ;;  %v327_v32 = vld [vmem:[%s1365_s30 + $0x200] sm:$0xff]  ;;  %v329_v33 = vld [vmem:[%s1365_s30 + $0x210] sm:$0xff] }
  0x23   : > { %296 = vst [vmem:[%s1370_s5 + $0x80] sm:$0xff] %v295_v16  ;;  %v331_v34 = vld [vmem:[%s1365_s30 + $0x220] sm:$0xff]  ;;  %v333_v35 = vld [vmem:[%s1365_s30 + $0x230] sm:$0xff] }
  0x24   : > { %298 = vst [vmem:[%s1370_s5 + $0x88] sm:$0xff] %v297_v17 }
  0x25   : > { %300 = vst [vmem:[%s1370_s5 + $0x90] sm:$0xff] %v299_v18 }
  0x26   : > { %302 = vst [vmem:[%s1370_s5 + $0x98] sm:$0xff] %v301_v19 }
  0x27   : > { %304 = vst [vmem:[%s1370_s5 + $0xa0] sm:$0xff] %v303_v20 }
  0x28   : > { %306 = vst [vmem:[%s1370_s5 + $0xa8] sm:$0xff] %v305_v21 }
  0x29   : > { %308 = vst [vmem:[%s1370_s5 + $0xb0] sm:$0xff] %v307_v22 }
  0x2a   : > { %310 = vst [vmem:[%s1370_s5 + $0xb8] sm:$0xff] %v309_v23 }
  0x2b   : > { %312 = vst [vmem:[%s1370_s5 + $0xc0] sm:$0xff] %v311_v24 }
  0x2c   : > { %314 = vst [vmem:[%s1370_s5 + $0xc8] sm:$0xff] %v313_v25 }
  0x2d   : > { %316 = vst [vmem:[%s1370_s5 + $0xd0] sm:$0xff] %v315_v26 }
  0x2e   : > { %318 = vst [vmem:[%s1370_s5 + $0xd8] sm:$0xff] %v317_v27 }
  0x2f   : > { %320 = vst [vmem:[%s1370_s5 + $0xe0] sm:$0xff] %v319_v28 }
  0x30   : > { %322 = vst [vmem:[%s1370_s5 + $0xe8] sm:$0xff] %v321_v29 }
  0x31   : > { %324 = vst [vmem:[%s1370_s5 + $0xf0] sm:$0xff] %v323_v30 }
  0x32   : > { %326 = vst [vmem:[%s1370_s5 + $0xf8] sm:$0xff] %v325_v31 }
  0x33   : > { %328 = vst [vmem:[%s1370_s5 + $0x100] sm:$0xff] %v327_v32 }
  0x34   : > { %330 = vst [vmem:[%s1370_s5 + $0x108] sm:$0xff] %v329_v33 }
  0x35   : > { %332 = vst [vmem:[%s1370_s5 + $0x110] sm:$0xff] %v331_v34 }
  0x36   : > { %334 = vst [vmem:[%s1370_s5 + $0x118] sm:$0xff] %v333_v35 }
  0x37 PF: > { %340 = sbr.rel (!%p1349_p4) target bundleno = 63 (0x3f), region = 66  ;;  %s342_s6 = sand.u32 (%p1349_p4), 1, %s1287_s16  }
  0x38   : > { %s1194_s7 = sshll.u32 (%p1349_p4), %s1291_s17, 3  ;;  %s1010_s8 = sshll.u32 (%p1349_p4), %s342_s6, 5 }
  0x39   : > { %s347_s11 = scalar_lea.vmem (%p1349_p4), %s1613_s3, %s1194_s7  ;;  %s344_s12 = scalar_lea.vmem (%p1349_p4), [#allocation3], %s1010_s8 }
  0x3a   : > { %v382_v36 = vld [vmem:[%s347_s11] sm:$0xff] (%p1349_p4)  ;;  %v384_v37 = vld [vmem:[%s347_s11 + $0x10] sm:$0xff] (%p1349_p4) }
  0x3b   : > { %v386_v38 = vld [vmem:[%s347_s11 + $0x20] sm:$0xff] (%p1349_p4)  ;;  %383 = vst [vmem:[%s344_s12] sm:$0xff] (%p1349_p4), %v382_v36  ;;  %v388_v39 = vld [vmem:[%s347_s11 + $0x30] sm:$0xff] (%p1349_p4) }
  0x3c   : > { %385 = vst [vmem:[%s344_s12 + $0x8] sm:$0xff] %v384_v37 }
  0x3d   : > { %387 = vst [vmem:[%s344_s12 + $0x10] sm:$0xff] %v386_v38 }
  0x3e   : > { %389 = vst [vmem:[%s344_s12 + $0x18] sm:$0xff] %v388_v39 }
  0x3f PF: > { %p1013_p7 = scmp.ge.s32.totalorder %s1291_s17, 1  ;;  %p394_p8 = scmp.lt.s32.totalorder %s1291_s17, 3 }
  0x41   : > { %p395_p9 = pnand %p1013_p7, %p394_p8 }
  0x42   : > { %s401_s13 = sand.u32 (!%p395_p9), 1, %s1283_s15  }
  0x43   : > { %398 = sbr.rel (%p395_p9) target bundleno = 291 (0x123), region = 104  ;;  %s1589_s11 = sshll.u32 (!%p395_p9), %s401_s13, 5 }
  0x44   : > { %s1241_s14 = smul.u32 (!%p395_p9), 288, %s401_s13  ;;  %s410_s12 = scalar_lea.vmem (!%p395_p9), [#allocation3], %s1589_s11 }
  0x45   : > { %s435_s15 = scalar_lea.vmem (!%p395_p9), [#allocation4], %s1589_s11 }
  0x46   : > { %s1453_s20 = scalar_lea.vmem (!%p395_p9), [#allocation2], %s1241_s14 }
  0x48   : > { %v1098_v40 = vld [vmem:[%s1453_s20 + $0x70] sm:$0xf]  ;;  %v1216_v41 = vld [vmem:[%s1453_s20 + $0x74] sm:$0xf0]  ;;  %vm718_vm0 = vcmask 261120   ;;  %s1237_s13 = sshll.u32 (%p1353_p5), %s1004_s18, 3 }
  0x49   : > { %v1162_v42 = vld [vmem:[%s1453_s20 + $0xf0] sm:$0xf]  ;;  %v1099_v43 = vor.u32 %v1216_v41, %v1098_v40  ;;  %v1232_v44 = vld [vmem:[%s1453_s20 + $0xf4] sm:$0xf0]  ;;  %v1215_v49 = vld [vmem:[%s1453_s20 + $0x74] sm:$0xf]  ;;  %s884_s23 = scalar_lea.vmem (%p1353_p5), %s1614_s4, %s1237_s13 }
  0x4a   : > { %v1178_v45 = vld [vmem:[%s1453_s20 + $0x110] sm:$0xf]  ;;  %v1236_v46 = vld [vmem:[%s1453_s20 + $0x114] sm:$0xf0]  ;;  %v1163_v47 = vor.u32 %v1232_v44, %v1162_v42  ;;  %v1100_v50 = vld [vmem:[%s1453_s20 + $0x78] sm:$0xf0] }
  0x4b   : > { %v1179_v48 = vor.u32 %v1236_v46, %v1178_v45  ;;  %v1090_v51 = vld [vmem:[%s1453_s20 + $0x60] sm:$0xf]  ;;  %v1026_v52 = vld [vmem:[%s1610_s0 + $0x8] sm:$0xf]  ;;  %v1197_v53 = vld [vmem:[%s1610_s0 + $0x10] sm:$0xf0]  ;;  %725 = vmatpush.bf16.msra.mxu0 %v1099_v43  ;;  %v1103_v54 = vor.u32 %v1215_v49, %v1100_v50 }
  0x4c   : > { %v1214_v55 = vld [vmem:[%s1453_s20 + $0x64] sm:$0xf0]  ;;  %v1154_v56 = vld [vmem:[%s1453_s20 + $0xe0] sm:$0xf]  ;;  %744 = vmatpush.bf16.msra.mxu1 %v1163_v47  ;;  %v1213_v62 = vld [vmem:[%s1453_s20 + $0x64] sm:$0xf]  ;;  %v1482_v8 = vor.u32 %v1197_v53, %v1026_v52 }
  0x4d   : > { %v1230_v57 = vld [vmem:[%s1453_s20 + $0xe4] sm:$0xf0]  ;;  %769 = vmatpush.bf16.msra.mxu2 %v1179_v48  ;;  %v1091_v58 = vor.u32 %v1214_v55, %v1090_v51  ;;  %v1170_v60 = vld [vmem:[%s1453_s20 + $0x100] sm:$0xf]  ;;  %782 = vmatpush.bf16.msra.mxu3 %v1103_v54  ;;  %v1092_v0 = vld [vmem:[%s1453_s20 + $0x68] sm:$0xf0] }
  0x4e   : > { %v1155_v59 = vor.u32 %v1230_v57, %v1154_v56  ;;  %v1234_v61 = vld [vmem:[%s1453_s20 + $0x104] sm:$0xf0]  ;;  %v1231_v1 = vld [vmem:[%s1453_s20 + $0xf4] sm:$0xf]  ;;  %v1164_v2 = vld [vmem:[%s1453_s20 + $0xf8] sm:$0xf0]  ;;  %v1095_v3 = vor.u32 %v1213_v62, %v1092_v0 }
  0x4f   : > { %v1171_v63 = vor.u32 %v1234_v61, %v1170_v60  ;;  %v1167_v4 = vor.u32 %v1231_v1, %v1164_v2  ;;  %v1082_v5 = vld [vmem:[%s1453_s20 + $0x50] sm:$0xf]  ;;  %v1212_v6 = vld [vmem:[%s1453_s20 + $0x54] sm:$0xf0]  ;;  %726 = vmatpush.bf16.msra.mxu0 %v1091_v58  ;;  %v1211_v11 = vld [vmem:[%s1453_s20 + $0x54] sm:$0xf] }
  0x50   : > { %v1146_v7 = vld [vmem:[%s1453_s20 + $0xd0] sm:$0xf]  ;;  %v1083_v9 = vor.u32 %v1212_v6, %v1082_v5  ;;  %v1228_v10 = vld [vmem:[%s1453_s20 + $0xd4] sm:$0xf0]  ;;  %v1084_v12 = vld [vmem:[%s1453_s20 + $0x58] sm:$0xf0]  ;;  %745 = vmatpush.bf16.msra.mxu1 %v1155_v59 }
  0x51   : > { %770 = vmatpush.bf16.msra.mxu2 %v1171_v63  ;;  %v1147_v13 = vor.u32 %v1228_v10, %v1146_v7  ;;  %v1229_v14 = vld [vmem:[%s1453_s20 + $0xe4] sm:$0xf]  ;;  %v1156_v15 = vld [vmem:[%s1453_s20 + $0xe8] sm:$0xf0]  ;;  %v1074_v16 = vld [vmem:[%s1453_s20 + $0x40] sm:$0xf]  ;;  %783 = vmatpush.bf16.msra.mxu3 %v1095_v3  ;;  %v1087_v17 = vor.u32 %v1211_v11, %v1084_v12 }
  0x52   : > { %v1159_v18 = vor.u32 %v1229_v14, %v1156_v15  ;;  %v1210_v19 = vld [vmem:[%s1453_s20 + $0x44] sm:$0xf0]  ;;  %v1138_v20 = vld [vmem:[%s1453_s20 + $0xc0] sm:$0xf]  ;;  %v1209_v22 = vld [vmem:[%s1453_s20 + $0x44] sm:$0xf] }
  0x53   : > { %v1226_v21 = vld [vmem:[%s1453_s20 + $0xc4] sm:$0xf0]  ;;  %v1076_v23 = vld [vmem:[%s1453_s20 + $0x48] sm:$0xf0]  ;;  %v1227_v24 = vld [vmem:[%s1453_s20 + $0xd4] sm:$0xf]  ;;  %727 = vmatpush.bf16.msra.mxu0 %v1083_v9  ;;  %v1075_v25 = vor.u32 %v1210_v19, %v1074_v16 }
  0x54   : > { %1184 = vmatmul.msk.bf16.vlgmr.msra.gmra.mxu2 %vm718_vm0, %v1482_v8  ;;  %v1148_v26 = vld [vmem:[%s1453_s20 + $0xd8] sm:$0xf0]  ;;  %746 = vmatpush.bf16.msra.mxu1 %v1147_v13  ;;  %v1139_v27 = vor.u32 %v1226_v21, %v1138_v20  ;;  %v1066_v28 = vld [vmem:[%s1453_s20 + $0x30] sm:$0xf]  ;;  %v1208_v29 = vld [vmem:[%s1453_s20 + $0x34] sm:$0xf0]  ;;  %v1079_v30 = vor.u32 %v1209_v22, %v1076_v23 }
  0x55   : > { %801 = vmatpush.bf16.msrb.mxu2 %v1167_v4  ;;  %784 = vmatpush.bf16.msra.mxu3 %v1087_v17  ;;  %v1151_v31 = vor.u32 %v1227_v24, %v1148_v26  ;;  %v1130_v32 = vld [vmem:[%s1453_s20 + $0xb0] sm:$0xf]  ;;  %v1224_v33 = vld [vmem:[%s1453_s20 + $0xb4] sm:$0xf0]  ;;  %v1207_v34 = vld [vmem:[%s1453_s20 + $0x34] sm:$0xf]  ;;  %v1067_v38 = vor.u32 %v1208_v29, %v1066_v28 }
  0x56   : > { %v1068_v35 = vld [vmem:[%s1453_s20 + $0x38] sm:$0xf0]  ;;  %v1225_v36 = vld [vmem:[%s1453_s20 + $0xc4] sm:$0xf]  ;;  %v1140_v37 = vld [vmem:[%s1453_s20 + $0xc8] sm:$0xf0]  ;;  %v1131_v39 = vor.u32 %v1224_v33, %v1130_v32 }
  0x57   : > { %728 = vmatpush.bf16.msra.mxu0 %v1075_v25  ;;  %v1058_v40 = vld [vmem:[%s1453_s20 + $0x20] sm:$0xf]  ;;  %v1206_v41 = vld [vmem:[%s1453_s20 + $0x24] sm:$0xf0]  ;;  %v1071_v42 = vor.u32 %v1207_v34, %v1068_v35  ;;  %v1143_v43 = vor.u32 %v1225_v36, %v1140_v37  ;;  %v1205_v46 = vld [vmem:[%s1453_s20 + $0x24] sm:$0xf] }
  0x58   : > { %747 = vmatpush.bf16.msra.mxu1 %v1139_v27  ;;  %v1122_v44 = vld [vmem:[%s1453_s20 + $0xa0] sm:$0xf]  ;;  %v1222_v45 = vld [vmem:[%s1453_s20 + $0xa4] sm:$0xf0]  ;;  %v1060_v47 = vld [vmem:[%s1453_s20 + $0x28] sm:$0xf0]  ;;  %v1059_v50 = vor.u32 %v1206_v41, %v1058_v40 }
  0x59   : > { %802 = vmatpush.bf16.msrb.mxu2 %v1159_v18  ;;  %785 = vmatpush.bf16.msra.mxu3 %v1079_v30  ;;  %v1223_v48 = vld [vmem:[%s1453_s20 + $0xb4] sm:$0xf]  ;;  %v1132_v49 = vld [vmem:[%s1453_s20 + $0xb8] sm:$0xf0]  ;;  %v1038_v51 = vld [vmem:[%s1610_s0 + $0x20] sm:$0xf]  ;;  %v1123_v52 = vor.u32 %v1222_v45, %v1122_v44  ;;  %v1063_v56 = vor.u32 %v1205_v46, %v1060_v47 }
  0x5a   : > { %v1200_v53 = vld [vmem:[%s1610_s0 + $0x28] sm:$0xf0]  ;;  %v1050_v54 = vld [vmem:[%s1453_s20 + $0x10] sm:$0xf]  ;;  %v1204_v55 = vld [vmem:[%s1453_s20 + $0x14] sm:$0xf0]  ;;  %v1135_v57 = vor.u32 %v1223_v48, %v1132_v49 }
  0x5b   : > { %729 = vmatpush.bf16.msra.mxu0 %v1067_v38  ;;  %v1114_v58 = vld [vmem:[%s1453_s20 + $0x90] sm:$0xf]  ;;  %v1220_v59 = vld [vmem:[%s1453_s20 + $0x94] sm:$0xf0]  ;;  %v1203_v60 = vld [vmem:[%s1453_s20 + $0x14] sm:$0xf]  ;;  %v1529_v0 = vor.u32 %v1200_v53, %v1038_v51  ;;  %v1051_v1 = vor.u32 %v1204_v55, %v1050_v54 }
  0x5c   : > { %748 = vmatpush.bf16.msra.mxu1 %v1131_v39  ;;  %v1052_v61 = vld [vmem:[%s1453_s20 + $0x18] sm:$0xf0]  ;;  %v1221_v62 = vld [vmem:[%s1453_s20 + $0xa4] sm:$0xf]  ;;  %v1124_v63 = vld [vmem:[%s1453_s20 + $0xa8] sm:$0xf0]  ;;  %v1115_v5 = vor.u32 %v1220_v59, %v1114_v58 }
  0x5d   : > { %803 = vmatpush.bf16.msrb.mxu2 %v1151_v31  ;;  %786 = vmatpush.bf16.msra.mxu3 %v1071_v42  ;;  %v1042_v2 = vld [vmem:[%s1453_s20] sm:$0xf]  ;;  %v1202_v3 = vld [vmem:[%s1453_s20 + $0x4] sm:$0xf0]  ;;  %v1201_v7 = vld [vmem:[%s1453_s20 + $0x4] sm:$0xf]  ;;  %v1055_v9 = vor.u32 %v1203_v60, %v1052_v61  ;;  %v1127_v10 = vor.u32 %v1221_v62, %v1124_v63 }
  0x5e   : > { %v1106_v4 = vld [vmem:[%s1453_s20 + $0x80] sm:$0xf]  ;;  %v1218_v6 = vld [vmem:[%s1453_s20 + $0x84] sm:$0xf0]  ;;  %v1235_v11 = vld [vmem:[%s1453_s20 + $0x114] sm:$0xf]  ;;  %v1043_v18 = vor.u32 %v1202_v3, %v1042_v2 }
  0x5f   : > { %730 = vmatpush.bf16.msra.mxu0 %v1059_v50  ;;  %v1180_v12 = vld [vmem:[%s1453_s20 + $0x118] sm:$0xf0]  ;;  %v484_v13 = vld [vmem:[%s1612_s2] sm:$0xff]  ;;  %v1044_v14 = vld [vmem:[%s1453_s20 + $0x8] sm:$0xf0]  ;;  %v1293_v17 = vmov 0   ;;  %v1107_v22 = vor.u32 %v1218_v6, %v1106_v4 }
  0x60   : > { %749 = vmatpush.bf16.msra.mxu1 %v1123_v52  ;;  %v1219_v15 = vld [vmem:[%s1453_s20 + $0x94] sm:$0xf]  ;;  %v1116_v16 = vld [vmem:[%s1453_s20 + $0x98] sm:$0xf0]  ;;  %1267 = vset.pattern.permute.xlu0 %v1293_v17  ;;  %v1018_v19 = vld [vmem:[%s1610_s0] sm:$0xf]  ;;  %v1183_v25 = vor.u32 %v1235_v11, %v1180_v12  ;;  %v1047_v26 = vor.u32 %v1201_v7, %v1044_v14 }
  0x61   : > { %804 = vmatpush.bf16.msrb.mxu2 %v1143_v43  ;;  %787 = vmatpush.bf16.msra.mxu3 %v1063_v56  ;;  %v1196_v20 = vld [vmem:[%s1610_s0 + $0x8] sm:$0xf0]  ;;  %v486_v21 = vld [vmem:[%s1612_s2 + $0x10] sm:$0xff]  ;;  %v1195_v23 = vld [vmem:[%s1610_s0 + $0x4] sm:$0xf]  ;;  %v1119_v27 = vor.u32 %v1219_v15, %v1116_v16 }
  0x62   : > { %1268 = vset.pattern.permute.xlu1 %v1293_v17  ;;  %v1020_v24 = vld [vmem:[%s1610_s0 + $0xc] sm:$0xf0]  ;;  %490 = vperm.xlu0 %1267, %v484_v13   ;;  %v1233_v28 = vld [vmem:[%s1453_s20 + $0x104] sm:$0xf]  ;;  %v1172_v29 = vld [vmem:[%s1453_s20 + $0x108] sm:$0xf0]  ;;  %v1019_v30 = vor.u32 %v1196_v20, %v1018_v19 }
  0x63   : > { %731 = vmatpush.bf16.msra.mxu0 %v1051_v1  ;;  %v1217_v31 = vld [vmem:[%s1453_s20 + $0x84] sm:$0xf]  ;;  %v1108_v32 = vld [vmem:[%s1453_s20 + $0x88] sm:$0xf0]  ;;  %500 = vperm.xlu1 %1268, %v486_v21   ;;  %v1023_v33 = vor.u32 %v1195_v23, %v1020_v24  ;;  %v1175_v34 = vor.u32 %v1233_v28, %v1172_v29  ;;  %v487_v37 = vld [vmem:[%s1612_s2 + $0x18] sm:$0xff] }
  0x64   : > { %1185 = vmatmul.msk.bf16.gmra.mxu2 %vm718_vm0, %v1529_v0  ;;  %750 = vmatpush.bf16.msra.mxu1 %v1115_v5  ;;  %v1111_v35 = vor.u32 %v1217_v31, %v1108_v32  ;;  %v485_v36 = vld [vmem:[%s1612_s2 + $0x8] sm:$0xff]  ;;  %v1030_v38 = vld [vmem:[%s1610_s0 + $0x18] sm:$0xf]  ;;  %v1199_v39 = vld [vmem:[%s1610_s0 + $0x20] sm:$0xf0] }
  0x65   : > { %805 = vmatpush.bf16.msrb.mxu2 %v1135_v57  ;;  %788 = vmatpush.bf16.msra.mxu3 %v1055_v9  ;;  %v1198_v40 = vld [vmem:[%s1610_s0 + $0x1c] sm:$0xf]  ;;  %v1032_v41 = vld [vmem:[%s1610_s0 + $0x24] sm:$0xf0]  ;;  %v1031_v42 = vor.u32 %v1199_v39, %v1030_v38  ;;  %v839_v1 = vld [vmem:[%s410_s12] sm:$0xff] }
  0x66   : > { %v1035_v43 = vor.u32 %v1198_v40, %v1032_v41  ;;  %v841_v5 = vld [vmem:[%s410_s12 + $0x10] sm:$0xff]  ;;  %v844_v17 = vunpack.c.h.bf16 %v839_v1  ;;  %v840_v23 = vld [vmem:[%s410_s12 + $0x8] sm:$0xff]  ;;  %v842_v24 = vld [vmem:[%s410_s12 + $0x18] sm:$0xff] }
  0x67   : > { %732 = vmatpush.bf16.msra.mxu0 %v1043_v18  ;;  %v847_v13 = vunpack.c.l.bf16 %v841_v5  ;;  %v848_v20 = vunpack.c.h.bf16 %v841_v5  ;;  %v845_v32 = vunpack.c.l.bf16 %v840_v23 }
  0x68   : > { %751 = vmatpush.bf16.msra.mxu1 %v1107_v22 }
  0x69   : > { %806 = vmatpush.bf16.msrb.mxu2 %v1127_v10  ;;  %789 = vmatpush.bf16.msra.mxu3 %v1047_v26  ;;  %v843_v10 = vunpack.c.l.bf16 %v839_v1 }
  0x6a   : > { %733 = vmatmul.bf16.vlgmr.msra.gmra.mxu0 %v1019_v30  ;;  %495 = vperm.xlu0 %1267, %v485_v36  }
  0x6b   : > { %826 = vmatpush.bf16.msrb.mxu0 %v1183_v25  ;;  %752 = vmatmul.bf16.vlgmr.msra.gmra.mxu1 %v1023_v33 }
  0x6c   : > { %1238 = vmatpush.bf16.msrb.mxu1 %v1183_v25  ;;  %790 = vmatmul.bf16.vlgmr.msra.gmra.mxu3 %v1019_v30 }
  0x6d   : > { %807 = vmatpush.bf16.msrb.mxu2 %v1119_v27  ;;  %505 = vperm.xlu1 %1268, %v487_v37  }
  0x6f   : > { %827 = vmatpush.bf16.msrb.mxu0 %v1175_v34 }
  0x70   : > { %1239 = vmatpush.bf16.msrb.mxu1 %v1175_v34 }
  0x71   : > { %808 = vmatpush.bf16.msrb.mxu2 %v1111_v35 }
  0x74   : > { %809 = vmatmul.bf16.vlgmr.msrb.gmra.mxu2 %v1023_v33  ;;  %v849_v33 = vunpack.c.l.bf16 %v842_v24 }
  0x7a   : > { %738 = vmatmul.bf16.gmra.mxu0 %v1031_v42 }
  0x7b   : > { %757 = vmatmul.bf16.gmra.mxu1 %v1035_v43 }
  0x7c   : > { %795 = vmatmul.bf16.gmra.mxu3 %v1031_v42 }
  0x84   : > { %814 = vmatmul.bf16.gmra.mxu2 %v1035_v43 }
  0x8a   : > { %1186 = vmatmul.msk.bf16.vlgmr.msrb.gmra.mxu0 %vm718_vm0, %v1482_v8 }
  0x8b   : > { %1187 = vmatmul.msk.bf16.vlgmr.msrb.gmra.mxu1 %vm718_vm0, %v1529_v0 }
  0xd4   : > { %v491_v53 = vpop.permute.xlu0 %490 }
  0xd5   : > { %v501_v57 = vpop.permute.xlu1 %500 }
  0xd7   : > { %v772_v44 = vpop.f32.mrf.mxu2 }
  0xdc   : > { %v496_v2 = vpop.permute.xlu0 %495 }
  0xdf   : > { %v774_v45 = vpop.f32.mrf.mxu2  ;;  %v506_v6 = vpop.permute.xlu1 %505 }
  0xe7   : > { %v777_v46 = vpop.f32.mrf.mxu2  ;;  %v734_v47 = vpop.f32.mrf.mxu0 }
  0xe8   : > { %v753_v48 = vpop.f32.mrf.mxu1  ;;  %v735_v8 = vadd.f32 %v734_v47, %v491_v53  ;;  %v846_v47 = vunpack.c.h.bf16 %v840_v23 }
  0xea   : > { %v754_v62 = vadd.f32 %v753_v48, %v735_v8 }
  0xec   : > { %v773_v9 = vadd.f32 %v772_v44, %v754_v62 }
  0xee   : > { %v851_v21 = vadd.f32 %v843_v10, %v773_v9 }
  0xef   : > { %v779_v49 = vpop.f32.mrf.mxu2  ;;  %v791_v50 = vpop.f32.mrf.mxu3 }
  0xf0   : > { %v736_v51 = vpop.f32.mrf.mxu0  ;;  %v755_v52 = vpop.f32.mrf.mxu1  ;;  %v792_v4 = vadd.f32 %v791_v50, %v491_v53  ;;  %v859_v35 = vmax.f32 %v851_v21, 0.0 }
  0xf1   : > { %v737_v11 = vadd.f32 %v736_v51, %v496_v2 }
  0xf3   : > { %v756_v22 = vadd.f32 %v755_v52, %v737_v11  ;;  %v850_v52 = vunpack.c.h.bf16 %v842_v24 }
  0xf5   : > { %v775_v36 = vadd.f32 %v774_v45, %v756_v22 }
  0xf7   : > { %v810_v54 = vpop.f32.mrf.mxu2  ;;  %v793_v55 = vpop.f32.mrf.mxu3  ;;  %v853_v53 = vadd.f32 %v845_v32, %v775_v36 }
  0xf8   : > { %v739_v56 = vpop.f32.mrf.mxu0  ;;  %v758_v58 = vpop.f32.mrf.mxu1  ;;  %v811_v15 = vadd.f32 %v810_v54, %v792_v4  ;;  %v794_v37 = vadd.f32 %v793_v55, %v496_v2 }
  0xf9   : > { %v740_v59 = vadd.f32 %v739_v56, %v501_v57 }
  0xfb   : > { %v759_v3 = vadd.f32 %v758_v58, %v740_v59  ;;  %v861_v58 = vmax.f32 %v853_v53, 0.0 }
  0xfd   : > { %v778_v12 = vadd.f32 %v777_v46, %v759_v3 }
  0xff   : > { %v812_v60 = vpop.f32.mrf.mxu2  ;;  %v796_v63 = vpop.f32.mrf.mxu3  ;;  %v855_v27 = vadd.f32 %v847_v13, %v778_v12 }
 0x100   : > { %v741_v61 = vpop.f32.mrf.mxu0  ;;  %v760_v0 = vpop.f32.mrf.mxu1  ;;  %v797_v7 = vadd.f32 %v796_v63, %v501_v57  ;;  %v813_v43 = vadd.f32 %v812_v60, %v794_v37 }
 0x101   : > { %v742_v14 = vadd.f32 %v741_v61, %v506_v6  ;;  %v863_v39 = vmax.f32 %v855_v27, 0.0 }
 0x103   : > { %v761_v28 = vadd.f32 %v760_v0, %v742_v14 }
 0x105   : > { %v780_v40 = vadd.f32 %v779_v49, %v761_v28 }
 0x107   : > { %v815_v16 = vpop.f32.mrf.mxu2  ;;  %v798_v30 = vpop.f32.mrf.mxu3  ;;  %v857_v56 = vadd.f32 %v849_v33, %v780_v40 }
 0x108   : > { %v816_v18 = vadd.f32 %v815_v16, %v797_v7  ;;  %v829_v19 = vpop.f32.mrf.mxu0  ;;  %v834_v26 = vpop.f32.mrf.mxu1  ;;  %v799_v41 = vadd.f32 %v798_v30, %v506_v6 }
 0x109   : > { %v830_v25 = vadd.f32 %v829_v19, %v811_v15  ;;  %v865_v59 = vmax.f32 %v857_v56, 0.0 }
 0x10a   : > { %v835_v29 = vadd.f32 %v834_v26, %v816_v18 }
 0x10b   : > { %v852_v31 = vadd.f32 %v844_v17, %v830_v25 }
 0x10c   : > { %v856_v34 = vadd.f32 %v848_v20, %v835_v29 }
 0x10d   : > { %v860_v38 = vmax.f32 %v852_v31, 0.0 }
 0x10e   : > { %v864_v42 = vmax.f32 %v856_v34, 0.0 }
 0x10f   : > { %v867_v44 = vpack.c.bf16 %v860_v38, %v859_v35  ;;  %v817_v46 = vpop.f32.mrf.mxu2 }
 0x110   : > { %v869_v48 = vpack.c.bf16 %v864_v42, %v863_v39  ;;  %v818_v50 = vadd.f32 %v817_v46, %v799_v41  ;;  %v831_v51 = vpop.f32.mrf.mxu0  ;;  %v836_v45 = vpop.f32.mrf.mxu1 }
 0x111   : > { %871 = vst [vmem:[%s435_s15] sm:$0xff] %v867_v44  ;;  %v832_v54 = vadd.f32 %v831_v51, %v813_v43 }
 0x112   : > { %873 = vst [vmem:[%s435_s15 + $0x10] sm:$0xff] %v869_v48  ;;  %v837_v55 = vadd.f32 %v836_v45, %v818_v50 }
 0x113   : > { %v854_v57 = vadd.f32 %v846_v47, %v832_v54 }
 0x114   : > { %v858_v49 = vadd.f32 %v850_v52, %v837_v55 }
 0x115   : > { %v862_v8 = vmax.f32 %v854_v57, 0.0 }
 0x116   : > { %v866_v60 = vmax.f32 %v858_v49, 0.0  ;;  %881 = sbr.rel (!%p1353_p5) target bundleno = 291 (0x123), region = 116 }
 0x117   : > { %v868_v61 = vpack.c.bf16 %v862_v8, %v861_v58 }
 0x118   : > { %v870_v62 = vpack.c.bf16 %v866_v60, %v865_v59  ;;  %v919_v63 = vld [vmem:[%s435_s15] sm:$0xff] (%p1353_p5) }
 0x119   : > { %872 = vst [vmem:[%s435_s15 + $0x8] sm:$0xff] %v868_v61  ;;  %v923_v1 = vld [vmem:[%s435_s15 + $0x10] sm:$0xff] (%p1353_p5) }
 0x11a   : > { %874 = vst [vmem:[%s435_s15 + $0x18] sm:$0xff] %v870_v62 }
 0x11b   : > { %920 = vst [vmem:[%s884_s23] sm:$0xff] %v919_v63 }
 0x11c   : > { %924 = vst [vmem:[%s884_s23 + $0x20] sm:$0xff] %v923_v1 }
 0x120   : > { %v921_v0 = vld [vmem:[%s435_s15 + $0x8] sm:$0xff] }
 0x121   : > { %v925_v2 = vld [vmem:[%s435_s15 + $0x18] sm:$0xff]  ;;  %922 = vst [vmem:[%s884_s23 + $0x10] sm:$0xff] %v921_v0 }
 0x122   : > { %926 = vst [vmem:[%s884_s23 + $0x30] sm:$0xff] %v925_v2 }
 0x123 PF: > { %p11_p10 = scmp.ge.s32.totalorder %s1336_s19, 4   ;;  %s1617_s15 = smov %s1287_s16 }
 0x124   : > { %s1618_s16 = smov %s1347_s22  ;;  %s1619_s17 = smov %s1336_s19 }
 0x125   :  { %13 = sbr.rel (!%p11_p10) target bundleno = 2 (0x2), region = 193 }

// kernel: cifar_resnet_forward.12
= control target key start
LH: loop header
LB: loop body
LE: loop exit
PB: predicated region body
PF: predicated region fallthrough
CT: control target
= control target key end

     0   :  { %vm409_vm0 = vcmask 261120   ;;  %v913_v14 = vmov 0   ;;  %s1251_s1 = inlined_call_operand.vmem [shape: bf16[288,128], index: 1, kind: input, shape index: {}]   ;;  %s1252_s0 = inlined_call_operand.vmem [shape: bf16[128,288], index: 0, kind: input, shape index: {}]   ;;  %s1253_s2 = inlined_call_operand.vmem [shape: f32[128,1], index: 2, kind: input, shape index: {}]   ;;  %s1254_s3 = inlined_call_operand.vmem [shape: bf16[64,128], index: 3, kind: output, shape index: {0}]   ;;  %s1255_s4 = inlined_call_operand.vmem [shape: bf16[64,128], index: 4, kind: output, shape index: {1}]  }
   0x1   :  { %v836_v0 = vld [vmem:[%s1251_s1 + $0x38] sm:$0xff]  ;;  %v846_v1 = vld [vmem:[%s1251_s1 + $0x88] sm:$0xff]  ;;  %v835_v3 = vld [vmem:[%s1251_s1 + $0x30] sm:$0xff]  ;;  %910 = vset.pattern.permute.xlu0 %v913_v14  ;;  %911 = vset.pattern.permute.xlu1 %v913_v14 }
   0x2   :  { %v948_v2 = vld [vmem:[%s1251_s1 + $0x78] sm:$0xff]  ;;  %434 = vmatpush.bf16.msra.mxu0 %v836_v0  ;;  %893 = vmatpush.bf16.msra.mxu3 %v836_v0  ;;  %v845_v4 = vld [vmem:[%s1251_s1 + $0x80] sm:$0xff]  ;;  %v960_v5 = vld [vmem:[%s1251_s1 + $0x70] sm:$0xff] }
   0x3   :  { %538 = vmatpush.bf16.msra.mxu2 %v846_v1  ;;  %483 = vmatpush.bf16.msra.mxu1 %v948_v2  ;;  %v639_v6 = vld [vmem:[%s1252_s0 + $0x8] sm:$0xf]  ;;  %v807_v7 = vld [vmem:[%s1252_s0 + $0x10] sm:$0xf0]  ;;  %v833_v11 = vld [vmem:[%s1251_s1 + $0x20] sm:$0xff] }
   0x4   :  { %v640_v8 = vor.u32 %v807_v7, %v639_v6  ;;  %v834_v9 = vld [vmem:[%s1251_s1 + $0x28] sm:$0xff]  ;;  %v85_v12 = vld [vmem:[%s1253_s2] sm:$0xff]  ;;  %912 = vset.pattern.permute.xlu2 %v913_v14  ;;  %v832_v15 = vld [vmem:[%s1251_s1 + $0x18] sm:$0xff] }
   0x5   :  { %v975_v10 = vld [vmem:[%s1251_s1 + $0x68] sm:$0xff]  ;;  %v988_v13 = vld [vmem:[%s1251_s1 + $0x60] sm:$0xff]  ;;  %103 = vperm.xlu0 %910, %v85_v12   ;;  %v997_v16 = vld [vmem:[%s1251_s1 + $0x58] sm:$0xff] }
   0x6   :  { %435 = vmatpush.bf16.msra.mxu0 %v835_v3  ;;  %894 = vmatpush.bf16.msra.mxu3 %v835_v3  ;;  %v831_v17 = vld [vmem:[%s1251_s1 + $0x10] sm:$0xff]  ;;  %v86_v18 = vld [vmem:[%s1253_s2 + $0x8] sm:$0xff]  ;;  %v651_v20 = vld [vmem:[%s1252_s0 + $0x20] sm:$0xf] }
   0x7   :  { %539 = vmatpush.bf16.msra.mxu2 %v845_v4  ;;  %484 = vmatpush.bf16.msra.mxu1 %v960_v5  ;;  %v1009_v19 = vld [vmem:[%s1251_s1 + $0x50] sm:$0xff]  ;;  %v810_v21 = vld [vmem:[%s1252_s0 + $0x28] sm:$0xf0]  ;;  %v829_v26 = vld [vmem:[%s1251_s1] sm:$0xff] }
   0x8   :  { %v87_v22 = vld [vmem:[%s1253_s2 + $0x10] sm:$0xff]  ;;  %v652_v23 = vor.u32 %v810_v21, %v651_v20  ;;  %v830_v24 = vld [vmem:[%s1251_s1 + $0x8] sm:$0xff]  ;;  %v1033_v27 = vld [vmem:[%s1251_s1 + $0x40] sm:$0xff] }
   0x9   :  { %113 = vperm.xlu1 %911, %v87_v22   ;;  %v838_v25 = vld [vmem:[%s1251_s1 + $0x48] sm:$0xff]  ;;  %v631_v28 = vld [vmem:[%s1252_s0] sm:$0xf]  ;;  %v703_v30 = vld [vmem:[%s1252_s0 + $0x90] sm:$0xf] }
   0xa   :  { %797 = vmatmul.msk.bf16.vlgmr.msra.gmra.mxu2 %vm409_vm0, %v640_v8  ;;  %436 = vmatpush.bf16.msra.mxu0 %v834_v9  ;;  %v806_v29 = vld [vmem:[%s1252_s0 + $0x8] sm:$0xf0]  ;;  %v824_v31 = vld [vmem:[%s1252_s0 + $0x98] sm:$0xf0]  ;;  %v805_v32 = vld [vmem:[%s1252_s0 + $0x4] sm:$0xf] }
   0xb   :  { %895 = vmatpush.bf16.msra.mxu3 %v834_v9  ;;  %485 = vmatpush.bf16.msra.mxu1 %v975_v10  ;;  %v633_v33 = vld [vmem:[%s1252_s0 + $0xc] sm:$0xf0]  ;;  %v88_v34 = vld [vmem:[%s1253_s2 + $0x18] sm:$0xff]  ;;  %v632_v35 = vor.u32 %v806_v29, %v631_v28  ;;  %v704_v36 = vor.u32 %v824_v31, %v703_v30  ;;  %v813_v41 = vld [vmem:[%s1252_s0 + $0x40] sm:$0xf0] }
   0xc   :  { %v636_v37 = vor.u32 %v805_v32, %v633_v33  ;;  %v92_v38 = vld [vmem:[%s1253_s2 + $0x38] sm:$0xff]  ;;  %v91_v39 = vld [vmem:[%s1253_s2 + $0x30] sm:$0xff]  ;;  %v809_v44 = vld [vmem:[%s1252_s0 + $0x20] sm:$0xf0] }
   0xd   :  { %108 = vperm.xlu0 %910, %v86_v18   ;;  %v663_v40 = vld [vmem:[%s1252_s0 + $0x38] sm:$0xf]  ;;  %v715_v45 = vld [vmem:[%s1252_s0 + $0xa8] sm:$0xf]  ;;  %v95_v46 = vld [vmem:[%s1253_s2 + $0x50] sm:$0xff] }
   0xe   :  { %437 = vmatpush.bf16.msra.mxu0 %v833_v11  ;;  %v664_v42 = vor.u32 %v813_v41, %v663_v40  ;;  %v643_v43 = vld [vmem:[%s1252_s0 + $0x18] sm:$0xf]  ;;  %v94_v47 = vld [vmem:[%s1253_s2 + $0x48] sm:$0xff]  ;;  %v827_v48 = vld [vmem:[%s1252_s0 + $0xb0] sm:$0xf0] }
   0xf   :  { %896 = vmatpush.bf16.msra.mxu3 %v833_v11  ;;  %486 = vmatpush.bf16.msra.mxu1 %v988_v13  ;;  %v808_v49 = vld [vmem:[%s1252_s0 + $0x1c] sm:$0xf]  ;;  %v645_v50 = vld [vmem:[%s1252_s0 + $0x24] sm:$0xf0]  ;;  %v644_v51 = vor.u32 %v809_v44, %v643_v43  ;;  %v716_v52 = vor.u32 %v827_v48, %v715_v45  ;;  %v97_v55 = vld [vmem:[%s1253_s2 + $0x60] sm:$0xff] }
  0x10   :  { %v648_v53 = vor.u32 %v808_v49, %v645_v50  ;;  %v98_v54 = vld [vmem:[%s1253_s2 + $0x68] sm:$0xff]  ;;  %v675_v56 = vld [vmem:[%s1252_s0 + $0x50] sm:$0xf]  ;;  %v816_v57 = vld [vmem:[%s1252_s0 + $0x58] sm:$0xf0] }
  0x11   :  { %118 = vperm.xlu1 %911, %v88_v34   ;;  %v676_v58 = vor.u32 %v816_v57, %v675_v56  ;;  %v655_v59 = vld [vmem:[%s1252_s0 + $0x30] sm:$0xf]  ;;  %v812_v60 = vld [vmem:[%s1252_s0 + $0x38] sm:$0xf0]  ;;  %v823_v61 = vld [vmem:[%s1252_s0 + $0x94] sm:$0xf] }
  0x12   :  { %438 = vmatpush.bf16.msra.mxu0 %v832_v15  ;;  %v89_v62 = vld [vmem:[%s1253_s2 + $0x20] sm:$0xff]  ;;  %v811_v0 = vld [vmem:[%s1252_s0 + $0x34] sm:$0xf]  ;;  %v90_v6 = vld [vmem:[%s1253_s2 + $0x28] sm:$0xff] }
  0x13   :  { %897 = vmatpush.bf16.msra.mxu3 %v832_v15  ;;  %487 = vmatpush.bf16.msra.mxu1 %v997_v16  ;;  %v705_v63 = vld [vmem:[%s1252_s0 + $0x9c] sm:$0xf0]  ;;  %v687_v7 = vld [vmem:[%s1252_s0 + $0x68] sm:$0xf]  ;;  %v819_v8 = vld [vmem:[%s1252_s0 + $0x70] sm:$0xf0] }
  0x14   :  { %v657_v1 = vld [vmem:[%s1252_s0 + $0x3c] sm:$0xf0]  ;;  %123 = vperm.xlu2 %912, %v89_v62   ;;  %v708_v3 = vor.u32 %v823_v61, %v705_v63  ;;  %v688_v9 = vor.u32 %v819_v8, %v687_v7  ;;  %v815_v11 = vld [vmem:[%s1252_s0 + $0x50] sm:$0xf0]  ;;  %v826_v12 = vld [vmem:[%s1252_s0 + $0xac] sm:$0xf] }
  0x15   :  { %133 = vperm.xlu0 %910, %v91_v39   ;;  %v660_v4 = vor.u32 %v811_v0, %v657_v1  ;;  %v717_v14 = vld [vmem:[%s1252_s0 + $0xb4] sm:$0xf0]  ;;  %v814_v15 = vld [vmem:[%s1252_s0 + $0x4c] sm:$0xf]  ;;  %v699_v21 = vld [vmem:[%s1252_s0 + $0x80] sm:$0xf] }
  0x16   :  { %439 = vmatpush.bf16.msra.mxu0 %v831_v17  ;;  %v720_v18 = vor.u32 %v826_v12, %v717_v14  ;;  %v96_v20 = vld [vmem:[%s1253_s2 + $0x58] sm:$0xff]  ;;  %v822_v22 = vld [vmem:[%s1252_s0 + $0x88] sm:$0xf0]  ;;  %v681_v28 = vld [vmem:[%s1252_s0 + $0x6c] sm:$0xf0] }
  0x17   :  { %898 = vmatpush.bf16.msra.mxu3 %v831_v17  ;;  %488 = vmatpush.bf16.msra.mxu1 %v1009_v19  ;;  %v711_v31 = vld [vmem:[%s1252_s0 + $0x98] sm:$0xf]  ;;  %v825_v32 = vld [vmem:[%s1252_s0 + $0xa0] sm:$0xf0]  ;;  %v723_v40 = vld [vmem:[%s1252_s0 + $0xb0] sm:$0xf] }
  0x18   :  { %v712_v33 = vor.u32 %v825_v32, %v711_v31  ;;  %v691_v34 = vld [vmem:[%s1252_s0 + $0x78] sm:$0xf]  ;;  %v828_v41 = vld [vmem:[%s1252_s0 + $0xb8] sm:$0xf0] }
  0x19   :  { %138 = vperm.xlu1 %911, %v92_v38  }
  0x1a   :  { %798 = vmatmul.msk.bf16.gmra.mxu2 %vm409_vm0, %v652_v23  ;;  %440 = vmatpush.bf16.msra.mxu0 %v830_v24  ;;  %v700_v23 = vor.u32 %v822_v22, %v699_v21 }
  0x1b   :  { %899 = vmatpush.bf16.msra.mxu3 %v830_v24  ;;  %489 = vmatpush.bf16.msra.mxu1 %v838_v25  ;;  %v679_v24 = vld [vmem:[%s1252_s0 + $0x60] sm:$0xf] }
  0x1c   :  { %128 = vperm.xlu2 %912, %v90_v6  }
  0x1d   :  { %148 = vperm.xlu0 %910, %v94_v47  }
  0x1e   :  { %441 = vmatpush.bf16.msra.mxu0 %v829_v26 }
  0x1f   :  { %900 = vmatpush.bf16.msra.mxu3 %v829_v26  ;;  %490 = vmatpush.bf16.msra.mxu1 %v1033_v27  ;;  %v99_v26 = vld [vmem:[%s1253_s2 + $0x70] sm:$0xff] }
  0x21   :  { %442 = vmatmul.bf16.vlgmr.msra.gmra.mxu0 %v632_v35  ;;  %153 = vperm.xlu1 %911, %v95_v46   ;;  %v821_v35 = vld [vmem:[%s1252_s0 + $0x80] sm:$0xf0] }
  0x22   :  { %472 = vmatmul.bf16.vlgmr.msra.gmra.mxu3 %v704_v36  ;;  %491 = vmatmul.bf16.vlgmr.msra.gmra.mxu1 %v636_v37  ;;  %v820_v36 = vld [vmem:[%s1252_s0 + $0x7c] sm:$0xf]  ;;  %v693_v37 = vld [vmem:[%s1252_s0 + $0x84] sm:$0xf0]  ;;  %v692_v38 = vor.u32 %v821_v35, %v691_v34 }
  0x23   :  { %901 = vmatpush.bf16.msrb.mxu3 %v948_v2  ;;  %v656_v2 = vor.u32 %v812_v60, %v655_v59  ;;  %v696_v39 = vor.u32 %v820_v36, %v693_v37 }
  0x25   :  { %163 = vperm.xlu0 %910, %v97_v55  }
  0x27   :  { %902 = vmatpush.bf16.msrb.mxu3 %v960_v5  ;;  %v100_v5 = vld [vmem:[%s1253_s2 + $0x78] sm:$0xff] }
  0x29   :  { %168 = vperm.xlu1 %911, %v98_v54  }
  0x2a   :  { %799 = vmatmul.msk.bf16.gmra.mxu2 %vm409_vm0, %v664_v42  ;;  %v724_v42 = vor.u32 %v828_v41, %v723_v40 }
  0x2b   :  { %903 = vmatpush.bf16.msrb.mxu3 %v975_v10  ;;  %v667_v10 = vld [vmem:[%s1252_s0 + $0x48] sm:$0xf] }
  0x2c   :  { %v668_v17 = vor.u32 %v815_v11, %v667_v10 }
  0x2d   :  { %178 = vperm.xlu0 %910, %v100_v5  }
  0x2f   :  { %904 = vmatpush.bf16.msrb.mxu3 %v988_v13  ;;  %v93_v13 = vld [vmem:[%s1253_s2 + $0x40] sm:$0xff] }
  0x30   :  { %143 = vperm.xlu2 %912, %v93_v13  }
  0x31   :  { %447 = vmatmul.bf16.gmra.mxu0 %v644_v51 }
  0x32   :  { %477 = vmatmul.bf16.gmra.mxu3 %v716_v52  ;;  %496 = vmatmul.bf16.gmra.mxu1 %v648_v53 }
  0x33   :  { %905 = vmatpush.bf16.msrb.mxu3 %v997_v16  ;;  %v669_v16 = vld [vmem:[%s1252_s0 + $0x54] sm:$0xf0] }
  0x37   :  { %906 = vmatpush.bf16.msrb.mxu3 %v1009_v19  ;;  %v672_v19 = vor.u32 %v814_v15, %v669_v16 }
  0x38   :  { %158 = vperm.xlu2 %912, %v96_v20  }
  0x3a   :  { %800 = vmatmul.msk.bf16.gmra.mxu2 %vm409_vm0, %v676_v58 }
  0x3b   :  { %907 = vmatpush.bf16.msrb.mxu3 %v838_v25  ;;  %v818_v25 = vld [vmem:[%s1252_s0 + $0x68] sm:$0xf0] }
  0x3c   :  { %v680_v29 = vor.u32 %v818_v25, %v679_v24 }
  0x3f   :  { %908 = vmatpush.bf16.msrb.mxu3 %v1033_v27  ;;  %v817_v27 = vld [vmem:[%s1252_s0 + $0x64] sm:$0xf] }
  0x40   :  { %173 = vperm.xlu2 %912, %v99_v26   ;;  %v684_v30 = vor.u32 %v817_v27, %v681_v28 }
  0x41   :  { %452 = vmatmul.bf16.gmra.mxu0 %v656_v2 }
  0x42   :  { %521 = vmatmul.bf16.vlgmr.msrb.gmra.mxu3 %v708_v3  ;;  %501 = vmatmul.bf16.gmra.mxu1 %v660_v4 }
  0x4a   :  { %801 = vmatmul.msk.bf16.gmra.mxu2 %vm409_vm0, %v688_v9 }
  0x51   :  { %457 = vmatmul.bf16.gmra.mxu0 %v668_v17 }
  0x52   :  { %526 = vmatmul.bf16.gmra.mxu3 %v720_v18  ;;  %506 = vmatmul.bf16.gmra.mxu1 %v672_v19 }
  0x5a   :  { %802 = vmatmul.msk.bf16.gmra.mxu2 %vm409_vm0, %v700_v23 }
  0x61   :  { %462 = vmatmul.bf16.gmra.mxu0 %v680_v29 }
  0x62   :  { %511 = vmatmul.bf16.gmra.mxu1 %v684_v30 }
  0x6a   :  { %803 = vmatmul.msk.bf16.gmra.mxu2 %vm409_vm0, %v712_v33 }
  0x6e   :  { %v124_v13 = vpop.permute.xlu2 %123 }
  0x71   :  { %467 = vmatmul.bf16.gmra.mxu0 %v692_v38 }
  0x72   :  { %516 = vmatmul.bf16.gmra.mxu1 %v696_v39 }
  0x76   :  { %v129_v24 = vpop.permute.xlu2 %128 }
  0x77   :  { %v104_v45 = vpop.permute.xlu0 %103 }
  0x7a   :  { %804 = vmatmul.msk.bf16.gmra.mxu2 %vm409_vm0, %v724_v42 }
  0x7b   :  { %v114_v59 = vpop.permute.xlu1 %113 }
  0x7f   :  { %v109_v50 = vpop.permute.xlu0 %108 }
  0x83   :  { %v119_v5 = vpop.permute.xlu1 %118 }
  0x87   :  { %v134_v38 = vpop.permute.xlu0 %133 }
  0x8b   :  { %v139_v42 = vpop.permute.xlu1 %138 }
  0x8d   :  { %v541_v43 = vpop.f32.mrf.mxu2 }
  0x95   :  { %v543_v44 = vpop.f32.mrf.mxu2 }
  0x9d   :  { %v546_v46 = vpop.f32.mrf.mxu2 }
  0x9e   :  { %v443_v47 = vpop.f32.mrf.mxu0 }
  0x9f   :  { %v492_v48 = vpop.f32.mrf.mxu1  ;;  %v444_v49 = vadd.f32 %v443_v47, %v104_v45 }
  0xa1   :  { %v493_v51 = vadd.f32 %v492_v48, %v444_v49 }
  0xa3   :  { %v542_v56 = vadd.f32 %v541_v43, %v493_v51 }
  0xa5   :  { %v548_v52 = vpop.f32.mrf.mxu2  ;;  %v581_v60 = vmax.f32 %v542_v56, 0.0  ;;  %v1224_v11 = vpop.f32.mrf.mxu3 }
  0xa6   :  { %v445_v53 = vpop.f32.mrf.mxu0  ;;  %v154_v56 = vpop.permute.xlu1 %153 }
  0xa7   :  { %v446_v54 = vadd.f32 %v445_v53, %v109_v50  ;;  %v494_v55 = vpop.f32.mrf.mxu1 }
  0xa9   :  { %v495_v57 = vadd.f32 %v494_v55, %v446_v54 }
  0xab   :  { %v544_v58 = vadd.f32 %v543_v44, %v495_v57  ;;  %v149_v57 = vpop.permute.xlu0 %148 }
  0xad   :  { %v582_v61 = vmax.f32 %v544_v58, 0.0  ;;  %v551_v62 = vpop.f32.mrf.mxu2  ;;  %v475_v21 = vpop.f32.mrf.mxu3 }
  0xae   :  { %v448_v63 = vpop.f32.mrf.mxu0  ;;  %v144_v58 = vpop.permute.xlu2 %143 }
  0xaf   :  { %v850_v0 = vpack.c.bf16 %v582_v61, %v581_v60  ;;  %v497_v1 = vpop.f32.mrf.mxu1  ;;  %v449_v2 = vadd.f32 %v448_v63, %v114_v59 }
  0xb1   :  { %851 = vst [vmem:[%s1254_s3] sm:$0xff] %v850_v0   ;;  %v498_v3 = vadd.f32 %v497_v1, %v449_v2 }
  0xb3   :  { %v547_v9 = vadd.f32 %v546_v46, %v498_v3 }
  0xb5   :  { %v553_v4 = vpop.f32.mrf.mxu2  ;;  %v583_v14 = vmax.f32 %v547_v9, 0.0  ;;  %v1229_v35 = vpop.f32.mrf.mxu3 }
  0xb6   :  { %v450_v6 = vpop.f32.mrf.mxu0 }
  0xb7   :  { %v451_v7 = vadd.f32 %v450_v6, %v119_v5  ;;  %v499_v8 = vpop.f32.mrf.mxu1  ;;  %v169_v5 = vpop.permute.xlu1 %168 }
  0xb8   :  { %v164_v6 = vpop.permute.xlu0 %163 }
  0xb9   :  { %v500_v10 = vadd.f32 %v499_v8, %v451_v7 }
  0xbb   :  { %v549_v12 = vadd.f32 %v548_v52, %v500_v10 }
  0xbd   :  { %v584_v15 = vmax.f32 %v549_v12, 0.0  ;;  %v556_v16 = vpop.f32.mrf.mxu2  ;;  %v480_v46 = vpop.f32.mrf.mxu3 }
  0xbe   :  { %v453_v17 = vpop.f32.mrf.mxu0 }
  0xbf   :  { %v855_v18 = vpack.c.bf16 %v584_v15, %v583_v14  ;;  %v502_v19 = vpop.f32.mrf.mxu1  ;;  %v454_v20 = vadd.f32 %v453_v17, %v124_v13  ;;  %v476_v13 = vadd.f32 %v475_v21, %v169_v5  ;;  %v474_v14 = vadd.f32 %v1224_v11, %v164_v6  ;;  %v159_v15 = vpop.permute.xlu2 %158 }
  0xc1   :  { %887 = vst [vmem:[%s1254_s3 + $0x8] sm:$0xff] %v855_v18   ;;  %v503_v22 = vadd.f32 %v502_v19, %v454_v20 }
  0xc3   :  { %v552_v28 = vadd.f32 %v551_v62, %v503_v22 }
  0xc5   :  { %v558_v23 = vpop.f32.mrf.mxu2  ;;  %v585_v31 = vmax.f32 %v552_v28, 0.0  ;;  %v522_v59 = vpop.f32.mrf.mxu3 }
  0xc6   :  { %v455_v25 = vpop.f32.mrf.mxu0  ;;  %v523_v18 = vadd.f32 %v522_v59, %v474_v14 }
  0xc7   :  { %v456_v26 = vadd.f32 %v455_v25, %v129_v24  ;;  %v504_v27 = vpop.f32.mrf.mxu1 }
  0xc9   :  { %v505_v29 = vadd.f32 %v504_v27, %v456_v26 }
  0xcb   :  { %v554_v30 = vadd.f32 %v553_v4, %v505_v29 }
  0xcd   :  { %v586_v32 = vmax.f32 %v554_v30, 0.0  ;;  %v561_v33 = vpop.f32.mrf.mxu2  ;;  %v524_v7 = vpop.f32.mrf.mxu3 }
  0xce   :  { %v458_v34 = vpop.f32.mrf.mxu0  ;;  %v525_v17 = vadd.f32 %v524_v7, %v476_v13  ;;  %v174_v30 = vpop.permute.xlu2 %173 }
  0xcf   :  { %v860_v36 = vpack.c.bf16 %v586_v32, %v585_v31  ;;  %v507_v37 = vpop.f32.mrf.mxu1  ;;  %v459_v39 = vadd.f32 %v458_v34, %v134_v38  ;;  %v479_v34 = vadd.f32 %v1229_v35, %v174_v30 }
  0xd1   :  { %888 = vst [vmem:[%s1254_s3 + $0x10] sm:$0xff] %v860_v36   ;;  %v508_v40 = vadd.f32 %v507_v37, %v459_v39 }
  0xd3   :  { %v557_v47 = vadd.f32 %v556_v16, %v508_v40 }
  0xd5   :  { %v563_v41 = vpop.f32.mrf.mxu2  ;;  %v587_v50 = vmax.f32 %v557_v47, 0.0  ;;  %v527_v24 = vpop.f32.mrf.mxu3 }
  0xd6   :  { %v460_v43 = vpop.f32.mrf.mxu0  ;;  %v528_v39 = vadd.f32 %v527_v24, %v479_v34 }
  0xd7   :  { %v461_v44 = vadd.f32 %v460_v43, %v139_v42  ;;  %v509_v45 = vpop.f32.mrf.mxu1 }
  0xd9   :  { %v510_v48 = vadd.f32 %v509_v45, %v461_v44 }
  0xdb   :  { %v559_v49 = vadd.f32 %v558_v23, %v510_v48 }
  0xdd   :  { %v588_v51 = vmax.f32 %v559_v49, 0.0  ;;  %v566_v52 = vpop.f32.mrf.mxu2  ;;  %v529_v36 = vpop.f32.mrf.mxu3 }
  0xde   :  { %v463_v53 = vpop.f32.mrf.mxu0 }
  0xdf   :  { %v865_v54 = vpack.c.bf16 %v588_v51, %v587_v50  ;;  %v512_v55 = vpop.f32.mrf.mxu1  ;;  %v464_v60 = vadd.f32 %v463_v53, %v144_v58 }
  0xe1   :  { %889 = vst [vmem:[%s1254_s3 + $0x18] sm:$0xff] %v865_v54   ;;  %v513_v63 = vadd.f32 %v512_v55, %v464_v60 }
  0xe3   :  { %v562_v3 = vadd.f32 %v561_v33, %v513_v63  ;;  %v179_v33 = vpop.permute.xlu0 %178 }
  0xe4   :  { %v481_v37 = vadd.f32 %v480_v46, %v179_v33 }
  0xe5   :  { %v568_v61 = vpop.f32.mrf.mxu2 }
  0xe6   :  { %v465_v62 = vpop.f32.mrf.mxu0  ;;  %v530_v38 = vadd.f32 %v529_v36, %v481_v37 }
  0xe7   :  { %v466_v0 = vadd.f32 %v465_v62, %v149_v57  ;;  %v514_v1 = vpop.f32.mrf.mxu1 }
  0xe9   :  { %v515_v2 = vadd.f32 %v514_v1, %v466_v0 }
  0xeb   :  { %v564_v4 = vadd.f32 %v563_v41, %v515_v2 }
  0xed   :  { %v870_v8 = vpack.c.bf16 %v564_v4, %v562_v3  ;;  %v571_v9 = vpop.f32.mrf.mxu2 }
  0xee   :  { %v468_v10 = vpop.f32.mrf.mxu0  ;;  %v572_v20 = vadd.f32 %v571_v9, %v523_v18 }
  0xef   :  { %871 = vst [vmem:[%s1255_s4] sm:$0xff] %v870_v8   ;;  %v517_v12 = vpop.f32.mrf.mxu1  ;;  %v469_v16 = vadd.f32 %v468_v10, %v154_v56 }
  0xf1   :  { %v518_v25 = vadd.f32 %v517_v12, %v469_v16 }
  0xf3   :  { %v567_v21 = vadd.f32 %v566_v52, %v518_v25 }
  0xf5   :  { %v573_v19 = vpop.f32.mrf.mxu2 }
  0xf6   :  { %v574_v22 = vadd.f32 %v573_v19, %v525_v17  ;;  %v470_v23 = vpop.f32.mrf.mxu0 }
  0xf7   :  { %v471_v26 = vadd.f32 %v470_v23, %v159_v15  ;;  %v519_v27 = vpop.f32.mrf.mxu1 }
  0xf8   :  { %v880_v28 = vpack.c.bf16 %v574_v22, %v572_v20 }
  0xf9   :  { %v520_v29 = vadd.f32 %v519_v27, %v471_v26 }
  0xfa   :  { %891 = vst [vmem:[%s1255_s4 + $0x10] sm:$0xff] %v880_v28  }
  0xfb   :  { %v569_v11 = vadd.f32 %v568_v61, %v520_v29 }
  0xfd   :  { %v875_v31 = vpack.c.bf16 %v569_v11, %v567_v21  ;;  %v576_v32 = vpop.f32.mrf.mxu2 }
  0xfe   :  { %v577_v41 = vadd.f32 %v576_v32, %v528_v39 }
  0xff   :  { %890 = vst [vmem:[%s1255_s4 + $0x8] sm:$0xff] %v875_v31  }
 0x105   :  { %v578_v40 = vpop.f32.mrf.mxu2 }
 0x106   :  { %v579_v42 = vadd.f32 %v578_v40, %v530_v38 }
 0x108   :  { %v885_v43 = vpack.c.bf16 %v579_v42, %v577_v41 }
 0x10a   :  { %892 = vst [vmem:[%s1255_s4 + $0x18] sm:$0xff] %v885_v43  }

// kernel: cifar_resnet_forward.13
= control target key start
LH: loop header
LB: loop body
LE: loop exit
PB: predicated region body
PF: predicated region fallthrough
CT: control target
= control target key end

     0   :  { %v1118_v3 = vmov 0   ;;  %vm487_vm0 = vcmask 523264   ;;  %vm777_vm1 = vcmask 15360   ;;  %vm779_vm2 = vcmask 9216   ;;  %s1519_s1 = inlined_call_operand.vmem [shape: bf16[576,128], index: 1, kind: input, shape index: {}]   ;;  %s1520_s2 = inlined_call_operand.vmem [shape: f32[64,1], index: 2, kind: input, shape index: {}]   ;;  %s1521_s0 = inlined_call_operand.vmem [shape: bf16[64,576], index: 0, kind: input, shape index: {}]   ;;  %s1522_s6 = inlined_call_operand.vmem [shape: f32[10,1], index: 6, kind: input, shape index: {}]   ;;  %s1523_s4 = inlined_call_operand.vmem [shape: f32[128,2], index: 4, kind: input, shape index: {}]   ;;  %s1524_s3 = inlined_call_operand.vmem [shape: bf16[64,128], index: 3, kind: input, shape index: {}]   ;;  %s1525_s5 = inlined_call_operand.vmem [shape: f32[10,64], index: 5, kind: input, shape index: {}]   ;;  %s1526_s7 = inlined_call_operand.vmem [shape: f32[10,2], index: 7, kind: output, shape index: {}]  }
   0x1   :  { %v1042_v0 = vld [vmem:[%s1519_s1 + $0x38] sm:$0xff]  ;;  %1116 = vset.pattern.permute.xlu1 %v1118_v3  ;;  %1115 = vset.pattern.permute.xlu0 %v1118_v3  ;;  %v1041_v4 = vld [vmem:[%s1519_s1 + $0x30] sm:$0xff]  ;;  %v1040_v7 = vld [vmem:[%s1519_s1 + $0x28] sm:$0xff] }
   0x2   :  { %v1050_v1 = vld [vmem:[%s1519_s1 + $0x78] sm:$0xff]  ;;  %1117 = vset.pattern.permute.xlu2 %v1118_v3  ;;  %1090 = vmatpush.bf16.msra.mxu3 %v1042_v0  ;;  %v1049_v5 = vld [vmem:[%s1519_s1 + $0x70] sm:$0xff]  ;;  %v1048_v8 = vld [vmem:[%s1519_s1 + $0x68] sm:$0xff] }
   0x3   :  { %v1058_v2 = vld [vmem:[%s1519_s1 + $0xb8] sm:$0xff]  ;;  %529 = vmatpush.bf16.msra.mxu1 %v1050_v1  ;;  %v1057_v6 = vld [vmem:[%s1519_s1 + $0xb0] sm:$0xff]  ;;  %500 = vmatpush.bf16.msra.mxu0 %v1042_v0  ;;  %v1056_v9 = vld [vmem:[%s1519_s1 + $0xa8] sm:$0xff] }
   0x4   :  { %558 = vmatpush.bf16.msra.mxu2 %v1058_v2  ;;  %v1039_v10 = vld [vmem:[%s1519_s1 + $0x20] sm:$0xff]  ;;  %v128_v12 = vld [vmem:[%s1520_s2 + $0x28] sm:$0xff]  ;;  %v1038_v14 = vld [vmem:[%s1519_s1 + $0x18] sm:$0xff] }
   0x5   :  { %v1047_v11 = vld [vmem:[%s1519_s1 + $0x60] sm:$0xff]  ;;  %158 = vperm.xlu1 %1116, %v128_v12   ;;  %v1046_v15 = vld [vmem:[%s1519_s1 + $0x58] sm:$0xff]  ;;  %v129_v17 = vld [vmem:[%s1520_s2 + $0x30] sm:$0xff] }
   0x6   :  { %1091 = vmatpush.bf16.msra.mxu3 %v1041_v4  ;;  %v1055_v13 = vld [vmem:[%s1519_s1 + $0xa0] sm:$0xff]  ;;  %v1054_v16 = vld [vmem:[%s1519_s1 + $0x98] sm:$0xff]  ;;  %v1037_v18 = vld [vmem:[%s1519_s1 + $0x10] sm:$0xff] }
   0x7   :  { %530 = vmatpush.bf16.msra.mxu1 %v1049_v5  ;;  %501 = vmatpush.bf16.msra.mxu0 %v1041_v4  ;;  %v1045_v19 = vld [vmem:[%s1519_s1 + $0x50] sm:$0xff]  ;;  %v126_v20 = vld [vmem:[%s1520_s2 + $0x18] sm:$0xff]  ;;  %v1036_v22 = vld [vmem:[%s1519_s1 + $0x8] sm:$0xff] }
   0x8   :  { %559 = vmatpush.bf16.msra.mxu2 %v1057_v6  ;;  %v1053_v21 = vld [vmem:[%s1519_s1 + $0x90] sm:$0xff]  ;;  %148 = vperm.xlu0 %1115, %v126_v20   ;;  %v1044_v23 = vld [vmem:[%s1519_s1 + $0x48] sm:$0xff]  ;;  %v1035_v25 = vld [vmem:[%s1519_s1] sm:$0xff] }
   0x9   :  { %v1052_v24 = vld [vmem:[%s1519_s1 + $0x88] sm:$0xff]  ;;  %v125_v26 = vld [vmem:[%s1520_s2 + $0x10] sm:$0xff]  ;;  %v1043_v27 = vld [vmem:[%s1519_s1 + $0x40] sm:$0xff] }
   0xa   :  { %1092 = vmatpush.bf16.msra.mxu3 %v1040_v7  ;;  %v1051_v28 = vld [vmem:[%s1519_s1 + $0x80] sm:$0xff]  ;;  %v807_v29 = vld [vmem:[%s1521_s0 + $0x28] sm:$0xf]  ;;  %v1022_v30 = vld [vmem:[%s1521_s0 + $0x38] sm:$0xf0] }
   0xb   :  { %531 = vmatpush.bf16.msra.mxu1 %v1048_v8  ;;  %502 = vmatpush.bf16.msra.mxu0 %v1040_v7  ;;  %v1015_v31 = vld [vmem:[%s1521_s0 + $0x4] sm:$0xf]  ;;  %v789_v32 = vld [vmem:[%s1521_s0 + $0x14] sm:$0xf0]  ;;  %v795_v33 = vld [vmem:[%s1521_s0 + $0x8] sm:$0xf]  ;;  %v808_v38 = vor.u32 %v1022_v30, %v807_v29 }
   0xc   :  { %560 = vmatpush.bf16.msra.mxu2 %v1056_v9  ;;  %v1018_v34 = vld [vmem:[%s1521_s0 + $0x18] sm:$0xf0]  ;;  %v787_v36 = vld [vmem:[%s1521_s0] sm:$0xf]  ;;  %v1017_v37 = vld [vmem:[%s1521_s0 + $0x10] sm:$0xf0]  ;;  %v792_v39 = vor.u32 %v1015_v31, %v789_v32 }
   0xd   :  { %163 = vperm.xlu1 %1116, %v129_v17   ;;  %v1066_v35 = vld [vmem:[%s1519_s1 + $0xf8] sm:$0xff]  ;;  %v796_v40 = vor.u32 %v1018_v34, %v795_v33  ;;  %v1065_v41 = vld [vmem:[%s1519_s1 + $0xf0] sm:$0xff]  ;;  %v788_v42 = vor.u32 %v1017_v37, %v787_v36  ;;  %v127_v44 = vld [vmem:[%s1520_s2 + $0x20] sm:$0xff] }
   0xe   :  { %1093 = vmatpush.bf16.msra.mxu3 %v1039_v10  ;;  %v1070_v43 = vld [vmem:[%s1519_s1 + $0x118] sm:$0xff]  ;;  %v1064_v45 = vld [vmem:[%s1519_s1 + $0xe8] sm:$0xff]  ;;  %v1069_v46 = vld [vmem:[%s1519_s1 + $0x110] sm:$0xff] }
   0xf   :  { %532 = vmatpush.bf16.msra.mxu1 %v1047_v11  ;;  %503 = vmatpush.bf16.msra.mxu0 %v1039_v10  ;;  %v1063_v47 = vld [vmem:[%s1519_s1 + $0xe0] sm:$0xff]  ;;  %v1068_v48 = vld [vmem:[%s1519_s1 + $0x108] sm:$0xff]  ;;  %v827_v49 = vld [vmem:[%s1521_s0 + $0x50] sm:$0xf] }
  0x10   :  { %561 = vmatpush.bf16.msra.mxu2 %v1055_v13  ;;  %153 = vperm.xlu0 %1115, %v127_v44   ;;  %v1027_v50 = vld [vmem:[%s1521_s0 + $0x60] sm:$0xf0]  ;;  %v1020_v51 = vld [vmem:[%s1521_s0 + $0x2c] sm:$0xf]  ;;  %v809_v52 = vld [vmem:[%s1521_s0 + $0x3c] sm:$0xf0] }
  0x11   :  { %v815_v53 = vld [vmem:[%s1521_s0 + $0x30] sm:$0xf]  ;;  %v1023_v54 = vld [vmem:[%s1521_s0 + $0x40] sm:$0xf0]  ;;  %v1062_v55 = vld [vmem:[%s1519_s1 + $0xd8] sm:$0xff]  ;;  %v828_v57 = vor.u32 %v1027_v50, %v827_v49  ;;  %v812_v58 = vor.u32 %v1020_v51, %v809_v52 }
  0x12   :  { %1094 = vmatpush.bf16.msra.mxu3 %v1038_v14  ;;  %v1067_v56 = vld [vmem:[%s1519_s1 + $0x100] sm:$0xff]  ;;  %v816_v59 = vor.u32 %v1023_v54, %v815_v53  ;;  %v1061_v60 = vld [vmem:[%s1519_s1 + $0xd0] sm:$0xff]  ;;  %v124_v0 = vld [vmem:[%s1520_s2 + $0x8] sm:$0xff] }
  0x13   :  { %533 = vmatpush.bf16.msra.mxu1 %v1046_v15  ;;  %504 = vmatpush.bf16.msra.mxu0 %v1038_v14  ;;  %v803_v61 = vld [vmem:[%s1521_s0 + $0x10] sm:$0xf]  ;;  %v1019_v62 = vld [vmem:[%s1521_s0 + $0x20] sm:$0xf0]  ;;  %v1060_v1 = vld [vmem:[%s1519_s1 + $0xc8] sm:$0xff] }
  0x14   :  { %562 = vmatpush.bf16.msra.mxu2 %v1054_v16  ;;  %v804_v63 = vor.u32 %v1019_v62, %v803_v61  ;;  %v1059_v2 = vld [vmem:[%s1519_s1 + $0xc0] sm:$0xff]  ;;  %v847_v3 = vld [vmem:[%s1521_s0 + $0x78] sm:$0xf]  ;;  %v1032_v4 = vld [vmem:[%s1521_s0 + $0x88] sm:$0xf0] }
  0x15   :  { %143 = vperm.xlu1 %1116, %v125_v26   ;;  %v1025_v5 = vld [vmem:[%s1521_s0 + $0x54] sm:$0xf]  ;;  %v829_v6 = vld [vmem:[%s1521_s0 + $0x64] sm:$0xf0]  ;;  %v835_v7 = vld [vmem:[%s1521_s0 + $0x58] sm:$0xf]  ;;  %v848_v9 = vor.u32 %v1032_v4, %v847_v3 }
  0x16   :  { %1095 = vmatpush.bf16.msra.mxu3 %v1037_v18  ;;  %v1028_v8 = vld [vmem:[%s1521_s0 + $0x68] sm:$0xf0]  ;;  %v832_v10 = vor.u32 %v1025_v5, %v829_v6  ;;  %v823_v12 = vld [vmem:[%s1521_s0 + $0x38] sm:$0xf]  ;;  %v123_v15 = vld [vmem:[%s1520_s2] sm:$0xff] }
  0x17   :  { %534 = vmatpush.bf16.msra.mxu1 %v1045_v19  ;;  %505 = vmatpush.bf16.msra.mxu0 %v1037_v18  ;;  %v836_v11 = vor.u32 %v1028_v8, %v835_v7  ;;  %v1024_v13 = vld [vmem:[%s1521_s0 + $0x48] sm:$0xf0]  ;;  %v1030_v16 = vld [vmem:[%s1521_s0 + $0x7c] sm:$0xf]  ;;  %v849_v17 = vld [vmem:[%s1521_s0 + $0x8c] sm:$0xf0] }
  0x18   :  { %563 = vmatpush.bf16.msra.mxu2 %v1053_v21  ;;  %138 = vperm.xlu0 %1115, %v124_v0   ;;  %v824_v14 = vor.u32 %v1024_v13, %v823_v12  ;;  %v1016_v18 = vld [vmem:[%s1521_s0 + $0xc] sm:$0xf]  ;;  %v797_v19 = vld [vmem:[%s1521_s0 + $0x1c] sm:$0xf0]  ;;  %v1033_v21 = vld [vmem:[%s1521_s0 + $0x90] sm:$0xf0] }
  0x19   :  { %133 = vperm.xlu2 %1117, %v123_v15   ;;  %v855_v20 = vld [vmem:[%s1521_s0 + $0x80] sm:$0xf]  ;;  %v1029_v26 = vld [vmem:[%s1521_s0 + $0x70] sm:$0xf0]  ;;  %v737_v29 = vld [vmem:[%s1522_s6 + $0x8] sm:$0x3] }
  0x1a   :  { %1096 = vmatpush.bf16.msra.mxu3 %v1036_v22  ;;  %v1021_v30 = vld [vmem:[%s1521_s0 + $0x34] sm:$0xf]  ;;  %v817_v31 = vld [vmem:[%s1521_s0 + $0x44] sm:$0xf0]  ;;  %v1034_v34 = vld [vmem:[%s1521_s0 + $0x98] sm:$0xf0] }
  0x1b   :  { %535 = vmatpush.bf16.msra.mxu1 %v1044_v23  ;;  %506 = vmatpush.bf16.msra.mxu0 %v1036_v22  ;;  %v852_v22 = vor.u32 %v1030_v16, %v849_v17  ;;  %v800_v23 = vor.u32 %v1016_v18, %v797_v19  ;;  %v820_v32 = vor.u32 %v1021_v30, %v817_v31  ;;  %v863_v33 = vld [vmem:[%s1521_s0 + $0x88] sm:$0xf]  ;;  %v1026_v36 = vld [vmem:[%s1521_s0 + $0x5c] sm:$0xf]  ;;  %v837_v37 = vld [vmem:[%s1521_s0 + $0x6c] sm:$0xf0] }
  0x1c   :  { %564 = vmatpush.bf16.msra.mxu2 %v1052_v24  ;;  %v856_v24 = vor.u32 %v1033_v21, %v855_v20  ;;  %v691_v44 = vld [vmem:[%s1523_s4 + $0x70] sm:$0xff]  ;;  %v686_v50 = vld [vmem:[%s1523_s4 + $0x48] sm:$0xff]  ;;  %v685_v52 = vld [vmem:[%s1523_s4 + $0x40] sm:$0xff] }
  0x1d   :  { %v687_v49 = vld [vmem:[%s1523_s4 + $0x50] sm:$0xff]  ;;  %v684_v53 = vld [vmem:[%s1523_s4 + $0x38] sm:$0xff]  ;;  %v678_v61 = vld [vmem:[%s1523_s4 + $0x8] sm:$0xff] }
  0x1e   :  { %1097 = vmatpush.bf16.msra.mxu3 %v1035_v25  ;;  %v683_v54 = vld [vmem:[%s1523_s4 + $0x30] sm:$0xff]  ;;  %v1072_v16 = vld [vmem:[%s1524_s3] sm:$0xff]  }
  0x1f   :  { %536 = vmatpush.bf16.msra.mxu1 %v1043_v27  ;;  %507 = vmatpush.bf16.msra.mxu0 %v1035_v25  ;;  %v843_v25 = vld [vmem:[%s1521_s0 + $0x60] sm:$0xf] }
  0x20   :  { %565 = vmatpush.bf16.msra.mxu2 %v1051_v28  ;;  %v844_v27 = vor.u32 %v1029_v26, %v843_v25  ;;  %v130_v28 = vld [vmem:[%s1520_s2 + $0x38] sm:$0xff]  ;;  %745 = vperm.xlu0 %1115, %v737_v29  }
  0x21   :  { %513 = vmatmul.bf16.vlgmr.msra.gmra.mxu3 %v808_v38  ;;  %168 = vperm.xlu2 %1117, %v130_v28   ;;  %v840_v38 = vor.u32 %v1026_v36, %v837_v37 }
  0x22   :  { %587 = vmatpush.bf16.msrb.mxu3 %v1066_v35  ;;  %537 = vmatmul.bf16.vlgmr.msra.gmra.mxu1 %v792_v39  ;;  %v864_v35 = vor.u32 %v1034_v34, %v863_v33  ;;  %v1031_v39 = vld [vmem:[%s1521_s0 + $0x84] sm:$0xf]  ;;  %v1074_v34 = vunpack.c.h.bf16 %v1072_v16 }
  0x23   :  { %566 = vmatmul.bf16.vlgmr.msra.gmra.mxu2 %v796_v40  ;;  %508 = vmatmul.bf16.vlgmr.msra.gmra.mxu0 %v788_v42  ;;  %v857_v40 = vld [vmem:[%s1521_s0 + $0x94] sm:$0xf0]  ;;  %v736_v42 = vld [vmem:[%s1522_s6] sm:$0xff] }
  0x24   :  { %620 = vmatpush.bf16.msrb.mxu0 %v1070_v43  ;;  %v692_v43 = vld [vmem:[%s1523_s4 + $0x78] sm:$0xff] }
  0x25   :  { %1098 = vmatpush.msrb.mxu1 %v692_v43 }
  0x26   :  { %588 = vmatpush.bf16.msrb.mxu3 %v1065_v41  ;;  %v860_v41 = vor.u32 %v1031_v39, %v857_v40 }
  0x27   :  { %1099 = vmatpush.msrb.mxu1 %v691_v44 }
  0x28   :  { %621 = vmatpush.bf16.msrb.mxu0 %v1069_v46 }
  0x29   :  { %740 = vperm.xlu2 %1117, %v736_v42  }
  0x2a   :  { %589 = vmatpush.bf16.msrb.mxu3 %v1064_v45  ;;  %v690_v45 = vld [vmem:[%s1523_s4 + $0x68] sm:$0xff] }
  0x2b   :  { %1100 = vmatpush.msrb.mxu1 %v690_v45 }
  0x2c   :  { %622 = vmatpush.bf16.msrb.mxu0 %v1068_v48  ;;  %v688_v48 = vld [vmem:[%s1523_s4 + $0x58] sm:$0xff] }
  0x2e   :  { %590 = vmatpush.bf16.msrb.mxu3 %v1063_v47  ;;  %v689_v47 = vld [vmem:[%s1523_s4 + $0x60] sm:$0xff] }
  0x2f   :  { %1101 = vmatpush.msrb.mxu1 %v689_v47 }
  0x30   :  { %623 = vmatpush.bf16.msrb.mxu0 %v1067_v56 }
  0x31   :  { %518 = vmatmul.bf16.gmra.mxu3 %v828_v57  ;;  %1102 = vmatpush.msrb.mxu1 %v688_v48 }
  0x32   :  { %591 = vmatpush.bf16.msrb.mxu3 %v1062_v55  ;;  %542 = vmatmul.bf16.gmra.mxu1 %v812_v58  ;;  %v682_v55 = vld [vmem:[%s1523_s4 + $0x28] sm:$0xff]  ;;  %v681_v58 = vld [vmem:[%s1523_s4 + $0x20] sm:$0xff] }
  0x33   :  { %571 = vmatmul.bf16.gmra.mxu2 %v816_v59  ;;  %1009 = vmatmul.msk.bf16.vlgmr.msrb.gmra.mxu0 %vm487_vm0, %v804_v63  ;;  %v680_v59 = vld [vmem:[%s1523_s4 + $0x18] sm:$0xff]  ;;  %v677_v63 = vld [vmem:[%s1523_s4] sm:$0xff] }
  0x34   :  { %693 = vmatpush.msra.mxu0 %v692_v43  ;;  %1103 = vmatpush.msrb.mxu1 %v687_v49 }
  0x36   :  { %592 = vmatpush.bf16.msrb.mxu3 %v1061_v60  ;;  %694 = vmatpush.msra.mxu0 %v691_v44  ;;  %v679_v60 = vld [vmem:[%s1523_s4 + $0x10] sm:$0xff] }
  0x37   :  { %1104 = vmatpush.msrb.mxu1 %v686_v50 }
  0x38   :  { %695 = vmatpush.msra.mxu0 %v690_v45 }
  0x39   :  { %1105 = vmatpush.msrb.mxu1 %v685_v52 }
  0x3a   :  { %593 = vmatpush.bf16.msrb.mxu3 %v1060_v1  ;;  %696 = vmatpush.msra.mxu0 %v689_v47 }
  0x3b   :  { %1106 = vmatpush.msrb.mxu1 %v684_v53 }
  0x3c   :  { %697 = vmatpush.msra.mxu0 %v688_v48 }
  0x3d   :  { %1107 = vmatpush.msrb.mxu1 %v683_v54 }
  0x3e   :  { %594 = vmatpush.bf16.msrb.mxu3 %v1059_v2  ;;  %698 = vmatpush.msra.mxu0 %v687_v49 }
  0x3f   :  { %1108 = vmatpush.msrb.mxu1 %v682_v55 }
  0x40   :  { %699 = vmatpush.msra.mxu0 %v686_v50 }
  0x41   :  { %523 = vmatmul.bf16.gmra.mxu3 %v848_v9  ;;  %1109 = vmatpush.msrb.mxu1 %v681_v58 }
  0x42   :  { %547 = vmatmul.bf16.gmra.mxu1 %v832_v10  ;;  %700 = vmatpush.msra.mxu0 %v685_v52 }
  0x43   :  { %576 = vmatmul.bf16.gmra.mxu2 %v836_v11  ;;  %1010 = vmatmul.msk.bf16.gmra.mxu0 %vm487_vm0, %v824_v14 }
  0x44   :  { %701 = vmatpush.msra.mxu0 %v684_v53  ;;  %1110 = vmatpush.msrb.mxu1 %v680_v59 }
  0x46   :  { %702 = vmatpush.msra.mxu0 %v683_v54  ;;  %1111 = vmatpush.msrb.mxu1 %v679_v60 }
  0x48   :  { %703 = vmatpush.msra.mxu0 %v682_v55  ;;  %1112 = vmatpush.msrb.mxu1 %v678_v61 }
  0x4a   :  { %704 = vmatpush.msra.mxu0 %v681_v58  ;;  %1113 = vmatpush.msrb.mxu1 %v677_v63 }
  0x4c   :  { %705 = vmatpush.msra.mxu0 %v680_v59 }
  0x4e   :  { %706 = vmatpush.msra.mxu0 %v679_v60 }
  0x50   :  { %707 = vmatpush.msra.mxu0 %v678_v61 }
  0x51   :  { %595 = vmatmul.bf16.vlgmr.msrb.gmra.mxu3 %v800_v23  ;;  %v1073_v23 = vunpack.c.l.bf16 %v1072_v16 }
  0x52   :  { %552 = vmatmul.bf16.gmra.mxu1 %v852_v22  ;;  %708 = vmatpush.msra.mxu0 %v677_v63 }
  0x53   :  { %581 = vmatmul.bf16.gmra.mxu2 %v856_v24  ;;  %1011 = vmatmul.msk.bf16.gmra.mxu0 %vm487_vm0, %v844_v27 }
  0x61   :  { %600 = vmatmul.bf16.gmra.mxu3 %v820_v32 }
  0x63   :  { %1012 = vmatmul.msk.bf16.gmra.mxu0 %vm487_vm0, %v864_v35 }
  0x71   :  { %605 = vmatmul.bf16.gmra.mxu3 %v840_v38 }
  0x73   :  { %v134_v9 = vpop.permute.xlu2 %133 }
  0x77   :  { %v1479_v5 = vpop.permute.xlu1 %158 }
  0x7a   :  { %v149_v0 = vpop.permute.xlu0 %148 }
  0x7f   :  { %v1483_v15 = vpop.permute.xlu1 %163 }
  0x81   :  { %610 = vmatmul.bf16.gmra.mxu3 %v860_v41  ;;  %v1087_v41 = vld [vmem:[%s1524_s3 + $0x8] sm:$0xff]  }
  0x82   :  { %v154_v6 = vpop.permute.xlu0 %153  ;;  %v1077_v47 = vunpack.c.l.bf16 %v1087_v41  ;;  %v1078_v60 = vunpack.c.h.bf16 %v1087_v41 }
  0x87   :  { %v144_v28 = vpop.permute.xlu1 %143 }
  0x8a   :  { %v139_v14 = vpop.permute.xlu0 %138 }
  0x9f   :  { %v538_v2 = vpop.f32.mrf.mxu1 }
  0xa0   :  { %v509_v57 = vpop.f32.mrf.mxu0 }
  0xa1   :  { %v510_v10 = vadd.f32 %v509_v57, %v134_v9 }
  0xa3   :  { %v539_v13 = vadd.f32 %v538_v2, %v510_v10 }
  0xa4   :  { %v1430_v46 = vpop.f32.mrf.mxu3 }
  0xa5   :  { %v515_v36 = vadd.f32 %v1430_v46, %v144_v28 }
  0xa6   :  { %v567_v3 = vpop.f32.mrf.mxu2 }
  0xa7   :  { %v540_v8 = vpop.f32.mrf.mxu1  ;;  %v568_v19 = vadd.f32 %v567_v3, %v539_v13 }
  0xa8   :  { %v511_v1 = vpop.f32.mrf.mxu0 }
  0xa9   :  { %v512_v18 = vadd.f32 %v511_v1, %v139_v14 }
  0xab   :  { %v541_v25 = vadd.f32 %v540_v8, %v512_v18 }
  0xac   :  { %v1444_v51 = vpop.f32.mrf.mxu3 }
  0xad   :  { %v517_v49 = vadd.f32 %v1444_v51, %v149_v0  ;;  %v1088_v51 = vld [vmem:[%s1524_s3 + $0x10] sm:$0xff]  }
  0xae   :  { %v569_v11 = vpop.f32.mrf.mxu2  ;;  %v1081_v13 = vunpack.c.l.bf16 %v1088_v51 }
  0xaf   :  { %v543_v20 = vpop.f32.mrf.mxu1  ;;  %v570_v30 = vadd.f32 %v569_v11, %v541_v25 }
  0xb0   :  { %v625_v7 = vpop.f32.mrf.mxu0  ;;  %v544_v39 = vadd.f32 %v543_v20, %v515_v36 }
  0xb4   :  { %v1458_v56 = vpop.f32.mrf.mxu3 }
  0xb5   :  { %v520_v61 = vadd.f32 %v1458_v56, %v154_v6 }
  0xb6   :  { %v572_v24 = vpop.f32.mrf.mxu2 }
  0xb7   :  { %v545_v35 = vpop.f32.mrf.mxu1  ;;  %v573_v42 = vadd.f32 %v572_v24, %v544_v39 }
  0xb8   :  { %v627_v17 = vpop.f32.mrf.mxu0  ;;  %v546_v46 = vadd.f32 %v545_v35, %v517_v49 }
  0xbc   :  { %v1472_v62 = vpop.f32.mrf.mxu3 }
  0xbd   :  { %v522_v14 = vadd.f32 %v1472_v62, %v1479_v5  ;;  %v1089_v62 = vld [vmem:[%s1524_s3 + $0x18] sm:$0xff]   ;;  %v169_v5 = vpop.permute.xlu2 %168 }
  0xbe   :  { %v574_v38 = vpop.f32.mrf.mxu2 }
  0xbf   :  { %v548_v52 = vpop.f32.mrf.mxu1  ;;  %v575_v55 = vadd.f32 %v574_v38, %v546_v46 }
  0xc0   :  { %v630_v32 = vpop.f32.mrf.mxu0  ;;  %v549_v2 = vadd.f32 %v548_v52, %v520_v61 }
  0xc4   :  { %v1477_v4 = vpop.f32.mrf.mxu3 }
  0xc5   :  { %v525_v25 = vadd.f32 %v1477_v4, %v1483_v15 }
  0xc6   :  { %v577_v54 = vpop.f32.mrf.mxu2 }
  0xc7   :  { %v578_v0 = vadd.f32 %v577_v54, %v549_v2 }
  0xc8   :  { %v632_v48 = vpop.f32.mrf.mxu0 }
  0xcc   :  { %v1481_v12 = vpop.f32.mrf.mxu3 }
  0xcd   :  { %v527_v36 = vadd.f32 %v1481_v12, %v169_v5 }
  0xce   :  { %v579_v9 = vpop.f32.mrf.mxu2 }
  0xd0   :  { %v635_v1 = vpop.f32.mrf.mxu0 }
  0xd4   :  { %v596_v21 = vpop.f32.mrf.mxu3 }
  0xd5   :  { %v597_v22 = vadd.f32 %v596_v21, %v568_v19 }
  0xd6   :  { %v582_v24 = vpop.f32.mrf.mxu2 }
  0xd7   :  { %v626_v26 = vadd.f32 %v625_v7, %v597_v22  ;;  %v550_v7 = vpop.f32.mrf.mxu1 }
  0xd8   :  { %v551_v6 = vadd.f32 %v550_v7, %v522_v14 }
  0xd9   :  { %v661_v27 = vadd.f32 %v1073_v23, %v626_v26  ;;  %v1082_v23 = vunpack.c.h.bf16 %v1088_v51 }
  0xda   :  { %v580_v18 = vadd.f32 %v579_v9, %v551_v6 }
  0xdb   :  { %v669_v29 = vmax.f32 %v661_v27, 0.0 }
  0xdc   :  { %v598_v31 = vpop.f32.mrf.mxu3 }
  0xdd   :  { %v599_v33 = vadd.f32 %v598_v31, %v570_v30  ;;  %709 = vmatmul.f32.vlgmr.msra.gmra.mxu0 %v669_v29 }
  0xde   :  { %v584_v4 = vpop.f32.mrf.mxu2 }
  0xdf   :  { %v628_v37 = vadd.f32 %v627_v17, %v599_v33  ;;  %v637_v17 = vpop.f32.mrf.mxu0  ;;  %v553_v20 = vpop.f32.mrf.mxu1 }
  0xe0   :  { %v554_v27 = vadd.f32 %v553_v20, %v525_v25 }
  0xe1   :  { %v662_v40 = vadd.f32 %v1074_v34, %v628_v37  ;;  %v1085_v34 = vunpack.c.l.bf16 %v1089_v62 }
  0xe2   :  { %v583_v29 = vadd.f32 %v582_v24, %v554_v27 }
  0xe3   :  { %v670_v43 = vmax.f32 %v662_v40, 0.0 }
  0xe4   :  { %v601_v44 = vpop.f32.mrf.mxu3 }
  0xe5   :  { %v602_v45 = vadd.f32 %v601_v44, %v573_v42  ;;  %712 = vmatmul.f32.gmra.mxu0 %v670_v43  ;;  %v1086_v43 = vunpack.c.h.bf16 %v1089_v62 }
  0xe7   :  { %v631_v50 = vadd.f32 %v630_v32, %v602_v45  ;;  %v640_v31 = vpop.f32.mrf.mxu0  ;;  %v555_v35 = vpop.f32.mrf.mxu1 }
  0xe8   :  { %v556_v15 = vadd.f32 %v555_v35, %v527_v36 }
  0xe9   :  { %v663_v53 = vadd.f32 %v1077_v47, %v631_v50 }
  0xea   :  { %v585_v39 = vadd.f32 %v584_v4, %v556_v15 }
  0xeb   :  { %v671_v57 = vmax.f32 %v663_v53, 0.0 }
  0xec   :  { %v603_v58 = vpop.f32.mrf.mxu3 }
  0xed   :  { %v604_v59 = vadd.f32 %v603_v58, %v575_v55  ;;  %715 = vmatmul.f32.gmra.mxu0 %v671_v57  ;;  %v734_v57 = vld [vmem:[%s1525_s5] sm:$0xff]  ;;  %v735_v58 = vld [vmem:[%s1525_s5 + $0x8] sm:$0x3] }
  0xef   :  { %v633_v63 = vadd.f32 %v632_v48, %v604_v59  ;;  %v642_v44 = vpop.f32.mrf.mxu0  ;;  %v741_v59 = vpop.permute.xlu2 %740 }
  0xf1   :  { %v664_v3 = vadd.f32 %v1078_v60, %v633_v63  ;;  %v746_v63 = vpop.permute.xlu0 %745 }
  0xf3   :  { %v672_v8 = vmax.f32 %v664_v3, 0.0 }
  0xf4   :  { %v606_v10 = vpop.f32.mrf.mxu3 }
  0xf5   :  { %v607_v11 = vadd.f32 %v606_v10, %v578_v0  ;;  %718 = vmatmul.f32.vlgmr.msrb.gmra.mxu1 %v672_v8 }
  0xf7   :  { %v636_v56 = vadd.f32 %v635_v1, %v607_v11 }
  0xf9   :  { %v665_v16 = vadd.f32 %v1081_v13, %v636_v56 }
  0xfb   :  { %v673_v19 = vmax.f32 %v665_v16, 0.0 }
  0xfc   :  { %v608_v21 = vpop.f32.mrf.mxu3 }
  0xfd   :  { %v609_v22 = vadd.f32 %v608_v21, %v580_v18  ;;  %721 = vmatmul.f32.gmra.mxu1 %v673_v19 }
  0xff   :  { %v638_v26 = vadd.f32 %v637_v17, %v609_v22 }
 0x101   :  { %v666_v28 = vadd.f32 %v1082_v23, %v638_v26 }
 0x103   :  { %v674_v30 = vmax.f32 %v666_v28, 0.0 }
 0x104   :  { %v611_v32 = vpop.f32.mrf.mxu3 }
 0x105   :  { %v612_v33 = vadd.f32 %v611_v32, %v583_v29  ;;  %724 = vmatmul.f32.gmra.mxu1 %v674_v30 }
 0x107   :  { %v641_v37 = vadd.f32 %v640_v31, %v612_v33 }
 0x109   :  { %v667_v38 = vadd.f32 %v1085_v34, %v641_v37 }
 0x10b   :  { %v675_v40 = vmax.f32 %v667_v38, 0.0 }
 0x10c   :  { %v613_v41 = vpop.f32.mrf.mxu3 }
 0x10d   :  { %v614_v42 = vadd.f32 %v613_v41, %v585_v39  ;;  %727 = vmatmul.f32.gmra.mxu1 %v675_v40 }
 0x10f   :  { %v643_v45 = vadd.f32 %v642_v44, %v614_v42 }
 0x111   :  { %v668_v47 = vadd.f32 %v1086_v43, %v643_v45 }
 0x113   :  { %v676_v48 = vmax.f32 %v668_v47, 0.0 }
 0x115   :  { %730 = vmatmul.f32.gmra.mxu1 %v676_v48 }
 0x15a   :  { %v710_v46 = vpop.f32.mrf.mxu0 }
 0x162   :  { %v713_v53 = vpop.f32.mrf.mxu0 }
 0x16a   :  { %v716_v55 = vpop.f32.mrf.mxu0 }
 0x172   :  { %v719_v49 = vpop.f32.mrf.mxu1 }
 0x17a   :  { %v722_v50 = vpop.f32.mrf.mxu1 }
 0x182   :  { %v725_v52 = vpop.f32.mrf.mxu1 }
 0x18a   :  { %v728_v12 = vpop.f32.mrf.mxu1 }
 0x192   :  { %v731_v54 = vpop.f32.mrf.mxu1 }
 0x193   :  { %762 = vmatpush.msrb.mxu2 %v731_v54 }
 0x195   :  { %763 = vmatpush.msrb.mxu2 %v728_v12 }
 0x197   :  { %764 = vmatpush.msrb.mxu2 %v725_v52 }
 0x199   :  { %765 = vmatpush.msrb.mxu2 %v722_v50 }
 0x19b   :  { %766 = vmatpush.msrb.mxu2 %v719_v49 }
 0x19d   :  { %767 = vmatpush.msrb.mxu2 %v716_v55 }
 0x19f   :  { %768 = vmatpush.msrb.mxu2 %v713_v53 }
 0x1a1   :  { %769 = vmatpush.msrb.mxu2 %v710_v46 }
 0x1a2   :  { %1013 = vmatmul.msk.f32.vlgmr.msrb.gmra.mxu2 %vm487_vm0, %v734_v57 }
 0x1aa   :  { %1014 = vmatmul.msk.f32.gmra.mxu2 %vm487_vm0, %v735_v58 }
 0x225   :  { %v771_v60 = vpop.f32.mrf.mxu2 }
 0x226   :  { %v772_v61 = vadd.f32 %v771_v60, %v741_v59 }
 0x228   :  { %778 = vst.msk [vmem:[%s1526_s7] sm:$0xff] %vm777_vm1, %v772_v61 }
 0x22d   :  { %v774_v1 = vpop.f32.mrf.mxu2 }
 0x22e   :  { %v775_v2 = vadd.f32 %v774_v1, %v746_v63 }
 0x230   :  { %780 = vst.msk [vmem:[%s1526_s7 + $0x8] sm:$0x3] %vm779_vm2, %v775_v2 }

</bundles_post_ra>
